<compile_context>
chip_gen: v7x
topology: tpu7x:2x2x1
jax: 0.10.0
libtpu: 0.0.40
codegen_flags: <defaults>
</compile_context>

<pallas_src>
import functools

import jax
import jax.numpy as jnp
from jax.experimental import pallas as pl
from jax.experimental.pallas import tpu as pltpu

LN_EPS = 1e-5  # nn.LayerNorm default


def _layernorm(h, g, b):
    mu = jnp.mean(h, axis=-1, keepdims=True)
    var = jnp.mean((h - mu) ** 2, axis=-1, keepdims=True)
    return (h - mu) * jax.lax.rsqrt(var + LN_EPS) * g + b


# ---------------------------------------------------------------------------
# One fused kernel: all transformer layers + max-pool + MLP head, for one
# batch tile (default: the whole batch).
# ---------------------------------------------------------------------------
def fused_kernel(x_ref, *refs, heads, seq, batch_tile, num_layers, mxu_dtype):
    # refs = 11*num_layers layer-param refs, 6 head-param refs, o_ref.
    n_layer_refs = 11 * num_layers
    layer_refs = refs[:n_layer_refs]
    wa, ba, wb, bb, wc, bc = refs[n_layer_refs:n_layer_refs + 6]
    o_ref = refs[n_layer_refs + 6]

    E = x_ref.shape[-1]
    Dh = E // heads
    rows = batch_tile * seq

    def cast(a):
        return a.astype(mxu_dtype)

    def mm(a, w_ref, b_ref=None):
        # bf16 (or f32) MXU operands, f32 accumulation; bias added in f32.
        y = jnp.dot(cast(a), w_ref[...], preferred_element_type=jnp.float32)
        if b_ref is not None:
            y = y + b_ref[...]
        return y

    x = x_ref[...]                       # [rows, E] f32 activations

    for layer in range(num_layers):      # static unroll (num_layers is small)
        (wqkv, wo, bo, g1, b1, w1, bf1, w2, bf2, g2, b2) = \
            layer_refs[11 * layer:11 * (layer + 1)]

        # Fused QKV projection.  The q columns of wqkv were pre-scaled by
        # 1/sqrt(embed_size) in the wrapper.
        qkv = mm(x, wqkv)                # [rows, 3E] f32

        # Per-head attention batched over the batch dim; output projection is
        # accumulated as per-head partial matmuls against row-blocks of wo
        # (== concat(heads) @ wo), so no scratch / masked stores / concat.
        attn = None
        for h in range(heads):
            qh = qkv[:, h * Dh:(h + 1) * Dh].reshape(batch_tile, seq, Dh)
            kh = qkv[:, E + h * Dh:E + (h + 1) * Dh].reshape(batch_tile, seq, Dh)
            vh = qkv[:, 2 * E + h * Dh:2 * E + (h + 1) * Dh].reshape(batch_tile, seq, Dh)

            e = jnp.einsum('bqd,bkd->bqk', cast(qh), cast(kh),
                           preferred_element_type=jnp.float32)     # [b, q, k]
            e = e - jnp.max(e, axis=-1, keepdims=True)
            p = jnp.exp(e)
            p = p * pl.reciprocal(jnp.sum(p, axis=-1, keepdims=True),
                                  approx=True)
            oh = jnp.einsum('bqk,bkd->bqd', cast(p), cast(vh),
                            preferred_element_type=jnp.float32)    # [b, q, Dh]
            oh = oh.reshape(rows, Dh)
            part = jnp.dot(cast(oh), wo[h * Dh:(h + 1) * Dh, :],
                           preferred_element_type=jnp.float32)     # [rows, E]
            attn = part if attn is None else attn + part
        attn = attn + bo[...]

        # Residual + LayerNorm 1 (dropout == identity in eval mode), all f32.
        x1 = _layernorm(attn + x, g1[...], b1[...])

        # Feed-forward: Linear(E,4E) -> ReLU -> Linear(4E,E), batched rows.
        f = jnp.maximum(mm(x1, w1, bf1), 0.0)
        f = mm(f, w2, bf2)

        # Residual + LayerNorm 2.
        x = _layernorm(f + x1, g2[...], b2[...])

    # Head: max over the sequence per batch element (pure value op, no
    # scratch), then the MLP over all batch rows at once.
    m = jnp.max(x.reshape(batch_tile, seq, E), axis=1)              # [b, E]
    z = jnp.maximum(mm(m, wa, ba), 0.0)
    z = jnp.maximum(mm(z, wb, bb), 0.0)
    # Lane-dense store: wc/bc are pre-padded to a multiple of 128 output cols.
    o_ref[...] = mm(z, wc, bc)


# ---------------------------------------------------------------------------
# Wrapper: concat, flatten, pack/pre-cast params, single pallas_call.
# ---------------------------------------------------------------------------
def compared_network_transformer(output1, output2, params, *, heads,
                                 output_size, batch_tile=None,
                                 mxu_dtype=jnp.bfloat16):
    x = jnp.concatenate([output1, output2], axis=1)                 # [N, L, E]
    N, L, E = x.shape
    assert E % heads == 0
    if batch_tile is None:
        # Whole batch in one grid step (best for single-TC v5e/v6e).  On v7x
        # pass batch_tile = N // 2 (a multiple of 8) so megacore has >= 2
        # parallel grid steps to shard.
        batch_tile = N
    assert N % batch_tile == 0
    num_tiles = N // batch_tile
    if num_tiles > 1:
        assert batch_tile % 8 == 0, "(8,128) BlockSpec rule when tiling batch"
    rows = batch_tile * L
    x2d = x.reshape(N * L, E).astype(jnp.float32)    # row-dense matmul layout

    scale = 1.0 / (E ** 0.5)             # PyTorch: energy / sqrt(embed_size)
    num_layers = len(params['layers'])
    layer_params = []
    for blk in params['layers']:
        # Fuse q/k/v into one [E, 3E] weight; fold the softmax scale into q.
        wqkv = jnp.concatenate([blk['wq'] * scale, blk['wk'], blk['wv']],
                               axis=1).astype(mxu_dtype)
        layer_params += [
            wqkv,
            blk['wo'].astype(mxu_dtype), blk['bo'],
            blk['g1'], blk['b1'],
            blk['w1'].astype(mxu_dtype), blk['bf1'],
            blk['w2'].astype(mxu_dtype), blk['bf2'],
            blk['g2'], blk['b2'],
        ]

    hp = params['head']
    out_pad = max(128, ((output_size + 127) // 128) * 128)
    wc_p = jnp.zeros((hp['wc'].shape[0], out_pad), jnp.float32)
    wc_p = wc_p.at[:, :output_size].set(hp['wc']).astype(mxu_dtype)
    bc_p = jnp.zeros((1, out_pad), jnp.float32).at[:, :output_size].set(hp['bc'])
    head_params = [hp['wa'].astype(mxu_dtype), hp['ba'],
                   hp['wb'].astype(mxu_dtype), hp['bb'],
                   wc_p, bc_p]
    all_params = layer_params + head_params

    kernel = functools.partial(fused_kernel, heads=heads, seq=L,
                               batch_tile=batch_tile, num_layers=num_layers,
                               mxu_dtype=mxu_dtype)

    # VMEM limit derived from actual buffer sizes (worst case: everything
    # double-buffered) with headroom, capped by the physical per-core VMEM.
    param_bytes = sum(p.size * p.dtype.itemsize for p in all_params)
    io_bytes = rows * E * 4 + batch_tile * out_pad * 4
    want = 2 * (param_bytes + io_bytes) + (8 << 20)
    try:
        phys = pltpu.get_tpu_info().vmem_capacity_bytes
    except Exception:
        phys = 64 << 20          # conservative: v7x per-TensorCore VMEM
    vmem_limit = max(16 << 20, min(int(want), int(phys * 3 // 4)))

    def run(buffered):
        def spec(shape, imap, single):
            if buffered and single:
                # Grid-invariant (or 1-step-grid) blocks: no double buffering.
                return pl.BlockSpec(shape, imap, pipeline_mode=pl.Buffered(1))
            return pl.BlockSpec(shape, imap)

        in_specs = [spec((rows, E), lambda i: (i, 0), num_tiles == 1)]
        in_specs += [spec(p.shape, lambda i: (0, 0), True) for p in all_params]
        out_spec = spec((batch_tile, out_pad), lambda i: (i, 0), num_tiles == 1)

        return pl.pallas_call(
            kernel,
            out_shape=jax.ShapeDtypeStruct((N, out_pad), jnp.float32),
            grid=(num_tiles,),
            in_specs=in_specs,
            out_specs=out_spec,
            compiler_params=pltpu.CompilerParams(
                dimension_semantics=("parallel",),
                vmem_limit_bytes=vmem_limit),
        )(x2d, *all_params)

    try:
        out = run(buffered=True)
    except Exception:
        # pipeline_mode=pl.Buffered(1) support varies across JAX versions;
        # fall back to default double buffering (identical results).
        out = run(buffered=False)
    return out[:, :output_size]


# ---------------------------------------------------------------------------
# Deterministic parameter init (synthetic; shapes follow the nn.Module).
# Weights stored as [in, out] (already transposed vs. PyTorch's [out, in]).
# ---------------------------------------------------------------------------
def init_params(key, embed_size, heads, num_layers, output_size):
    def dense(k, fan_in, fan_out, bias=True):
        k1, k2 = jax.random.split(k)
        w = jax.random.normal(k1, (fan_in, fan_out), jnp.float32) / jnp.sqrt(fan_in)
        b = (jax.random.normal(k2, (1, fan_out), jnp.float32) * 0.01) if bias else None
        return w, b

    layers = []
    for _ in range(num_layers):
        key, *ks = jax.random.split(key, 10)
        wq, _ = dense(ks[0], embed_size, embed_size, bias=False)
        wk, _ = dense(ks[1], embed_size, embed_size, bias=False)
        wv, _ = dense(ks[2], embed_size, embed_size, bias=False)
        wo, bo = dense(ks[3], embed_size, embed_size)
        w1, bf1 = dense(ks[4], embed_size, 4 * embed_size)
        w2, bf2 = dense(ks[5], 4 * embed_size, embed_size)
        g1 = jnp.ones((1, embed_size), jnp.float32)
        b1 = jnp.zeros((1, embed_size), jnp.float32)
        g2 = jnp.ones((1, embed_size), jnp.float32)
        b2 = jnp.zeros((1, embed_size), jnp.float32)
        layers.append(dict(wq=wq, wk=wk, wv=wv, wo=wo, bo=bo, g1=g1, b1=b1,
                           w1=w1, bf1=bf1, w2=w2, bf2=bf2, g2=g2, b2=b2))

    key, ka, kb, kc = jax.random.split(key, 4)
    wa, ba = dense(ka, embed_size, 256)
    wb, bb = dense(kb, 256, 128)
    wc, bc = dense(kc, 128, output_size)
    head = dict(wa=wa, ba=ba, wb=wb, bb=bb, wc=wc, bc=bc)
    return dict(layers=layers, head=head)


# ---------------------------------------------------------------------------
# Pure-JAX f32 reference (mirrors the PyTorch forward exactly).
# ---------------------------------------------------------------------------
def reference_forward(output1, output2, params, *, heads):
    x = jnp.concatenate([output1, output2], axis=1)
    for blk in params['layers']:
        N, L, E = x.shape
        Dh = E // heads
        q = (x @ blk['wq']).reshape(N, L, heads, Dh)
        k = (x @ blk['wk']).reshape(N, L, heads, Dh)
        v = (x @ blk['wv']).reshape(N, L, heads, Dh)
        energy = jnp.einsum('nqhd,nkhd->nhqk', q, k)
        attn = jax.nn.softmax(energy / (E ** 0.5), axis=3)
        out = jnp.einsum('nhql,nlhd->nqhd', attn, v).reshape(N, L, E)
        out = out @ blk['wo'] + blk['bo']
        x1 = _layernorm(out + x, blk['g1'], blk['b1'])
        f = jax.nn.relu(x1 @ blk['w1'] + blk['bf1']) @ blk['w2'] + blk['bf2']
        x = _layernorm(f + x1, blk['g2'], blk['b2'])
    m = jnp.max(x, axis=1)
    hp = params['head']
    z = jax.nn.relu(m @ hp['wa'] + hp['ba'])
    z = jax.nn.relu(z @ hp['wb'] + hp['bb'])
    return z @ hp['wc'] + hp['bc']


if __name__ == "__main__":
    # Small shapes consistent with the module: embed=32, heads=4, 1 layer.
    # NOTE: at these shapes every matmul pads to 128 lanes internally and the
    # kernel is overhead-bound; benchmark with E>=256, rows>=512 for real
    # performance comparisons.
    EMBED, HEADS, NUM_LAYERS, OUTPUT_SIZE = 32, 4, 1, 2
    N, S = 2, 4                                   # each input: [N, S, EMBED]

    key = jax.random.PRNGKey(0)
    k1, k2, kp = jax.random.split(key, 3)
    output1 = jax.random.normal(k1, (N, S, EMBED), jnp.float32)
    output2 = jax.random.normal(k2, (N, S, EMBED), jnp.float32)
    params = init_params(kp, EMBED, HEADS, NUM_LAYERS, OUTPUT_SIZE)

    out = compared_network_transformer(output1, output2, params,
                                       heads=HEADS, output_size=OUTPUT_SIZE)
    out = jax.block_until_ready(out)

    ref = reference_forward(output1, output2, params, heads=HEADS)
    assert out.shape == (N, OUTPUT_SIZE), out.shape
    # Tolerance accounts for bf16 MXU operands (f32 accumulation) and the
    # approximate EUP reciprocal in the softmax normalization.
    assert jnp.allclose(out, ref, rtol=5e-2, atol=5e-2), (out, ref)
    print("KERNEL_OK")
</pallas_src>

<mosaic_0001>
module attributes {stable_mosaic.version = 11 : i64} {
  func.func @fused_kernel(%arg0: i32, %arg1: memref<16x32xf32, #tpu.memory_space<vmem>>, %arg2: memref<32x96xbf16, #tpu.memory_space<vmem>>, %arg3: memref<32x32xbf16, #tpu.memory_space<vmem>>, %arg4: memref<1x32xf32, #tpu.memory_space<vmem>>, %arg5: memref<1x32xf32, #tpu.memory_space<vmem>>, %arg6: memref<1x32xf32, #tpu.memory_space<vmem>>, %arg7: memref<32x128xbf16, #tpu.memory_space<vmem>>, %arg8: memref<1x128xf32, #tpu.memory_space<vmem>>, %arg9: memref<128x32xbf16, #tpu.memory_space<vmem>>, %arg10: memref<1x32xf32, #tpu.memory_space<vmem>>, %arg11: memref<1x32xf32, #tpu.memory_space<vmem>>, %arg12: memref<1x32xf32, #tpu.memory_space<vmem>>, %arg13: memref<32x256xbf16, #tpu.memory_space<vmem>>, %arg14: memref<1x256xf32, #tpu.memory_space<vmem>>, %arg15: memref<256x128xbf16, #tpu.memory_space<vmem>>, %arg16: memref<1x128xf32, #tpu.memory_space<vmem>>, %arg17: memref<128x128xbf16, #tpu.memory_space<vmem>>, %arg18: memref<1x128xf32, #tpu.memory_space<vmem>>, %arg19: memref<2x128xf32, #tpu.memory_space<vmem>>) attributes {dimension_semantics = [#tpu.dimension_semantics<parallel>], iteration_bounds = array<i64: 1>, scalar_prefetch = 0 : i64, scratch_operands = 0 : i64, tpu.core_type = #tpu.core_type<tc>, window_params = [{pipeline_mode = #tpu.pipeline_mode<synchronous>, transform_indices = @transform_0, window_bounds = array<i64: 16, 32>}, {pipeline_mode = #tpu.pipeline_mode<synchronous>, transform_indices = @transform_1, window_bounds = array<i64: 32, 96>}, {pipeline_mode = #tpu.pipeline_mode<synchronous>, transform_indices = @transform_2, window_bounds = array<i64: 32, 32>}, {pipeline_mode = #tpu.pipeline_mode<synchronous>, transform_indices = @transform_3, window_bounds = array<i64: 1, 32>}, {pipeline_mode = #tpu.pipeline_mode<synchronous>, transform_indices = @transform_4, window_bounds = array<i64: 1, 32>}, {pipeline_mode = #tpu.pipeline_mode<synchronous>, transform_indices = @transform_5, window_bounds = array<i64: 1, 32>}, {pipeline_mode = #tpu.pipeline_mode<synchronous>, transform_indices = @transform_6, window_bounds = array<i64: 32, 128>}, {pipeline_mode = #tpu.pipeline_mode<synchronous>, transform_indices = @transform_7, window_bounds = array<i64: 1, 128>}, {pipeline_mode = #tpu.pipeline_mode<synchronous>, transform_indices = @transform_8, window_bounds = array<i64: 128, 32>}, {pipeline_mode = #tpu.pipeline_mode<synchronous>, transform_indices = @transform_9, window_bounds = array<i64: 1, 32>}, {pipeline_mode = #tpu.pipeline_mode<synchronous>, transform_indices = @transform_10, window_bounds = array<i64: 1, 32>}, {pipeline_mode = #tpu.pipeline_mode<synchronous>, transform_indices = @transform_11, window_bounds = array<i64: 1, 32>}, {pipeline_mode = #tpu.pipeline_mode<synchronous>, transform_indices = @transform_12, window_bounds = array<i64: 32, 256>}, {pipeline_mode = #tpu.pipeline_mode<synchronous>, transform_indices = @transform_13, window_bounds = array<i64: 1, 256>}, {pipeline_mode = #tpu.pipeline_mode<synchronous>, transform_indices = @transform_14, window_bounds = array<i64: 256, 128>}, {pipeline_mode = #tpu.pipeline_mode<synchronous>, transform_indices = @transform_15, window_bounds = array<i64: 1, 128>}, {pipeline_mode = #tpu.pipeline_mode<synchronous>, transform_indices = @transform_16, window_bounds = array<i64: 128, 128>}, {pipeline_mode = #tpu.pipeline_mode<synchronous>, transform_indices = @transform_17, window_bounds = array<i64: 1, 128>}, {pipeline_mode = #tpu.pipeline_mode<synchronous>, transform_indices = @transform_18, window_bounds = array<i64: 2, 128>}]} {
    %c0 = arith.constant 0 : index
    %c0_0 = arith.constant 0 : index
    %0 = vector.load %arg1[%c0, %c0_0] : memref<16x32xf32, #tpu.memory_space<vmem>>, vector<16x32xf32>
    %1 = arith.truncf %0 : vector<16x32xf32> to vector<16x32xbf16>
    %c0_1 = arith.constant 0 : index
    %c0_2 = arith.constant 0 : index
    %2 = vector.load %arg2[%c0_1, %c0_2] : memref<32x96xbf16, #tpu.memory_space<vmem>>, vector<32x96xbf16>
    %cst = arith.constant dense<0.000000e+00> : vector<16x96xf32>
    %3 = tpu.matmul %1, %2, %cst {dimension_numbers = #tpu.dot_dimension_numbers<[1], [0], [0], [1], [0, 0, 1, 1], [], []>} : vector<16x32xbf16>, vector<32x96xbf16>, vector<16x96xf32> -> vector<16x96xf32>
    %4 = vector.extract_strided_slice %3 {offsets = [0, 0], sizes = [16, 8], strides = [1, 1]} : vector<16x96xf32> to vector<16x8xf32>
    %5 = vector.shape_cast %4 : vector<16x8xf32> to vector<2x8x8xf32>
    %6 = vector.extract_strided_slice %3 {offsets = [0, 32], sizes = [16, 8], strides = [1, 1]} : vector<16x96xf32> to vector<16x8xf32>
    %7 = vector.shape_cast %6 : vector<16x8xf32> to vector<2x8x8xf32>
    %8 = vector.extract_strided_slice %3 {offsets = [0, 64], sizes = [16, 8], strides = [1, 1]} : vector<16x96xf32> to vector<16x8xf32>
    %9 = vector.shape_cast %8 : vector<16x8xf32> to vector<2x8x8xf32>
    %10 = arith.truncf %5 : vector<2x8x8xf32> to vector<2x8x8xbf16>
    %11 = arith.truncf %7 : vector<2x8x8xf32> to vector<2x8x8xbf16>
    "tpu.trace_start"() <{level = 10 : i32, message = "bqd,bkd->bqk"}> : () -> ()
    %cst_3 = arith.constant dense<0.000000e+00> : vector<2x8x8xf32>
    %12 = tpu.matmul %10, %11, %cst_3 {dimension_numbers = #tpu.dot_dimension_numbers<[2], [2], [1], [1], [0, 0, 0, 1, 1, 1], [0], [0]>} : vector<2x8x8xbf16>, vector<2x8x8xbf16>, vector<2x8x8xf32> -> vector<2x8x8xf32>
    "tpu.trace_stop"() : () -> ()
    %cst_4 = arith.constant dense<0xFF800000> : vector<2x8xf32>
    %13 = vector.multi_reduction <maximumf>, %12, %cst_4 [2] : vector<2x8x8xf32> to vector<2x8xf32>
    %14 = vector.shape_cast %13 : vector<2x8xf32> to vector<2x8x1xf32>
    %15 = vector.broadcast %14 : vector<2x8x1xf32> to vector<2x8x8xf32>
    %16 = arith.subf %12, %15 : vector<2x8x8xf32>
    %17 = math.exp %16 : vector<2x8x8xf32>
    %cst_5 = arith.constant dense<0.000000e+00> : vector<2x8xf32>
    %18 = vector.multi_reduction <add>, %17, %cst_5 [2] : vector<2x8x8xf32> to vector<2x8xf32>
    %19 = vector.shape_cast %18 : vector<2x8xf32> to vector<2x8x1xf32>
    %20 = tpu.reciprocal %19 {approx = true} : vector<2x8x1xf32> -> vector<2x8x1xf32>
    %21 = vector.broadcast %20 : vector<2x8x1xf32> to vector<2x8x8xf32>
    %22 = arith.mulf %17, %21 : vector<2x8x8xf32>
    %23 = arith.truncf %22 : vector<2x8x8xf32> to vector<2x8x8xbf16>
    %24 = arith.truncf %9 : vector<2x8x8xf32> to vector<2x8x8xbf16>
    "tpu.trace_start"() <{level = 10 : i32, message = "bqk,bkd->bqd"}> : () -> ()
    %cst_6 = arith.constant dense<0.000000e+00> : vector<2x8x8xf32>
    %25 = tpu.matmul %23, %24, %cst_6 {dimension_numbers = #tpu.dot_dimension_numbers<[2], [1], [1], [2], [0, 0, 0, 1, 1, 2], [0], [0]>} : vector<2x8x8xbf16>, vector<2x8x8xbf16>, vector<2x8x8xf32> -> vector<2x8x8xf32>
    "tpu.trace_stop"() : () -> ()
    %26 = vector.shape_cast %25 : vector<2x8x8xf32> to vector<16x8xf32>
    %27 = arith.truncf %26 : vector<16x8xf32> to vector<16x8xbf16>
    %c0_7 = arith.constant 0 : index
    %c0_8 = arith.constant 0 : index
    %28 = vector.load %arg3[%c0_7, %c0_8] : memref<32x32xbf16, #tpu.memory_space<vmem>>, vector<8x32xbf16>
    %cst_9 = arith.constant dense<0.000000e+00> : vector<16x32xf32>
    %29 = tpu.matmul %27, %28, %cst_9 {dimension_numbers = #tpu.dot_dimension_numbers<[1], [0], [0], [1], [0, 0, 1, 1], [], []>} : vector<16x8xbf16>, vector<8x32xbf16>, vector<16x32xf32> -> vector<16x32xf32>
    %30 = vector.extract_strided_slice %3 {offsets = [0, 8], sizes = [16, 8], strides = [1, 1]} : vector<16x96xf32> to vector<16x8xf32>
    %31 = vector.shape_cast %30 : vector<16x8xf32> to vector<2x8x8xf32>
    %32 = vector.extract_strided_slice %3 {offsets = [0, 40], sizes = [16, 8], strides = [1, 1]} : vector<16x96xf32> to vector<16x8xf32>
    %33 = vector.shape_cast %32 : vector<16x8xf32> to vector<2x8x8xf32>
    %34 = vector.extract_strided_slice %3 {offsets = [0, 72], sizes = [16, 8], strides = [1, 1]} : vector<16x96xf32> to vector<16x8xf32>
    %35 = vector.shape_cast %34 : vector<16x8xf32> to vector<2x8x8xf32>
    %36 = arith.truncf %31 : vector<2x8x8xf32> to vector<2x8x8xbf16>
    %37 = arith.truncf %33 : vector<2x8x8xf32> to vector<2x8x8xbf16>
    "tpu.trace_start"() <{level = 10 : i32, message = "bqd,bkd->bqk"}> : () -> ()
    %cst_10 = arith.constant dense<0.000000e+00> : vector<2x8x8xf32>
    %38 = tpu.matmul %36, %37, %cst_10 {dimension_numbers = #tpu.dot_dimension_numbers<[2], [2], [1], [1], [0, 0, 0, 1, 1, 1], [0], [0]>} : vector<2x8x8xbf16>, vector<2x8x8xbf16>, vector<2x8x8xf32> -> vector<2x8x8xf32>
    "tpu.trace_stop"() : () -> ()
    %cst_11 = arith.constant dense<0xFF800000> : vector<2x8xf32>
    %39 = vector.multi_reduction <maximumf>, %38, %cst_11 [2] : vector<2x8x8xf32> to vector<2x8xf32>
    %40 = vector.shape_cast %39 : vector<2x8xf32> to vector<2x8x1xf32>
    %41 = vector.broadcast %40 : vector<2x8x1xf32> to vector<2x8x8xf32>
    %42 = arith.subf %38, %41 : vector<2x8x8xf32>
    %43 = math.exp %42 : vector<2x8x8xf32>
    %cst_12 = arith.constant dense<0.000000e+00> : vector<2x8xf32>
    %44 = vector.multi_reduction <add>, %43, %cst_12 [2] : vector<2x8x8xf32> to vector<2x8xf32>
    %45 = vector.shape_cast %44 : vector<2x8xf32> to vector<2x8x1xf32>
    %46 = tpu.reciprocal %45 {approx = true} : vector<2x8x1xf32> -> vector<2x8x1xf32>
    %47 = vector.broadcast %46 : vector<2x8x1xf32> to vector<2x8x8xf32>
    %48 = arith.mulf %43, %47 : vector<2x8x8xf32>
    %49 = arith.truncf %48 : vector<2x8x8xf32> to vector<2x8x8xbf16>
    %50 = arith.truncf %35 : vector<2x8x8xf32> to vector<2x8x8xbf16>
    "tpu.trace_start"() <{level = 10 : i32, message = "bqk,bkd->bqd"}> : () -> ()
    %cst_13 = arith.constant dense<0.000000e+00> : vector<2x8x8xf32>
    %51 = tpu.matmul %49, %50, %cst_13 {dimension_numbers = #tpu.dot_dimension_numbers<[2], [1], [1], [2], [0, 0, 0, 1, 1, 2], [0], [0]>} : vector<2x8x8xbf16>, vector<2x8x8xbf16>, vector<2x8x8xf32> -> vector<2x8x8xf32>
    "tpu.trace_stop"() : () -> ()
    %52 = vector.shape_cast %51 : vector<2x8x8xf32> to vector<16x8xf32>
    %53 = arith.truncf %52 : vector<16x8xf32> to vector<16x8xbf16>
    %c8 = arith.constant 8 : index
    %c0_14 = arith.constant 0 : index
    %54 = vector.load %arg3[%c8, %c0_14] : memref<32x32xbf16, #tpu.memory_space<vmem>>, vector<8x32xbf16>
    %cst_15 = arith.constant dense<0.000000e+00> : vector<16x32xf32>
    %55 = tpu.matmul %53, %54, %cst_15 {dimension_numbers = #tpu.dot_dimension_numbers<[1], [0], [0], [1], [0, 0, 1, 1], [], []>} : vector<16x8xbf16>, vector<8x32xbf16>, vector<16x32xf32> -> vector<16x32xf32>
    %56 = arith.addf %29, %55 : vector<16x32xf32>
    %57 = vector.extract_strided_slice %3 {offsets = [0, 16], sizes = [16, 8], strides = [1, 1]} : vector<16x96xf32> to vector<16x8xf32>
    %58 = vector.shape_cast %57 : vector<16x8xf32> to vector<2x8x8xf32>
    %59 = vector.extract_strided_slice %3 {offsets = [0, 48], sizes = [16, 8], strides = [1, 1]} : vector<16x96xf32> to vector<16x8xf32>
    %60 = vector.shape_cast %59 : vector<16x8xf32> to vector<2x8x8xf32>
    %61 = vector.extract_strided_slice %3 {offsets = [0, 80], sizes = [16, 8], strides = [1, 1]} : vector<16x96xf32> to vector<16x8xf32>
    %62 = vector.shape_cast %61 : vector<16x8xf32> to vector<2x8x8xf32>
    %63 = arith.truncf %58 : vector<2x8x8xf32> to vector<2x8x8xbf16>
    %64 = arith.truncf %60 : vector<2x8x8xf32> to vector<2x8x8xbf16>
    "tpu.trace_start"() <{level = 10 : i32, message = "bqd,bkd->bqk"}> : () -> ()
    %cst_16 = arith.constant dense<0.000000e+00> : vector<2x8x8xf32>
    %65 = tpu.matmul %63, %64, %cst_16 {dimension_numbers = #tpu.dot_dimension_numbers<[2], [2], [1], [1], [0, 0, 0, 1, 1, 1], [0], [0]>} : vector<2x8x8xbf16>, vector<2x8x8xbf16>, vector<2x8x8xf32> -> vector<2x8x8xf32>
    "tpu.trace_stop"() : () -> ()
    %cst_17 = arith.constant dense<0xFF800000> : vector<2x8xf32>
    %66 = vector.multi_reduction <maximumf>, %65, %cst_17 [2] : vector<2x8x8xf32> to vector<2x8xf32>
    %67 = vector.shape_cast %66 : vector<2x8xf32> to vector<2x8x1xf32>
    %68 = vector.broadcast %67 : vector<2x8x1xf32> to vector<2x8x8xf32>
    %69 = arith.subf %65, %68 : vector<2x8x8xf32>
    %70 = math.exp %69 : vector<2x8x8xf32>
    %cst_18 = arith.constant dense<0.000000e+00> : vector<2x8xf32>
    %71 = vector.multi_reduction <add>, %70, %cst_18 [2] : vector<2x8x8xf32> to vector<2x8xf32>
    %72 = vector.shape_cast %71 : vector<2x8xf32> to vector<2x8x1xf32>
    %73 = tpu.reciprocal %72 {approx = true} : vector<2x8x1xf32> -> vector<2x8x1xf32>
    %74 = vector.broadcast %73 : vector<2x8x1xf32> to vector<2x8x8xf32>
    %75 = arith.mulf %70, %74 : vector<2x8x8xf32>
    %76 = arith.truncf %75 : vector<2x8x8xf32> to vector<2x8x8xbf16>
    %77 = arith.truncf %62 : vector<2x8x8xf32> to vector<2x8x8xbf16>
    "tpu.trace_start"() <{level = 10 : i32, message = "bqk,bkd->bqd"}> : () -> ()
    %cst_19 = arith.constant dense<0.000000e+00> : vector<2x8x8xf32>
    %78 = tpu.matmul %76, %77, %cst_19 {dimension_numbers = #tpu.dot_dimension_numbers<[2], [1], [1], [2], [0, 0, 0, 1, 1, 2], [0], [0]>} : vector<2x8x8xbf16>, vector<2x8x8xbf16>, vector<2x8x8xf32> -> vector<2x8x8xf32>
    "tpu.trace_stop"() : () -> ()
    %79 = vector.shape_cast %78 : vector<2x8x8xf32> to vector<16x8xf32>
    %80 = arith.truncf %79 : vector<16x8xf32> to vector<16x8xbf16>
    %c16 = arith.constant 16 : index
    %c0_20 = arith.constant 0 : index
    %81 = vector.load %arg3[%c16, %c0_20] : memref<32x32xbf16, #tpu.memory_space<vmem>>, vector<8x32xbf16>
    %cst_21 = arith.constant dense<0.000000e+00> : vector<16x32xf32>
    %82 = tpu.matmul %80, %81, %cst_21 {dimension_numbers = #tpu.dot_dimension_numbers<[1], [0], [0], [1], [0, 0, 1, 1], [], []>} : vector<16x8xbf16>, vector<8x32xbf16>, vector<16x32xf32> -> vector<16x32xf32>
    %83 = arith.addf %56, %82 : vector<16x32xf32>
    %84 = vector.extract_strided_slice %3 {offsets = [0, 24], sizes = [16, 8], strides = [1, 1]} : vector<16x96xf32> to vector<16x8xf32>
    %85 = vector.shape_cast %84 : vector<16x8xf32> to vector<2x8x8xf32>
    %86 = vector.extract_strided_slice %3 {offsets = [0, 56], sizes = [16, 8], strides = [1, 1]} : vector<16x96xf32> to vector<16x8xf32>
    %87 = vector.shape_cast %86 : vector<16x8xf32> to vector<2x8x8xf32>
    %88 = vector.extract_strided_slice %3 {offsets = [0, 88], sizes = [16, 8], strides = [1, 1]} : vector<16x96xf32> to vector<16x8xf32>
    %89 = vector.shape_cast %88 : vector<16x8xf32> to vector<2x8x8xf32>
    %90 = arith.truncf %85 : vector<2x8x8xf32> to vector<2x8x8xbf16>
    %91 = arith.truncf %87 : vector<2x8x8xf32> to vector<2x8x8xbf16>
    "tpu.trace_start"() <{level = 10 : i32, message = "bqd,bkd->bqk"}> : () -> ()
    %cst_22 = arith.constant dense<0.000000e+00> : vector<2x8x8xf32>
    %92 = tpu.matmul %90, %91, %cst_22 {dimension_numbers = #tpu.dot_dimension_numbers<[2], [2], [1], [1], [0, 0, 0, 1, 1, 1], [0], [0]>} : vector<2x8x8xbf16>, vector<2x8x8xbf16>, vector<2x8x8xf32> -> vector<2x8x8xf32>
    "tpu.trace_stop"() : () -> ()
    %cst_23 = arith.constant dense<0xFF800000> : vector<2x8xf32>
    %93 = vector.multi_reduction <maximumf>, %92, %cst_23 [2] : vector<2x8x8xf32> to vector<2x8xf32>
    %94 = vector.shape_cast %93 : vector<2x8xf32> to vector<2x8x1xf32>
    %95 = vector.broadcast %94 : vector<2x8x1xf32> to vector<2x8x8xf32>
    %96 = arith.subf %92, %95 : vector<2x8x8xf32>
    %97 = math.exp %96 : vector<2x8x8xf32>
    %cst_24 = arith.constant dense<0.000000e+00> : vector<2x8xf32>
    %98 = vector.multi_reduction <add>, %97, %cst_24 [2] : vector<2x8x8xf32> to vector<2x8xf32>
    %99 = vector.shape_cast %98 : vector<2x8xf32> to vector<2x8x1xf32>
    %100 = tpu.reciprocal %99 {approx = true} : vector<2x8x1xf32> -> vector<2x8x1xf32>
    %101 = vector.broadcast %100 : vector<2x8x1xf32> to vector<2x8x8xf32>
    %102 = arith.mulf %97, %101 : vector<2x8x8xf32>
    %103 = arith.truncf %102 : vector<2x8x8xf32> to vector<2x8x8xbf16>
    %104 = arith.truncf %89 : vector<2x8x8xf32> to vector<2x8x8xbf16>
    "tpu.trace_start"() <{level = 10 : i32, message = "bqk,bkd->bqd"}> : () -> ()
    %cst_25 = arith.constant dense<0.000000e+00> : vector<2x8x8xf32>
    %105 = tpu.matmul %103, %104, %cst_25 {dimension_numbers = #tpu.dot_dimension_numbers<[2], [1], [1], [2], [0, 0, 0, 1, 1, 2], [0], [0]>} : vector<2x8x8xbf16>, vector<2x8x8xbf16>, vector<2x8x8xf32> -> vector<2x8x8xf32>
    "tpu.trace_stop"() : () -> ()
    %106 = vector.shape_cast %105 : vector<2x8x8xf32> to vector<16x8xf32>
    %107 = arith.truncf %106 : vector<16x8xf32> to vector<16x8xbf16>
    %c24 = arith.constant 24 : index
    %c0_26 = arith.constant 0 : index
    %108 = vector.load %arg3[%c24, %c0_26] : memref<32x32xbf16, #tpu.memory_space<vmem>>, vector<8x32xbf16>
    %cst_27 = arith.constant dense<0.000000e+00> : vector<16x32xf32>
    %109 = tpu.matmul %107, %108, %cst_27 {dimension_numbers = #tpu.dot_dimension_numbers<[1], [0], [0], [1], [0, 0, 1, 1], [], []>} : vector<16x8xbf16>, vector<8x32xbf16>, vector<16x32xf32> -> vector<16x32xf32>
    %110 = arith.addf %83, %109 : vector<16x32xf32>
    %c0_28 = arith.constant 0 : index
    %c0_29 = arith.constant 0 : index
    %111 = vector.load %arg4[%c0_28, %c0_29] : memref<1x32xf32, #tpu.memory_space<vmem>>, vector<1x32xf32>
    %112 = vector.broadcast %111 : vector<1x32xf32> to vector<16x32xf32>
    %113 = arith.addf %110, %112 : vector<16x32xf32>
    %114 = arith.addf %113, %0 : vector<16x32xf32>
    %c0_30 = arith.constant 0 : index
    %c0_31 = arith.constant 0 : index
    %115 = vector.load %arg5[%c0_30, %c0_31] : memref<1x32xf32, #tpu.memory_space<vmem>>, vector<1x32xf32>
    %c0_32 = arith.constant 0 : index
    %c0_33 = arith.constant 0 : index
    %116 = vector.load %arg6[%c0_32, %c0_33] : memref<1x32xf32, #tpu.memory_space<vmem>>, vector<1x32xf32>
    %cst_34 = arith.constant dense<0.000000e+00> : vector<16xf32>
    %117 = vector.multi_reduction <add>, %114, %cst_34 [1] : vector<16x32xf32> to vector<16xf32>
    %118 = vector.shape_cast %117 : vector<16xf32> to vector<16x1xf32>
    %cst_35 = arith.constant 3.200000e+01 : f32
    %119 = vector.broadcast %cst_35 : f32 to vector<16x1xf32>
    %120 = arith.divf %118, %119 : vector<16x1xf32>
    %121 = vector.broadcast %120 : vector<16x1xf32> to vector<16x32xf32>
    %122 = arith.subf %114, %121 : vector<16x32xf32>
    %123 = arith.mulf %122, %122 : vector<16x32xf32>
    %cst_36 = arith.constant dense<0.000000e+00> : vector<16xf32>
    %124 = vector.multi_reduction <add>, %123, %cst_36 [1] : vector<16x32xf32> to vector<16xf32>
    %125 = vector.shape_cast %124 : vector<16xf32> to vector<16x1xf32>
    %cst_37 = arith.constant 3.200000e+01 : f32
    %126 = vector.broadcast %cst_37 : f32 to vector<16x1xf32>
    %127 = arith.divf %125, %126 : vector<16x1xf32>
    %128 = vector.broadcast %120 : vector<16x1xf32> to vector<16x32xf32>
    %129 = arith.subf %114, %128 : vector<16x32xf32>
    %cst_38 = arith.constant 9.99999974E-6 : f32
    %130 = vector.broadcast %cst_38 : f32 to vector<16x1xf32>
    %131 = arith.addf %127, %130 : vector<16x1xf32>
    %132 = math.rsqrt %131 : vector<16x1xf32>
    %133 = vector.broadcast %132 : vector<16x1xf32> to vector<16x32xf32>
    %134 = arith.mulf %129, %133 : vector<16x32xf32>
    %135 = vector.broadcast %115 : vector<1x32xf32> to vector<16x32xf32>
    %136 = arith.mulf %134, %135 : vector<16x32xf32>
    %137 = vector.broadcast %116 : vector<1x32xf32> to vector<16x32xf32>
    %138 = arith.addf %136, %137 : vector<16x32xf32>
    %139 = arith.truncf %138 : vector<16x32xf32> to vector<16x32xbf16>
    %c0_39 = arith.constant 0 : index
    %c0_40 = arith.constant 0 : index
    %140 = vector.load %arg7[%c0_39, %c0_40] : memref<32x128xbf16, #tpu.memory_space<vmem>>, vector<32x128xbf16>
    %cst_41 = arith.constant dense<0.000000e+00> : vector<16x128xf32>
    %141 = tpu.matmul %139, %140, %cst_41 {dimension_numbers = #tpu.dot_dimension_numbers<[1], [0], [0], [1], [0, 0, 1, 1], [], []>} : vector<16x32xbf16>, vector<32x128xbf16>, vector<16x128xf32> -> vector<16x128xf32>
    %c0_42 = arith.constant 0 : index
    %c0_43 = arith.constant 0 : index
    %142 = vector.load %arg8[%c0_42, %c0_43] : memref<1x128xf32, #tpu.memory_space<vmem>>, vector<1x128xf32>
    %143 = vector.broadcast %142 : vector<1x128xf32> to vector<16x128xf32>
    %144 = arith.addf %141, %143 : vector<16x128xf32>
    %cst_44 = arith.constant 0.000000e+00 : f32
    %145 = vector.broadcast %cst_44 : f32 to vector<16x128xf32>
    %146 = arith.maximumf %144, %145 : vector<16x128xf32>
    %147 = arith.truncf %146 : vector<16x128xf32> to vector<16x128xbf16>
    %c0_45 = arith.constant 0 : index
    %c0_46 = arith.constant 0 : index
    %148 = vector.load %arg9[%c0_45, %c0_46] : memref<128x32xbf16, #tpu.memory_space<vmem>>, vector<128x32xbf16>
    %cst_47 = arith.constant dense<0.000000e+00> : vector<16x32xf32>
    %149 = tpu.matmul %147, %148, %cst_47 {dimension_numbers = #tpu.dot_dimension_numbers<[1], [0], [0], [1], [0, 0, 1, 1], [], []>} : vector<16x128xbf16>, vector<128x32xbf16>, vector<16x32xf32> -> vector<16x32xf32>
    %c0_48 = arith.constant 0 : index
    %c0_49 = arith.constant 0 : index
    %150 = vector.load %arg10[%c0_48, %c0_49] : memref<1x32xf32, #tpu.memory_space<vmem>>, vector<1x32xf32>
    %151 = vector.broadcast %150 : vector<1x32xf32> to vector<16x32xf32>
    %152 = arith.addf %149, %151 : vector<16x32xf32>
    %153 = arith.addf %152, %138 : vector<16x32xf32>
    %c0_50 = arith.constant 0 : index
    %c0_51 = arith.constant 0 : index
    %154 = vector.load %arg11[%c0_50, %c0_51] : memref<1x32xf32, #tpu.memory_space<vmem>>, vector<1x32xf32>
    %c0_52 = arith.constant 0 : index
    %c0_53 = arith.constant 0 : index
    %155 = vector.load %arg12[%c0_52, %c0_53] : memref<1x32xf32, #tpu.memory_space<vmem>>, vector<1x32xf32>
    %cst_54 = arith.constant dense<0.000000e+00> : vector<16xf32>
    %156 = vector.multi_reduction <add>, %153, %cst_54 [1] : vector<16x32xf32> to vector<16xf32>
    %157 = vector.shape_cast %156 : vector<16xf32> to vector<16x1xf32>
    %cst_55 = arith.constant 3.200000e+01 : f32
    %158 = vector.broadcast %cst_55 : f32 to vector<16x1xf32>
    %159 = arith.divf %157, %158 : vector<16x1xf32>
    %160 = vector.broadcast %159 : vector<16x1xf32> to vector<16x32xf32>
    %161 = arith.subf %153, %160 : vector<16x32xf32>
    %162 = arith.mulf %161, %161 : vector<16x32xf32>
    %cst_56 = arith.constant dense<0.000000e+00> : vector<16xf32>
    %163 = vector.multi_reduction <add>, %162, %cst_56 [1] : vector<16x32xf32> to vector<16xf32>
    %164 = vector.shape_cast %163 : vector<16xf32> to vector<16x1xf32>
    %cst_57 = arith.constant 3.200000e+01 : f32
    %165 = vector.broadcast %cst_57 : f32 to vector<16x1xf32>
    %166 = arith.divf %164, %165 : vector<16x1xf32>
    %167 = vector.broadcast %159 : vector<16x1xf32> to vector<16x32xf32>
    %168 = arith.subf %153, %167 : vector<16x32xf32>
    %cst_58 = arith.constant 9.99999974E-6 : f32
    %169 = vector.broadcast %cst_58 : f32 to vector<16x1xf32>
    %170 = arith.addf %166, %169 : vector<16x1xf32>
    %171 = math.rsqrt %170 : vector<16x1xf32>
    %172 = vector.broadcast %171 : vector<16x1xf32> to vector<16x32xf32>
    %173 = arith.mulf %168, %172 : vector<16x32xf32>
    %174 = vector.broadcast %154 : vector<1x32xf32> to vector<16x32xf32>
    %175 = arith.mulf %173, %174 : vector<16x32xf32>
    %176 = vector.broadcast %155 : vector<1x32xf32> to vector<16x32xf32>
    %177 = arith.addf %175, %176 : vector<16x32xf32>
    %178 = vector.shape_cast %177 : vector<16x32xf32> to vector<2x8x32xf32>
    %cst_59 = arith.constant dense<0xFF800000> : vector<2x32xf32>
    %179 = vector.multi_reduction <maximumf>, %178, %cst_59 [1] : vector<2x8x32xf32> to vector<2x32xf32>
    %180 = arith.truncf %179 : vector<2x32xf32> to vector<2x32xbf16>
    %c0_60 = arith.constant 0 : index
    %c0_61 = arith.constant 0 : index
    %181 = vector.load %arg13[%c0_60, %c0_61] : memref<32x256xbf16, #tpu.memory_space<vmem>>, vector<32x256xbf16>
    %cst_62 = arith.constant dense<0.000000e+00> : vector<2x256xf32>
    %182 = tpu.matmul %180, %181, %cst_62 {dimension_numbers = #tpu.dot_dimension_numbers<[1], [0], [0], [1], [0, 0, 1, 1], [], []>} : vector<2x32xbf16>, vector<32x256xbf16>, vector<2x256xf32> -> vector<2x256xf32>
    %c0_63 = arith.constant 0 : index
    %c0_64 = arith.constant 0 : index
    %183 = vector.load %arg14[%c0_63, %c0_64] : memref<1x256xf32, #tpu.memory_space<vmem>>, vector<1x256xf32>
    %184 = vector.broadcast %183 : vector<1x256xf32> to vector<2x256xf32>
    %185 = arith.addf %182, %184 : vector<2x256xf32>
    %cst_65 = arith.constant 0.000000e+00 : f32
    %186 = vector.broadcast %cst_65 : f32 to vector<2x256xf32>
    %187 = arith.maximumf %185, %186 : vector<2x256xf32>
    %188 = arith.truncf %187 : vector<2x256xf32> to vector<2x256xbf16>
    %c0_66 = arith.constant 0 : index
    %c0_67 = arith.constant 0 : index
    %189 = vector.load %arg15[%c0_66, %c0_67] : memref<256x128xbf16, #tpu.memory_space<vmem>>, vector<256x128xbf16>
    %cst_68 = arith.constant dense<0.000000e+00> : vector<2x128xf32>
    %190 = tpu.matmul %188, %189, %cst_68 {dimension_numbers = #tpu.dot_dimension_numbers<[1], [0], [0], [1], [0, 0, 1, 1], [], []>} : vector<2x256xbf16>, vector<256x128xbf16>, vector<2x128xf32> -> vector<2x128xf32>
    %c0_69 = arith.constant 0 : index
    %c0_70 = arith.constant 0 : index
    %191 = vector.load %arg16[%c0_69, %c0_70] : memref<1x128xf32, #tpu.memory_space<vmem>>, vector<1x128xf32>
    %192 = vector.broadcast %191 : vector<1x128xf32> to vector<2x128xf32>
    %193 = arith.addf %190, %192 : vector<2x128xf32>
    %cst_71 = arith.constant 0.000000e+00 : f32
    %194 = vector.broadcast %cst_71 : f32 to vector<2x128xf32>
    %195 = arith.maximumf %193, %194 : vector<2x128xf32>
    %196 = arith.truncf %195 : vector<2x128xf32> to vector<2x128xbf16>
    %c0_72 = arith.constant 0 : index
    %c0_73 = arith.constant 0 : index
    %197 = vector.load %arg17[%c0_72, %c0_73] : memref<128x128xbf16, #tpu.memory_space<vmem>>, vector<128x128xbf16>
    %cst_74 = arith.constant dense<0.000000e+00> : vector<2x128xf32>
    %198 = tpu.matmul %196, %197, %cst_74 {dimension_numbers = #tpu.dot_dimension_numbers<[1], [0], [0], [1], [0, 0, 1, 1], [], []>} : vector<2x128xbf16>, vector<128x128xbf16>, vector<2x128xf32> -> vector<2x128xf32>
    %c0_75 = arith.constant 0 : index
    %c0_76 = arith.constant 0 : index
    %199 = vector.load %arg18[%c0_75, %c0_76] : memref<1x128xf32, #tpu.memory_space<vmem>>, vector<1x128xf32>
    %200 = vector.broadcast %199 : vector<1x128xf32> to vector<2x128xf32>
    %201 = arith.addf %198, %200 : vector<2x128xf32>
    %c0_77 = arith.constant 0 : index
    %c0_78 = arith.constant 0 : index
    %202 = vector.load %arg19[%c0_77, %c0_78] : memref<2x128xf32, #tpu.memory_space<vmem>>, vector<2x128xf32>
    tpu.vector_store %arg19[%c0_77, %c0_78], %201 {strides = array<i32>} : memref<2x128xf32, #tpu.memory_space<vmem>>, vector<2x128xf32>,
    return
  }
  func.func @transform_0(%arg0: i32) -> (i32, i32) {
    %c0_i32 = arith.constant 0 : i32
    %c0_i32_0 = arith.constant 0 : i32
    return %arg0, %c0_i32 : i32, i32
  }
  func.func @transform_1(%arg0: i32) -> (i32, i32) {
    %c0_i32 = arith.constant 0 : i32
    %c0_i32_0 = arith.constant 0 : i32
    %c0_i32_1 = arith.constant 0 : i32
    return %c0_i32, %c0_i32_0 : i32, i32
  }
  func.func @transform_2(%arg0: i32) -> (i32, i32) {
    %c0_i32 = arith.constant 0 : i32
    %c0_i32_0 = arith.constant 0 : i32
    %c0_i32_1 = arith.constant 0 : i32
    return %c0_i32, %c0_i32_0 : i32, i32
  }
  func.func @transform_3(%arg0: i32) -> (i32, i32) {
    %c0_i32 = arith.constant 0 : i32
    %c0_i32_0 = arith.constant 0 : i32
    %c0_i32_1 = arith.constant 0 : i32
    return %c0_i32, %c0_i32_0 : i32, i32
  }
  func.func @transform_4(%arg0: i32) -> (i32, i32) {
    %c0_i32 = arith.constant 0 : i32
    %c0_i32_0 = arith.constant 0 : i32
    %c0_i32_1 = arith.constant 0 : i32
    return %c0_i32, %c0_i32_0 : i32, i32
  }
  func.func @transform_5(%arg0: i32) -> (i32, i32) {
    %c0_i32 = arith.constant 0 : i32
    %c0_i32_0 = arith.constant 0 : i32
    %c0_i32_1 = arith.constant 0 : i32
    return %c0_i32, %c0_i32_0 : i32, i32
  }
  func.func @transform_6(%arg0: i32) -> (i32, i32) {
    %c0_i32 = arith.constant 0 : i32
    %c0_i32_0 = arith.constant 0 : i32
    %c0_i32_1 = arith.constant 0 : i32
    return %c0_i32, %c0_i32_0 : i32, i32
  }
  func.func @transform_7(%arg0: i32) -> (i32, i32) {
    %c0_i32 = arith.constant 0 : i32
    %c0_i32_0 = arith.constant 0 : i32
    %c0_i32_1 = arith.constant 0 : i32
    return %c0_i32, %c0_i32_0 : i32, i32
  }
  func.func @transform_8(%arg0: i32) -> (i32, i32) {
    %c0_i32 = arith.constant 0 : i32
    %c0_i32_0 = arith.constant 0 : i32
    %c0_i32_1 = arith.constant 0 : i32
    return %c0_i32, %c0_i32_0 : i32, i32
  }
  func.func @transform_9(%arg0: i32) -> (i32, i32) {
    %c0_i32 = arith.constant 0 : i32
    %c0_i32_0 = arith.constant 0 : i32
    %c0_i32_1 = arith.constant 0 : i32
    return %c0_i32, %c0_i32_0 : i32, i32
  }
  func.func @transform_10(%arg0: i32) -> (i32, i32) {
    %c0_i32 = arith.constant 0 : i32
    %c0_i32_0 = arith.constant 0 : i32
    %c0_i32_1 = arith.constant 0 : i32
    return %c0_i32, %c0_i32_0 : i32, i32
  }
  func.func @transform_11(%arg0: i32) -> (i32, i32) {
    %c0_i32 = arith.constant 0 : i32
    %c0_i32_0 = arith.constant 0 : i32
    %c0_i32_1 = arith.constant 0 : i32
    return %c0_i32, %c0_i32_0 : i32, i32
  }
  func.func @transform_12(%arg0: i32) -> (i32, i32) {
    %c0_i32 = arith.constant 0 : i32
    %c0_i32_0 = arith.constant 0 : i32
    %c0_i32_1 = arith.constant 0 : i32
    return %c0_i32, %c0_i32_0 : i32, i32
  }
  func.func @transform_13(%arg0: i32) -> (i32, i32) {
    %c0_i32 = arith.constant 0 : i32
    %c0_i32_0 = arith.constant 0 : i32
    %c0_i32_1 = arith.constant 0 : i32
    return %c0_i32, %c0_i32_0 : i32, i32
  }
  func.func @transform_14(%arg0: i32) -> (i32, i32) {
    %c0_i32 = arith.constant 0 : i32
    %c0_i32_0 = arith.constant 0 : i32
    %c0_i32_1 = arith.constant 0 : i32
    return %c0_i32, %c0_i32_0 : i32, i32
  }
  func.func @transform_15(%arg0: i32) -> (i32, i32) {
    %c0_i32 = arith.constant 0 : i32
    %c0_i32_0 = arith.constant 0 : i32
    %c0_i32_1 = arith.constant 0 : i32
    return %c0_i32, %c0_i32_0 : i32, i32
  }
  func.func @transform_16(%arg0: i32) -> (i32, i32) {
    %c0_i32 = arith.constant 0 : i32
    %c0_i32_0 = arith.constant 0 : i32
    %c0_i32_1 = arith.constant 0 : i32
    return %c0_i32, %c0_i32_0 : i32, i32
  }
  func.func @transform_17(%arg0: i32) -> (i32, i32) {
    %c0_i32 = arith.constant 0 : i32
    %c0_i32_0 = arith.constant 0 : i32
    %c0_i32_1 = arith.constant 0 : i32
    return %c0_i32, %c0_i32_0 : i32, i32
  }
  func.func @transform_18(%arg0: i32) -> (i32, i32) {
    %c0_i32 = arith.constant 0 : i32
    %c0_i32_0 = arith.constant 0 : i32
    return %arg0, %c0_i32 : i32, i32
  }
}

module attributes {stable_mosaic.version = 11 : i64} {
  func.func @fused_kernel(%arg0: i32, %arg1: memref<16x32xf32, #tpu.memory_space<vmem>>, %arg2: memref<32x96xbf16, #tpu.memory_space<vmem>>, %arg3: memref<32x32xbf16, #tpu.memory_space<vmem>>, %arg4: memref<1x32xf32, #tpu.memory_space<vmem>>, %arg5: memref<1x32xf32, #tpu.memory_space<vmem>>, %arg6: memref<1x32xf32, #tpu.memory_space<vmem>>, %arg7: memref<32x128xbf16, #tpu.memory_space<vmem>>, %arg8: memref<1x128xf32, #tpu.memory_space<vmem>>, %arg9: memref<128x32xbf16, #tpu.memory_space<vmem>>, %arg10: memref<1x32xf32, #tpu.memory_space<vmem>>, %arg11: memref<1x32xf32, #tpu.memory_space<vmem>>, %arg12: memref<1x32xf32, #tpu.memory_space<vmem>>, %arg13: memref<32x256xbf16, #tpu.memory_space<vmem>>, %arg14: memref<1x256xf32, #tpu.memory_space<vmem>>, %arg15: memref<256x128xbf16, #tpu.memory_space<vmem>>, %arg16: memref<1x128xf32, #tpu.memory_space<vmem>>, %arg17: memref<128x128xbf16, #tpu.memory_space<vmem>>, %arg18: memref<1x128xf32, #tpu.memory_space<vmem>>, %arg19: memref<2x128xf32, #tpu.memory_space<vmem>>) attributes {dimension_semantics = [#tpu.dimension_semantics<parallel>], iteration_bounds = array<i64: 1>, scalar_prefetch = 0 : i64, scratch_operands = 0 : i64, tpu.core_type = #tpu.core_type<tc>, window_params = [{transform_indices = @transform_0, window_bounds = array<i64: 16, 32>}, {pipeline_mode = #tpu.pipeline_mode<synchronous>, transform_indices = @transform_1, window_bounds = array<i64: 32, 96>}, {pipeline_mode = #tpu.pipeline_mode<synchronous>, transform_indices = @transform_2, window_bounds = array<i64: 32, 32>}, {pipeline_mode = #tpu.pipeline_mode<synchronous>, transform_indices = @transform_3, window_bounds = array<i64: 1, 32>}, {pipeline_mode = #tpu.pipeline_mode<synchronous>, transform_indices = @transform_4, window_bounds = array<i64: 1, 32>}, {pipeline_mode = #tpu.pipeline_mode<synchronous>, transform_indices = @transform_5, window_bounds = array<i64: 1, 32>}, {pipeline_mode = #tpu.pipeline_mode<synchronous>, transform_indices = @transform_6, window_bounds = array<i64: 32, 128>}, {pipeline_mode = #tpu.pipeline_mode<synchronous>, transform_indices = @transform_7, window_bounds = array<i64: 1, 128>}, {pipeline_mode = #tpu.pipeline_mode<synchronous>, transform_indices = @transform_8, window_bounds = array<i64: 128, 32>}, {pipeline_mode = #tpu.pipeline_mode<synchronous>, transform_indices = @transform_9, window_bounds = array<i64: 1, 32>}, {pipeline_mode = #tpu.pipeline_mode<synchronous>, transform_indices = @transform_10, window_bounds = array<i64: 1, 32>}, {pipeline_mode = #tpu.pipeline_mode<synchronous>, transform_indices = @transform_11, window_bounds = array<i64: 1, 32>}, {pipeline_mode = #tpu.pipeline_mode<synchronous>, transform_indices = @transform_12, window_bounds = array<i64: 32, 256>}, {pipeline_mode = #tpu.pipeline_mode<synchronous>, transform_indices = @transform_13, window_bounds = array<i64: 1, 256>}, {pipeline_mode = #tpu.pipeline_mode<synchronous>, transform_indices = @transform_14, window_bounds = array<i64: 256, 128>}, {pipeline_mode = #tpu.pipeline_mode<synchronous>, transform_indices = @transform_15, window_bounds = array<i64: 1, 128>}, {pipeline_mode = #tpu.pipeline_mode<synchronous>, transform_indices = @transform_16, window_bounds = array<i64: 128, 128>}, {pipeline_mode = #tpu.pipeline_mode<synchronous>, transform_indices = @transform_17, window_bounds = array<i64: 1, 128>}, {transform_indices = @transform_18, window_bounds = array<i64: 2, 128>}]} {
    %c0 = arith.constant 0 : index
    %c0_0 = arith.constant 0 : index
    %0 = vector.load %arg1[%c0, %c0_0] : memref<16x32xf32, #tpu.memory_space<vmem>>, vector<16x32xf32>
    %1 = arith.truncf %0 : vector<16x32xf32> to vector<16x32xbf16>
    %c0_1 = arith.constant 0 : index
    %c0_2 = arith.constant 0 : index
    %2 = vector.load %arg2[%c0_1, %c0_2] : memref<32x96xbf16, #tpu.memory_space<vmem>>, vector<32x96xbf16>
    %cst = arith.constant dense<0.000000e+00> : vector<16x96xf32>
    %3 = tpu.matmul %1, %2, %cst {dimension_numbers = #tpu.dot_dimension_numbers<[1], [0], [0], [1], [0, 0, 1, 1], [], []>} : vector<16x32xbf16>, vector<32x96xbf16>, vector<16x96xf32> -> vector<16x96xf32>
    %4 = vector.extract_strided_slice %3 {offsets = [0, 0], sizes = [16, 8], strides = [1, 1]} : vector<16x96xf32> to vector<16x8xf32>
    %5 = vector.shape_cast %4 : vector<16x8xf32> to vector<2x8x8xf32>
    %6 = vector.extract_strided_slice %3 {offsets = [0, 32], sizes = [16, 8], strides = [1, 1]} : vector<16x96xf32> to vector<16x8xf32>
    %7 = vector.shape_cast %6 : vector<16x8xf32> to vector<2x8x8xf32>
    %8 = vector.extract_strided_slice %3 {offsets = [0, 64], sizes = [16, 8], strides = [1, 1]} : vector<16x96xf32> to vector<16x8xf32>
    %9 = vector.shape_cast %8 : vector<16x8xf32> to vector<2x8x8xf32>
    %10 = arith.truncf %5 : vector<2x8x8xf32> to vector<2x8x8xbf16>
    %11 = arith.truncf %7 : vector<2x8x8xf32> to vector<2x8x8xbf16>
    "tpu.trace_start"() <{level = 10 : i32, message = "bqd,bkd->bqk"}> : () -> ()
    %cst_3 = arith.constant dense<0.000000e+00> : vector<2x8x8xf32>
    %12 = tpu.matmul %10, %11, %cst_3 {dimension_numbers = #tpu.dot_dimension_numbers<[2], [2], [1], [1], [0, 0, 0, 1, 1, 1], [0], [0]>} : vector<2x8x8xbf16>, vector<2x8x8xbf16>, vector<2x8x8xf32> -> vector<2x8x8xf32>
    "tpu.trace_stop"() : () -> ()
    %cst_4 = arith.constant dense<0xFF800000> : vector<2x8xf32>
    %13 = vector.multi_reduction <maximumf>, %12, %cst_4 [2] : vector<2x8x8xf32> to vector<2x8xf32>
    %14 = vector.shape_cast %13 : vector<2x8xf32> to vector<2x8x1xf32>
    %15 = vector.broadcast %14 : vector<2x8x1xf32> to vector<2x8x8xf32>
    %16 = arith.subf %12, %15 : vector<2x8x8xf32>
    %17 = math.exp %16 : vector<2x8x8xf32>
    %cst_5 = arith.constant dense<0.000000e+00> : vector<2x8xf32>
    %18 = vector.multi_reduction <add>, %17, %cst_5 [2] : vector<2x8x8xf32> to vector<2x8xf32>
    %19 = vector.shape_cast %18 : vector<2x8xf32> to vector<2x8x1xf32>
    %20 = tpu.reciprocal %19 {approx = true} : vector<2x8x1xf32> -> vector<2x8x1xf32>
    %21 = vector.broadcast %20 : vector<2x8x1xf32> to vector<2x8x8xf32>
    %22 = arith.mulf %17, %21 : vector<2x8x8xf32>
    %23 = arith.truncf %22 : vector<2x8x8xf32> to vector<2x8x8xbf16>
    %24 = arith.truncf %9 : vector<2x8x8xf32> to vector<2x8x8xbf16>
    "tpu.trace_start"() <{level = 10 : i32, message = "bqk,bkd->bqd"}> : () -> ()
    %cst_6 = arith.constant dense<0.000000e+00> : vector<2x8x8xf32>
    %25 = tpu.matmul %23, %24, %cst_6 {dimension_numbers = #tpu.dot_dimension_numbers<[2], [1], [1], [2], [0, 0, 0, 1, 1, 2], [0], [0]>} : vector<2x8x8xbf16>, vector<2x8x8xbf16>, vector<2x8x8xf32> -> vector<2x8x8xf32>
    "tpu.trace_stop"() : () -> ()
    %26 = vector.shape_cast %25 : vector<2x8x8xf32> to vector<16x8xf32>
    %27 = arith.truncf %26 : vector<16x8xf32> to vector<16x8xbf16>
    %c0_7 = arith.constant 0 : index
    %c0_8 = arith.constant 0 : index
    %28 = vector.load %arg3[%c0_7, %c0_8] : memref<32x32xbf16, #tpu.memory_space<vmem>>, vector<8x32xbf16>
    %cst_9 = arith.constant dense<0.000000e+00> : vector<16x32xf32>
    %29 = tpu.matmul %27, %28, %cst_9 {dimension_numbers = #tpu.dot_dimension_numbers<[1], [0], [0], [1], [0, 0, 1, 1], [], []>} : vector<16x8xbf16>, vector<8x32xbf16>, vector<16x32xf32> -> vector<16x32xf32>
    %30 = vector.extract_strided_slice %3 {offsets = [0, 8], sizes = [16, 8], strides = [1, 1]} : vector<16x96xf32> to vector<16x8xf32>
    %31 = vector.shape_cast %30 : vector<16x8xf32> to vector<2x8x8xf32>
    %32 = vector.extract_strided_slice %3 {offsets = [0, 40], sizes = [16, 8], strides = [1, 1]} : vector<16x96xf32> to vector<16x8xf32>
    %33 = vector.shape_cast %32 : vector<16x8xf32> to vector<2x8x8xf32>
    %34 = vector.extract_strided_slice %3 {offsets = [0, 72], sizes = [16, 8], strides = [1, 1]} : vector<16x96xf32> to vector<16x8xf32>
    %35 = vector.shape_cast %34 : vector<16x8xf32> to vector<2x8x8xf32>
    %36 = arith.truncf %31 : vector<2x8x8xf32> to vector<2x8x8xbf16>
    %37 = arith.truncf %33 : vector<2x8x8xf32> to vector<2x8x8xbf16>
    "tpu.trace_start"() <{level = 10 : i32, message = "bqd,bkd->bqk"}> : () -> ()
    %cst_10 = arith.constant dense<0.000000e+00> : vector<2x8x8xf32>
    %38 = tpu.matmul %36, %37, %cst_10 {dimension_numbers = #tpu.dot_dimension_numbers<[2], [2], [1], [1], [0, 0, 0, 1, 1, 1], [0], [0]>} : vector<2x8x8xbf16>, vector<2x8x8xbf16>, vector<2x8x8xf32> -> vector<2x8x8xf32>
    "tpu.trace_stop"() : () -> ()
    %cst_11 = arith.constant dense<0xFF800000> : vector<2x8xf32>
    %39 = vector.multi_reduction <maximumf>, %38, %cst_11 [2] : vector<2x8x8xf32> to vector<2x8xf32>
    %40 = vector.shape_cast %39 : vector<2x8xf32> to vector<2x8x1xf32>
    %41 = vector.broadcast %40 : vector<2x8x1xf32> to vector<2x8x8xf32>
    %42 = arith.subf %38, %41 : vector<2x8x8xf32>
    %43 = math.exp %42 : vector<2x8x8xf32>
    %cst_12 = arith.constant dense<0.000000e+00> : vector<2x8xf32>
    %44 = vector.multi_reduction <add>, %43, %cst_12 [2] : vector<2x8x8xf32> to vector<2x8xf32>
    %45 = vector.shape_cast %44 : vector<2x8xf32> to vector<2x8x1xf32>
    %46 = tpu.reciprocal %45 {approx = true} : vector<2x8x1xf32> -> vector<2x8x1xf32>
    %47 = vector.broadcast %46 : vector<2x8x1xf32> to vector<2x8x8xf32>
    %48 = arith.mulf %43, %47 : vector<2x8x8xf32>
    %49 = arith.truncf %48 : vector<2x8x8xf32> to vector<2x8x8xbf16>
    %50 = arith.truncf %35 : vector<2x8x8xf32> to vector<2x8x8xbf16>
    "tpu.trace_start"() <{level = 10 : i32, message = "bqk,bkd->bqd"}> : () -> ()
    %cst_13 = arith.constant dense<0.000000e+00> : vector<2x8x8xf32>
    %51 = tpu.matmul %49, %50, %cst_13 {dimension_numbers = #tpu.dot_dimension_numbers<[2], [1], [1], [2], [0, 0, 0, 1, 1, 2], [0], [0]>} : vector<2x8x8xbf16>, vector<2x8x8xbf16>, vector<2x8x8xf32> -> vector<2x8x8xf32>
    "tpu.trace_stop"() : () -> ()
    %52 = vector.shape_cast %51 : vector<2x8x8xf32> to vector<16x8xf32>
    %53 = arith.truncf %52 : vector<16x8xf32> to vector<16x8xbf16>
    %c8 = arith.constant 8 : index
    %c0_14 = arith.constant 0 : index
    %54 = vector.load %arg3[%c8, %c0_14] : memref<32x32xbf16, #tpu.memory_space<vmem>>, vector<8x32xbf16>
    %cst_15 = arith.constant dense<0.000000e+00> : vector<16x32xf32>
    %55 = tpu.matmul %53, %54, %cst_15 {dimension_numbers = #tpu.dot_dimension_numbers<[1], [0], [0], [1], [0, 0, 1, 1], [], []>} : vector<16x8xbf16>, vector<8x32xbf16>, vector<16x32xf32> -> vector<16x32xf32>
    %56 = arith.addf %29, %55 : vector<16x32xf32>
    %57 = vector.extract_strided_slice %3 {offsets = [0, 16], sizes = [16, 8], strides = [1, 1]} : vector<16x96xf32> to vector<16x8xf32>
    %58 = vector.shape_cast %57 : vector<16x8xf32> to vector<2x8x8xf32>
    %59 = vector.extract_strided_slice %3 {offsets = [0, 48], sizes = [16, 8], strides = [1, 1]} : vector<16x96xf32> to vector<16x8xf32>
    %60 = vector.shape_cast %59 : vector<16x8xf32> to vector<2x8x8xf32>
    %61 = vector.extract_strided_slice %3 {offsets = [0, 80], sizes = [16, 8], strides = [1, 1]} : vector<16x96xf32> to vector<16x8xf32>
    %62 = vector.shape_cast %61 : vector<16x8xf32> to vector<2x8x8xf32>
    %63 = arith.truncf %58 : vector<2x8x8xf32> to vector<2x8x8xbf16>
    %64 = arith.truncf %60 : vector<2x8x8xf32> to vector<2x8x8xbf16>
    "tpu.trace_start"() <{level = 10 : i32, message = "bqd,bkd->bqk"}> : () -> ()
    %cst_16 = arith.constant dense<0.000000e+00> : vector<2x8x8xf32>
    %65 = tpu.matmul %63, %64, %cst_16 {dimension_numbers = #tpu.dot_dimension_numbers<[2], [2], [1], [1], [0, 0, 0, 1, 1, 1], [0], [0]>} : vector<2x8x8xbf16>, vector<2x8x8xbf16>, vector<2x8x8xf32> -> vector<2x8x8xf32>
    "tpu.trace_stop"() : () -> ()
    %cst_17 = arith.constant dense<0xFF800000> : vector<2x8xf32>
    %66 = vector.multi_reduction <maximumf>, %65, %cst_17 [2] : vector<2x8x8xf32> to vector<2x8xf32>
    %67 = vector.shape_cast %66 : vector<2x8xf32> to vector<2x8x1xf32>
    %68 = vector.broadcast %67 : vector<2x8x1xf32> to vector<2x8x8xf32>
    %69 = arith.subf %65, %68 : vector<2x8x8xf32>
    %70 = math.exp %69 : vector<2x8x8xf32>
    %cst_18 = arith.constant dense<0.000000e+00> : vector<2x8xf32>
    %71 = vector.multi_reduction <add>, %70, %cst_18 [2] : vector<2x8x8xf32> to vector<2x8xf32>
    %72 = vector.shape_cast %71 : vector<2x8xf32> to vector<2x8x1xf32>
    %73 = tpu.reciprocal %72 {approx = true} : vector<2x8x1xf32> -> vector<2x8x1xf32>
    %74 = vector.broadcast %73 : vector<2x8x1xf32> to vector<2x8x8xf32>
    %75 = arith.mulf %70, %74 : vector<2x8x8xf32>
    %76 = arith.truncf %75 : vector<2x8x8xf32> to vector<2x8x8xbf16>
    %77 = arith.truncf %62 : vector<2x8x8xf32> to vector<2x8x8xbf16>
    "tpu.trace_start"() <{level = 10 : i32, message = "bqk,bkd->bqd"}> : () -> ()
    %cst_19 = arith.constant dense<0.000000e+00> : vector<2x8x8xf32>
    %78 = tpu.matmul %76, %77, %cst_19 {dimension_numbers = #tpu.dot_dimension_numbers<[2], [1], [1], [2], [0, 0, 0, 1, 1, 2], [0], [0]>} : vector<2x8x8xbf16>, vector<2x8x8xbf16>, vector<2x8x8xf32> -> vector<2x8x8xf32>
    "tpu.trace_stop"() : () -> ()
    %79 = vector.shape_cast %78 : vector<2x8x8xf32> to vector<16x8xf32>
    %80 = arith.truncf %79 : vector<16x8xf32> to vector<16x8xbf16>
    %c16 = arith.constant 16 : index
    %c0_20 = arith.constant 0 : index
    %81 = vector.load %arg3[%c16, %c0_20] : memref<32x32xbf16, #tpu.memory_space<vmem>>, vector<8x32xbf16>
    %cst_21 = arith.constant dense<0.000000e+00> : vector<16x32xf32>
    %82 = tpu.matmul %80, %81, %cst_21 {dimension_numbers = #tpu.dot_dimension_numbers<[1], [0], [0], [1], [0, 0, 1, 1], [], []>} : vector<16x8xbf16>, vector<8x32xbf16>, vector<16x32xf32> -> vector<16x32xf32>
    %83 = arith.addf %56, %82 : vector<16x32xf32>
    %84 = vector.extract_strided_slice %3 {offsets = [0, 24], sizes = [16, 8], strides = [1, 1]} : vector<16x96xf32> to vector<16x8xf32>
    %85 = vector.shape_cast %84 : vector<16x8xf32> to vector<2x8x8xf32>
    %86 = vector.extract_strided_slice %3 {offsets = [0, 56], sizes = [16, 8], strides = [1, 1]} : vector<16x96xf32> to vector<16x8xf32>
    %87 = vector.shape_cast %86 : vector<16x8xf32> to vector<2x8x8xf32>
    %88 = vector.extract_strided_slice %3 {offsets = [0, 88], sizes = [16, 8], strides = [1, 1]} : vector<16x96xf32> to vector<16x8xf32>
    %89 = vector.shape_cast %88 : vector<16x8xf32> to vector<2x8x8xf32>
    %90 = arith.truncf %85 : vector<2x8x8xf32> to vector<2x8x8xbf16>
    %91 = arith.truncf %87 : vector<2x8x8xf32> to vector<2x8x8xbf16>
    "tpu.trace_start"() <{level = 10 : i32, message = "bqd,bkd->bqk"}> : () -> ()
    %cst_22 = arith.constant dense<0.000000e+00> : vector<2x8x8xf32>
    %92 = tpu.matmul %90, %91, %cst_22 {dimension_numbers = #tpu.dot_dimension_numbers<[2], [2], [1], [1], [0, 0, 0, 1, 1, 1], [0], [0]>} : vector<2x8x8xbf16>, vector<2x8x8xbf16>, vector<2x8x8xf32> -> vector<2x8x8xf32>
    "tpu.trace_stop"() : () -> ()
    %cst_23 = arith.constant dense<0xFF800000> : vector<2x8xf32>
    %93 = vector.multi_reduction <maximumf>, %92, %cst_23 [2] : vector<2x8x8xf32> to vector<2x8xf32>
    %94 = vector.shape_cast %93 : vector<2x8xf32> to vector<2x8x1xf32>
    %95 = vector.broadcast %94 : vector<2x8x1xf32> to vector<2x8x8xf32>
    %96 = arith.subf %92, %95 : vector<2x8x8xf32>
    %97 = math.exp %96 : vector<2x8x8xf32>
    %cst_24 = arith.constant dense<0.000000e+00> : vector<2x8xf32>
    %98 = vector.multi_reduction <add>, %97, %cst_24 [2] : vector<2x8x8xf32> to vector<2x8xf32>
    %99 = vector.shape_cast %98 : vector<2x8xf32> to vector<2x8x1xf32>
    %100 = tpu.reciprocal %99 {approx = true} : vector<2x8x1xf32> -> vector<2x8x1xf32>
    %101 = vector.broadcast %100 : vector<2x8x1xf32> to vector<2x8x8xf32>
    %102 = arith.mulf %97, %101 : vector<2x8x8xf32>
    %103 = arith.truncf %102 : vector<2x8x8xf32> to vector<2x8x8xbf16>
    %104 = arith.truncf %89 : vector<2x8x8xf32> to vector<2x8x8xbf16>
    "tpu.trace_start"() <{level = 10 : i32, message = "bqk,bkd->bqd"}> : () -> ()
    %cst_25 = arith.constant dense<0.000000e+00> : vector<2x8x8xf32>
    %105 = tpu.matmul %103, %104, %cst_25 {dimension_numbers = #tpu.dot_dimension_numbers<[2], [1], [1], [2], [0, 0, 0, 1, 1, 2], [0], [0]>} : vector<2x8x8xbf16>, vector<2x8x8xbf16>, vector<2x8x8xf32> -> vector<2x8x8xf32>
    "tpu.trace_stop"() : () -> ()
    %106 = vector.shape_cast %105 : vector<2x8x8xf32> to vector<16x8xf32>
    %107 = arith.truncf %106 : vector<16x8xf32> to vector<16x8xbf16>
    %c24 = arith.constant 24 : index
    %c0_26 = arith.constant 0 : index
    %108 = vector.load %arg3[%c24, %c0_26] : memref<32x32xbf16, #tpu.memory_space<vmem>>, vector<8x32xbf16>
    %cst_27 = arith.constant dense<0.000000e+00> : vector<16x32xf32>
    %109 = tpu.matmul %107, %108, %cst_27 {dimension_numbers = #tpu.dot_dimension_numbers<[1], [0], [0], [1], [0, 0, 1, 1], [], []>} : vector<16x8xbf16>, vector<8x32xbf16>, vector<16x32xf32> -> vector<16x32xf32>
    %110 = arith.addf %83, %109 : vector<16x32xf32>
    %c0_28 = arith.constant 0 : index
    %c0_29 = arith.constant 0 : index
    %111 = vector.load %arg4[%c0_28, %c0_29] : memref<1x32xf32, #tpu.memory_space<vmem>>, vector<1x32xf32>
    %112 = vector.broadcast %111 : vector<1x32xf32> to vector<16x32xf32>
    %113 = arith.addf %110, %112 : vector<16x32xf32>
    %114 = arith.addf %113, %0 : vector<16x32xf32>
    %c0_30 = arith.constant 0 : index
    %c0_31 = arith.constant 0 : index
    %115 = vector.load %arg5[%c0_30, %c0_31] : memref<1x32xf32, #tpu.memory_space<vmem>>, vector<1x32xf32>
    %c0_32 = arith.constant 0 : index
    %c0_33 = arith.constant 0 : index
    %116 = vector.load %arg6[%c0_32, %c0_33] : memref<1x32xf32, #tpu.memory_space<vmem>>, vector<1x32xf32>
    %cst_34 = arith.constant dense<0.000000e+00> : vector<16xf32>
    %117 = vector.multi_reduction <add>, %114, %cst_34 [1] : vector<16x32xf32> to vector<16xf32>
    %118 = vector.shape_cast %117 : vector<16xf32> to vector<16x1xf32>
    %cst_35 = arith.constant 3.200000e+01 : f32
    %119 = vector.broadcast %cst_35 : f32 to vector<16x1xf32>
    %120 = arith.divf %118, %119 : vector<16x1xf32>
    %121 = vector.broadcast %120 : vector<16x1xf32> to vector<16x32xf32>
    %122 = arith.subf %114, %121 : vector<16x32xf32>
    %123 = arith.mulf %122, %122 : vector<16x32xf32>
    %cst_36 = arith.constant dense<0.000000e+00> : vector<16xf32>
    %124 = vector.multi_reduction <add>, %123, %cst_36 [1] : vector<16x32xf32> to vector<16xf32>
    %125 = vector.shape_cast %124 : vector<16xf32> to vector<16x1xf32>
    %cst_37 = arith.constant 3.200000e+01 : f32
    %126 = vector.broadcast %cst_37 : f32 to vector<16x1xf32>
    %127 = arith.divf %125, %126 : vector<16x1xf32>
    %128 = vector.broadcast %120 : vector<16x1xf32> to vector<16x32xf32>
    %129 = arith.subf %114, %128 : vector<16x32xf32>
    %cst_38 = arith.constant 9.99999974E-6 : f32
    %130 = vector.broadcast %cst_38 : f32 to vector<16x1xf32>
    %131 = arith.addf %127, %130 : vector<16x1xf32>
    %132 = math.rsqrt %131 : vector<16x1xf32>
    %133 = vector.broadcast %132 : vector<16x1xf32> to vector<16x32xf32>
    %134 = arith.mulf %129, %133 : vector<16x32xf32>
    %135 = vector.broadcast %115 : vector<1x32xf32> to vector<16x32xf32>
    %136 = arith.mulf %134, %135 : vector<16x32xf32>
    %137 = vector.broadcast %116 : vector<1x32xf32> to vector<16x32xf32>
    %138 = arith.addf %136, %137 : vector<16x32xf32>
    %139 = arith.truncf %138 : vector<16x32xf32> to vector<16x32xbf16>
    %c0_39 = arith.constant 0 : index
    %c0_40 = arith.constant 0 : index
    %140 = vector.load %arg7[%c0_39, %c0_40] : memref<32x128xbf16, #tpu.memory_space<vmem>>, vector<32x128xbf16>
    %cst_41 = arith.constant dense<0.000000e+00> : vector<16x128xf32>
    %141 = tpu.matmul %139, %140, %cst_41 {dimension_numbers = #tpu.dot_dimension_numbers<[1], [0], [0], [1], [0, 0, 1, 1], [], []>} : vector<16x32xbf16>, vector<32x128xbf16>, vector<16x128xf32> -> vector<16x128xf32>
    %c0_42 = arith.constant 0 : index
    %c0_43 = arith.constant 0 : index
    %142 = vector.load %arg8[%c0_42, %c0_43] : memref<1x128xf32, #tpu.memory_space<vmem>>, vector<1x128xf32>
    %143 = vector.broadcast %142 : vector<1x128xf32> to vector<16x128xf32>
    %144 = arith.addf %141, %143 : vector<16x128xf32>
    %cst_44 = arith.constant 0.000000e+00 : f32
    %145 = vector.broadcast %cst_44 : f32 to vector<16x128xf32>
    %146 = arith.maximumf %144, %145 : vector<16x128xf32>
    %147 = arith.truncf %146 : vector<16x128xf32> to vector<16x128xbf16>
    %c0_45 = arith.constant 0 : index
    %c0_46 = arith.constant 0 : index
    %148 = vector.load %arg9[%c0_45, %c0_46] : memref<128x32xbf16, #tpu.memory_space<vmem>>, vector<128x32xbf16>
    %cst_47 = arith.constant dense<0.000000e+00> : vector<16x32xf32>
    %149 = tpu.matmul %147, %148, %cst_47 {dimension_numbers = #tpu.dot_dimension_numbers<[1], [0], [0], [1], [0, 0, 1, 1], [], []>} : vector<16x128xbf16>, vector<128x32xbf16>, vector<16x32xf32> -> vector<16x32xf32>
    %c0_48 = arith.constant 0 : index
    %c0_49 = arith.constant 0 : index
    %150 = vector.load %arg10[%c0_48, %c0_49] : memref<1x32xf32, #tpu.memory_space<vmem>>, vector<1x32xf32>
    %151 = vector.broadcast %150 : vector<1x32xf32> to vector<16x32xf32>
    %152 = arith.addf %149, %151 : vector<16x32xf32>
    %153 = arith.addf %152, %138 : vector<16x32xf32>
    %c0_50 = arith.constant 0 : index
    %c0_51 = arith.constant 0 : index
    %154 = vector.load %arg11[%c0_50, %c0_51] : memref<1x32xf32, #tpu.memory_space<vmem>>, vector<1x32xf32>
    %c0_52 = arith.constant 0 : index
    %c0_53 = arith.constant 0 : index
    %155 = vector.load %arg12[%c0_52, %c0_53] : memref<1x32xf32, #tpu.memory_space<vmem>>, vector<1x32xf32>
    %cst_54 = arith.constant dense<0.000000e+00> : vector<16xf32>
    %156 = vector.multi_reduction <add>, %153, %cst_54 [1] : vector<16x32xf32> to vector<16xf32>
    %157 = vector.shape_cast %156 : vector<16xf32> to vector<16x1xf32>
    %cst_55 = arith.constant 3.200000e+01 : f32
    %158 = vector.broadcast %cst_55 : f32 to vector<16x1xf32>
    %159 = arith.divf %157, %158 : vector<16x1xf32>
    %160 = vector.broadcast %159 : vector<16x1xf32> to vector<16x32xf32>
    %161 = arith.subf %153, %160 : vector<16x32xf32>
    %162 = arith.mulf %161, %161 : vector<16x32xf32>
    %cst_56 = arith.constant dense<0.000000e+00> : vector<16xf32>
    %163 = vector.multi_reduction <add>, %162, %cst_56 [1] : vector<16x32xf32> to vector<16xf32>
    %164 = vector.shape_cast %163 : vector<16xf32> to vector<16x1xf32>
    %cst_57 = arith.constant 3.200000e+01 : f32
    %165 = vector.broadcast %cst_57 : f32 to vector<16x1xf32>
    %166 = arith.divf %164, %165 : vector<16x1xf32>
    %167 = vector.broadcast %159 : vector<16x1xf32> to vector<16x32xf32>
    %168 = arith.subf %153, %167 : vector<16x32xf32>
    %cst_58 = arith.constant 9.99999974E-6 : f32
    %169 = vector.broadcast %cst_58 : f32 to vector<16x1xf32>
    %170 = arith.addf %166, %169 : vector<16x1xf32>
    %171 = math.rsqrt %170 : vector<16x1xf32>
    %172 = vector.broadcast %171 : vector<16x1xf32> to vector<16x32xf32>
    %173 = arith.mulf %168, %172 : vector<16x32xf32>
    %174 = vector.broadcast %154 : vector<1x32xf32> to vector<16x32xf32>
    %175 = arith.mulf %173, %174 : vector<16x32xf32>
    %176 = vector.broadcast %155 : vector<1x32xf32> to vector<16x32xf32>
    %177 = arith.addf %175, %176 : vector<16x32xf32>
    %178 = vector.shape_cast %177 : vector<16x32xf32> to vector<2x8x32xf32>
    %cst_59 = arith.constant dense<0xFF800000> : vector<2x32xf32>
    %179 = vector.multi_reduction <maximumf>, %178, %cst_59 [1] : vector<2x8x32xf32> to vector<2x32xf32>
    %180 = arith.truncf %179 : vector<2x32xf32> to vector<2x32xbf16>
    %c0_60 = arith.constant 0 : index
    %c0_61 = arith.constant 0 : index
    %181 = vector.load %arg13[%c0_60, %c0_61] : memref<32x256xbf16, #tpu.memory_space<vmem>>, vector<32x256xbf16>
    %cst_62 = arith.constant dense<0.000000e+00> : vector<2x256xf32>
    %182 = tpu.matmul %180, %181, %cst_62 {dimension_numbers = #tpu.dot_dimension_numbers<[1], [0], [0], [1], [0, 0, 1, 1], [], []>} : vector<2x32xbf16>, vector<32x256xbf16>, vector<2x256xf32> -> vector<2x256xf32>
    %c0_63 = arith.constant 0 : index
    %c0_64 = arith.constant 0 : index
    %183 = vector.load %arg14[%c0_63, %c0_64] : memref<1x256xf32, #tpu.memory_space<vmem>>, vector<1x256xf32>
    %184 = vector.broadcast %183 : vector<1x256xf32> to vector<2x256xf32>
    %185 = arith.addf %182, %184 : vector<2x256xf32>
    %cst_65 = arith.constant 0.000000e+00 : f32
    %186 = vector.broadcast %cst_65 : f32 to vector<2x256xf32>
    %187 = arith.maximumf %185, %186 : vector<2x256xf32>
    %188 = arith.truncf %187 : vector<2x256xf32> to vector<2x256xbf16>
    %c0_66 = arith.constant 0 : index
    %c0_67 = arith.constant 0 : index
    %189 = vector.load %arg15[%c0_66, %c0_67] : memref<256x128xbf16, #tpu.memory_space<vmem>>, vector<256x128xbf16>
    %cst_68 = arith.constant dense<0.000000e+00> : vector<2x128xf32>
    %190 = tpu.matmul %188, %189, %cst_68 {dimension_numbers = #tpu.dot_dimension_numbers<[1], [0], [0], [1], [0, 0, 1, 1], [], []>} : vector<2x256xbf16>, vector<256x128xbf16>, vector<2x128xf32> -> vector<2x128xf32>
    %c0_69 = arith.constant 0 : index
    %c0_70 = arith.constant 0 : index
    %191 = vector.load %arg16[%c0_69, %c0_70] : memref<1x128xf32, #tpu.memory_space<vmem>>, vector<1x128xf32>
    %192 = vector.broadcast %191 : vector<1x128xf32> to vector<2x128xf32>
    %193 = arith.addf %190, %192 : vector<2x128xf32>
    %cst_71 = arith.constant 0.000000e+00 : f32
    %194 = vector.broadcast %cst_71 : f32 to vector<2x128xf32>
    %195 = arith.maximumf %193, %194 : vector<2x128xf32>
    %196 = arith.truncf %195 : vector<2x128xf32> to vector<2x128xbf16>
    %c0_72 = arith.constant 0 : index
    %c0_73 = arith.constant 0 : index
    %197 = vector.load %arg17[%c0_72, %c0_73] : memref<128x128xbf16, #tpu.memory_space<vmem>>, vector<128x128xbf16>
    %cst_74 = arith.constant dense<0.000000e+00> : vector<2x128xf32>
    %198 = tpu.matmul %196, %197, %cst_74 {dimension_numbers = #tpu.dot_dimension_numbers<[1], [0], [0], [1], [0, 0, 1, 1], [], []>} : vector<2x128xbf16>, vector<128x128xbf16>, vector<2x128xf32> -> vector<2x128xf32>
    %c0_75 = arith.constant 0 : index
    %c0_76 = arith.constant 0 : index
    %199 = vector.load %arg18[%c0_75, %c0_76] : memref<1x128xf32, #tpu.memory_space<vmem>>, vector<1x128xf32>
    %200 = vector.broadcast %199 : vector<1x128xf32> to vector<2x128xf32>
    %201 = arith.addf %198, %200 : vector<2x128xf32>
    %c0_77 = arith.constant 0 : index
    %c0_78 = arith.constant 0 : index
    %202 = vector.load %arg19[%c0_77, %c0_78] : memref<2x128xf32, #tpu.memory_space<vmem>>, vector<2x128xf32>
    tpu.vector_store %arg19[%c0_77, %c0_78], %201 {strides = array<i32>} : memref<2x128xf32, #tpu.memory_space<vmem>>, vector<2x128xf32>,
    return
  }
  func.func @transform_0(%arg0: i32) -> (i32, i32) {
    %c0_i32 = arith.constant 0 : i32
    %c0_i32_0 = arith.constant 0 : i32
    return %arg0, %c0_i32 : i32, i32
  }
  func.func @transform_1(%arg0: i32) -> (i32, i32) {
    %c0_i32 = arith.constant 0 : i32
    %c0_i32_0 = arith.constant 0 : i32
    %c0_i32_1 = arith.constant 0 : i32
    return %c0_i32, %c0_i32_0 : i32, i32
  }
  func.func @transform_2(%arg0: i32) -> (i32, i32) {
    %c0_i32 = arith.constant 0 : i32
    %c0_i32_0 = arith.constant 0 : i32
    %c0_i32_1 = arith.constant 0 : i32
    return %c0_i32, %c0_i32_0 : i32, i32
  }
  func.func @transform_3(%arg0: i32) -> (i32, i32) {
    %c0_i32 = arith.constant 0 : i32
    %c0_i32_0 = arith.constant 0 : i32
    %c0_i32_1 = arith.constant 0 : i32
    return %c0_i32, %c0_i32_0 : i32, i32
  }
  func.func @transform_4(%arg0: i32) -> (i32, i32) {
    %c0_i32 = arith.constant 0 : i32
    %c0_i32_0 = arith.constant 0 : i32
    %c0_i32_1 = arith.constant 0 : i32
    return %c0_i32, %c0_i32_0 : i32, i32
  }
  func.func @transform_5(%arg0: i32) -> (i32, i32) {
    %c0_i32 = arith.constant 0 : i32
    %c0_i32_0 = arith.constant 0 : i32
    %c0_i32_1 = arith.constant 0 : i32
    return %c0_i32, %c0_i32_0 : i32, i32
  }
  func.func @transform_6(%arg0: i32) -> (i32, i32) {
    %c0_i32 = arith.constant 0 : i32
    %c0_i32_0 = arith.constant 0 : i32
    %c0_i32_1 = arith.constant 0 : i32
    return %c0_i32, %c0_i32_0 : i32, i32
  }
  func.func @transform_7(%arg0: i32) -> (i32, i32) {
    %c0_i32 = arith.constant 0 : i32
    %c0_i32_0 = arith.constant 0 : i32
    %c0_i32_1 = arith.constant 0 : i32
    return %c0_i32, %c0_i32_0 : i32, i32
  }
  func.func @transform_8(%arg0: i32) -> (i32, i32) {
    %c0_i32 = arith.constant 0 : i32
    %c0_i32_0 = arith.constant 0 : i32
    %c0_i32_1 = arith.constant 0 : i32
    return %c0_i32, %c0_i32_0 : i32, i32
  }
  func.func @transform_9(%arg0: i32) -> (i32, i32) {
    %c0_i32 = arith.constant 0 : i32
    %c0_i32_0 = arith.constant 0 : i32
    %c0_i32_1 = arith.constant 0 : i32
    return %c0_i32, %c0_i32_0 : i32, i32
  }
  func.func @transform_10(%arg0: i32) -> (i32, i32) {
    %c0_i32 = arith.constant 0 : i32
    %c0_i32_0 = arith.constant 0 : i32
    %c0_i32_1 = arith.constant 0 : i32
    return %c0_i32, %c0_i32_0 : i32, i32
  }
  func.func @transform_11(%arg0: i32) -> (i32, i32) {
    %c0_i32 = arith.constant 0 : i32
    %c0_i32_0 = arith.constant 0 : i32
    %c0_i32_1 = arith.constant 0 : i32
    return %c0_i32, %c0_i32_0 : i32, i32
  }
  func.func @transform_12(%arg0: i32) -> (i32, i32) {
    %c0_i32 = arith.constant 0 : i32
    %c0_i32_0 = arith.constant 0 : i32
    %c0_i32_1 = arith.constant 0 : i32
    return %c0_i32, %c0_i32_0 : i32, i32
  }
  func.func @transform_13(%arg0: i32) -> (i32, i32) {
    %c0_i32 = arith.constant 0 : i32
    %c0_i32_0 = arith.constant 0 : i32
    %c0_i32_1 = arith.constant 0 : i32
    return %c0_i32, %c0_i32_0 : i32, i32
  }
  func.func @transform_14(%arg0: i32) -> (i32, i32) {
    %c0_i32 = arith.constant 0 : i32
    %c0_i32_0 = arith.constant 0 : i32
    %c0_i32_1 = arith.constant 0 : i32
    return %c0_i32, %c0_i32_0 : i32, i32
  }
  func.func @transform_15(%arg0: i32) -> (i32, i32) {
    %c0_i32 = arith.constant 0 : i32
    %c0_i32_0 = arith.constant 0 : i32
    %c0_i32_1 = arith.constant 0 : i32
    return %c0_i32, %c0_i32_0 : i32, i32
  }
  func.func @transform_16(%arg0: i32) -> (i32, i32) {
    %c0_i32 = arith.constant 0 : i32
    %c0_i32_0 = arith.constant 0 : i32
    %c0_i32_1 = arith.constant 0 : i32
    return %c0_i32, %c0_i32_0 : i32, i32
  }
  func.func @transform_17(%arg0: i32) -> (i32, i32) {
    %c0_i32 = arith.constant 0 : i32
    %c0_i32_0 = arith.constant 0 : i32
    %c0_i32_1 = arith.constant 0 : i32
    return %c0_i32, %c0_i32_0 : i32, i32
  }
  func.func @transform_18(%arg0: i32) -> (i32, i32) {
    %c0_i32 = arith.constant 0 : i32
    %c0_i32_0 = arith.constant 0 : i32
    return %arg0, %c0_i32 : i32, i32
  }
}

</mosaic_0001>

<bundles_post_ra>
// kernel: tpu_custom_call.1
= control target key start
LH: loop header
LB: loop body
LE: loop exit
PB: predicated region body
PF: predicated region fallthrough
CT: control target
= control target key end

     0   :  { %s3313_s0 = inlined_call_operand.hbm [shape: f32[16,32], index: 0, kind: input, shape index: {}]   ;;  %s3314_s1 = inlined_call_operand.hbm [shape: bf16[32,96], index: 1, kind: input, shape index: {}]   ;;  %s3315_s2 = inlined_call_operand.hbm [shape: bf16[32,32], index: 2, kind: input, shape index: {}]   ;;  %s3316_s3 = inlined_call_operand.vmem [shape: f32[1,32], index: 3, kind: input, shape index: {}]   ;;  %s3317_s4 = inlined_call_operand.vmem [shape: f32[1,32], index: 4, kind: input, shape index: {}]   ;;  %s3318_s5 = inlined_call_operand.vmem [shape: f32[1,32], index: 5, kind: input, shape index: {}]   ;;  %s3319_s6 = inlined_call_operand.hbm [shape: bf16[32,128], index: 6, kind: input, shape index: {}]   ;;  %s3320_s7 = inlined_call_operand.hbm [shape: f32[1,128], index: 7, kind: input, shape index: {}]   ;;  %s3321_s8 = inlined_call_operand.vmem [shape: bf16[128,32], index: 8, kind: input, shape index: {}]   ;;  %s3322_s9 = inlined_call_operand.hbm [shape: f32[1,32], index: 9, kind: input, shape index: {}]   ;;  %s3323_s10 = inlined_call_operand.hbm [shape: f32[1,32], index: 10, kind: input, shape index: {}]   ;;  %s3324_s11 = inlined_call_operand.hbm [shape: f32[1,32], index: 11, kind: input, shape index: {}]   ;;  %s3325_s12 = inlined_call_operand.hbm [shape: bf16[32,256], index: 12, kind: input, shape index: {}]   ;;  %s3326_s13 = inlined_call_operand.vmem [shape: f32[1,256], index: 13, kind: input, shape index: {}]   ;;  %s3327_s14 = inlined_call_operand.vmem [shape: bf16[256,128], index: 14, kind: input, shape index: {}]   ;;  %s3328_s15 = inlined_call_operand.vmem [shape: f32[1,128], index: 15, kind: input, shape index: {}]   ;;  %s3329_s16 = inlined_call_operand.hbm [shape: bf16[128,128], index: 16, kind: input, shape index: {}]   ;;  %s3330_s17 = inlined_call_operand.vmem [shape: f32[1,128], index: 17, kind: input, shape index: {}]   ;;  %s3331_s18 = inlined_call_operand.hbm [shape: f32[2,128], index: 18, kind: output, shape index: {}]  }
   0x1   :  { %3336 = sst [smem:[#allocation27_spill]] %s3313_s0 }
   0x2   :  { %3337 = sst [smem:[#allocation28_spill]] %s3314_s1 }
   0x3   :  { %3338 = sst [smem:[#allocation29_spill]] %s3315_s2 }
   0x4   :  { %3339 = sst [smem:[#allocation30_spill]] %s3330_s17 }
   0x5   :  { %3340 = sst [smem:[#allocation31_spill]] %s3331_s18 }
   0x6   :  { %23 = vsyncpa [#allocation3], 0 }
   0x7   :  { %24 = vsyncpa [#allocation6], 0 }
   0x8   :  { %25 = vsyncpa [#allocation9], 0 }
   0x9   :  { %26 = vsyncpa [#allocation12], 0 }
   0xa   :  { %27 = vsyncpa [#allocation15], 0 }
   0xb   :  { %28 = vsyncpa [#allocation18], 0 }
   0xc   :  { %29 = vsyncpa [#allocation4], 0  ;;  %s2736_s27 = smov [#allocation5]   ;;  %s3341_s0 = sld [smem:[#allocation28_spill]] }
   0xd   :  { %s47_s28 = sshll.u32 %s2736_s27, 4  ;;  %s48_s28 = int_to_ptr.vmem [resolvable:$true] %s47_s28 }
  0x12   :  { %s2480_s19 = scalar_lea.hbm %s3341_s0, 256 }
  0x13   :  { %p2481_p0 = scmp.ne.s32.totalorder %s3341_s0, %s2480_s19  ;;  %p2484_p1 = scmp.lt.u32.totalorder %s2480_s19, %s3341_s0 }
  0x15   :  { %p2486_p2 = pnand %p2484_p1, %p2481_p0 }
  0x17   :  { %2489 = shalt.err (!%p2486_p2)
}
  0x18   :  { %s2490_s2 = scalar_lea.vmem %s48_s28, 256  ;;  %p2495_p4 = scmp.lt.s32.totalorder %s48_s28, %s48_s28 }
  0x19   :  { %p2491_p3 = scmp.ne.s32.totalorder %s48_s28, %s2490_s2  ;;  %p2496_p5 = scmp.lt.s32.totalorder %s2490_s2, %s2490_s2 }
  0x1b   :  { %p2497_p6 = por %p2496_p5, %p2495_p4 }
  0x1d   :  { %p2498_p7 = pnand %p2497_p6, %p2491_p3 }
  0x1f   :  { %2501 = shalt.err (!%p2498_p7)
}
  0x20   :  { %s2737_s23 = smov 64   ;;  %s2738_s24 = smov 4  }
  0x21   :  { %53 = dma.hbm_to_vmem [thread:$0]  %s3341_s0, 256, %s48_s28, [#allocation6], %s2737_s23, %s2737_s23, %s2738_s24  }
  0x22   :  { %s2739_s27 = smov [#allocation8]   ;;  %s2740_s30 = smov [#allocation11]  }
  0x23   :  { %s77_s29 = sshll.u32 %s2739_s27, 4  ;;  %s102_s19 = sshll.u32 %s2740_s30, 4  ;;  %s78_s29 = int_to_ptr.vmem [resolvable:$true] %s77_s29  ;;  %s103_s19 = int_to_ptr.vmem [resolvable:$true] %s102_s19 }
  0x24   :  { %s2502_s21 = scalar_lea.hbm %s3319_s6, 256 }
  0x25   :  { %p2503_p8 = scmp.ne.s32.totalorder %s3319_s6, %s2502_s21  ;;  %p2506_p9 = scmp.lt.u32.totalorder %s2502_s21, %s3319_s6 }
  0x27   :  { %p2508_p10 = pnand %p2506_p9, %p2503_p8 }
  0x29   :  { %2511 = shalt.err (!%p2508_p10)
}
  0x2a   :  { %s2512_s28 = scalar_lea.vmem %s78_s29, 256  ;;  %p2517_p12 = scmp.lt.s32.totalorder %s78_s29, %s78_s29 }
  0x2b   :  { %p2513_p11 = scmp.ne.s32.totalorder %s78_s29, %s2512_s28  ;;  %p2518_p13 = scmp.lt.s32.totalorder %s2512_s28, %s2512_s28 }
  0x2d   :  { %p2519_p0 = por %p2518_p13, %p2517_p12 }
  0x2f   :  { %p2520_p1 = pnand %p2519_p0, %p2513_p11 }
  0x31   :  { %2523 = shalt.err (!%p2520_p1)
}
  0x32   :  { %83 = dma.hbm_to_vmem [thread:$0]  %s3319_s6, 256, %s78_s29, [#allocation9], %s2737_s23, %s2737_s23, %s2738_s24  }
  0x33   :  { %s2524_s18 = scalar_lea.hbm %s3322_s9, 16 }
  0x34   :  { %p2525_p2 = scmp.ne.s32.totalorder %s3322_s9, %s2524_s18  ;;  %p2528_p3 = scmp.lt.u32.totalorder %s2524_s18, %s3322_s9 }
  0x36   :  { %p2530_p4 = pnand %p2528_p3, %p2525_p2 }
  0x38   :  { %2533 = shalt.err (!%p2530_p4)
}
  0x39   :  { %s2534_s21 = scalar_lea.vmem %s103_s19, 16  ;;  %s2538_s22 = scalar_lea.vmem %s103_s19, 32 }
  0x3a   :  { %p2535_p5 = scmp.ne.s32.totalorder %s103_s19, %s2534_s21  ;;  %p2539_p6 = scmp.lt.s32.totalorder %s103_s19, %s103_s19 }
  0x3b   :  { %p2540_p7 = scmp.lt.s32.totalorder %s2538_s22, %s2534_s21 }
  0x3d   :  { %p2541_p8 = por %p2540_p7, %p2539_p6 }
  0x3f   :  { %p2542_p9 = pnand %p2541_p8, %p2535_p5 }
  0x41   :  { %2545 = shalt.err (!%p2542_p9)
}
  0x42   :  { %105 = dma.hbm_to_vmem [thread:$0]  %s3322_s9, 16, %s103_s19, [#allocation12]  }
  0x43   :  { %s2741_s2 = smov [#allocation14]   ;;  %s2742_s0 = smov [#allocation2]  }
  0x44   :  { %s122_s28 = sshll.u32 %s2741_s2, 4  ;;  %s35_s25 = sshll.u32 %s2742_s0, 4  ;;  %s123_s28 = int_to_ptr.vmem [resolvable:$true] %s122_s28  ;;  %s36_s25 = int_to_ptr.vmem [resolvable:$true] %s35_s25 }
  0x45   :  { %s2546_s18 = scalar_lea.hbm %s3324_s11, 16 }
  0x46   :  { %p2547_p10 = scmp.ne.s32.totalorder %s3324_s11, %s2546_s18  ;;  %p2550_p11 = scmp.lt.u32.totalorder %s2546_s18, %s3324_s11 }
  0x48   :  { %p2552_p12 = pnand %p2550_p11, %p2547_p10 }
  0x4a   :  { %2555 = shalt.err (!%p2552_p12)
}
  0x4b   :  { %s2556_s9 = scalar_lea.vmem %s123_s28, 16  ;;  %s2560_s19 = scalar_lea.vmem %s123_s28, 32 }
  0x4c   :  { %p2557_p13 = scmp.ne.s32.totalorder %s123_s28, %s2556_s9  ;;  %p2561_p0 = scmp.lt.s32.totalorder %s123_s28, %s123_s28 }
  0x4d   :  { %p2562_p1 = scmp.lt.s32.totalorder %s2560_s19, %s2556_s9 }
  0x4f   :  { %p2563_p2 = por %p2562_p1, %p2561_p0 }
  0x51   :  { %p2564_p3 = pnand %p2563_p2, %p2557_p13 }
  0x53   :  { %2567 = shalt.err (!%p2564_p3)
}
  0x54   :  { %125 = dma.hbm_to_vmem [thread:$0]  %s3324_s11, 16, %s123_s28, [#allocation15]  }
  0x55   :  { %s3342_s2 = sld [smem:[#allocation27_spill]] }
  0x5b   :  { %s2568_s0 = scalar_lea.hbm %s3342_s2, 256 }
  0x5c   :  { %p2569_p4 = scmp.ne.s32.totalorder %s3342_s2, %s2568_s0  ;;  %p2572_p5 = scmp.lt.u32.totalorder %s2568_s0, %s3342_s2 }
  0x5e   :  { %p2574_p6 = pnand %p2572_p5, %p2569_p4 }
  0x60   :  { %2577 = shalt.err (!%p2574_p6)
}
  0x61   :  { %s2578_s30 = scalar_lea.vmem %s36_s25, 256  ;;  %p2583_p8 = scmp.lt.s32.totalorder %s36_s25, %s36_s25 }
  0x62   :  { %p2579_p7 = scmp.ne.s32.totalorder %s36_s25, %s2578_s30  ;;  %p2584_p9 = scmp.lt.s32.totalorder %s2578_s30, %s2578_s30 }
  0x64   :  { %p2585_p10 = por %p2584_p9, %p2583_p8 }
  0x66   :  { %p2586_p11 = pnand %p2585_p10, %p2579_p7 }
  0x68   :  { %2589 = shalt.err (!%p2586_p11)
}
  0x69   :  { %s2743_s11 = smov 128   ;;  %s2744_s28 = smov 8  }
  0x6a   :  { %41 = dma.hbm_to_vmem [thread:$0]  %s3342_s2, 256, %s36_s25, [#allocation3], %s2743_s11, %s2743_s11, %s2744_s28  }
  0x6b   :  { %s2745_s9 = smov [#allocation7]   ;;  %s2746_s21 = smov [#allocation10]  }
  0x6c   :  { %s59_s19 = sshll.u32 %s2745_s9, 4  ;;  %s90_s22 = sshll.u32 %s2746_s21, 4  ;;  %s60_s19 = int_to_ptr.vmem [resolvable:$true] %s59_s19  ;;  %s91_s22 = int_to_ptr.vmem [resolvable:$true] %s90_s22 }
  0x6d   :  { %s3343_s0 = sld [smem:[#allocation29_spill]] }
  0x73   :  { %s2590_s26 = scalar_lea.hbm %s3343_s0, 256 }
  0x74   :  { %p2591_p12 = scmp.ne.s32.totalorder %s3343_s0, %s2590_s26  ;;  %p2594_p13 = scmp.lt.u32.totalorder %s2590_s26, %s3343_s0 }
  0x76   :  { %p2596_p0 = pnand %p2594_p13, %p2591_p12 }
  0x78   :  { %2599 = shalt.err (!%p2596_p0)
}
  0x79   :  { %s2600_s25 = scalar_lea.vmem %s60_s19, 256  ;;  %p2605_p2 = scmp.lt.s32.totalorder %s60_s19, %s60_s19 }
  0x7a   :  { %p2601_p1 = scmp.ne.s32.totalorder %s60_s19, %s2600_s25  ;;  %p2606_p3 = scmp.lt.s32.totalorder %s2600_s25, %s2600_s25 }
  0x7c   :  { %p2607_p4 = por %p2606_p3, %p2605_p2 }
  0x7e   :  { %p2608_p5 = pnand %p2607_p4, %p2601_p1 }
  0x80   :  { %2611 = shalt.err (!%p2608_p5)
}
  0x81   :  { %65 = dma.hbm_to_vmem [thread:$0]  %s3343_s0, 256, %s60_s19, [#allocation6], %s2737_s23, %s2737_s23, %s2738_s24  }
  0x82   :  { %s2612_s21 = scalar_lea.hbm %s3320_s7, 16 }
  0x83   :  { %p2613_p6 = scmp.ne.s32.totalorder %s3320_s7, %s2612_s21  ;;  %p2616_p7 = scmp.lt.u32.totalorder %s2612_s21, %s3320_s7 }
  0x85   :  { %p2618_p8 = pnand %p2616_p7, %p2613_p6 }
  0x87   :  { %2621 = shalt.err (!%p2618_p8)
}
  0x88   :  { %s2622_s18 = scalar_lea.vmem %s91_s22, 16  ;;  %s2626_s27 = scalar_lea.vmem %s91_s22, 32 }
  0x89   :  { %p2623_p9 = scmp.ne.s32.totalorder %s91_s22, %s2622_s18  ;;  %p2627_p10 = scmp.lt.s32.totalorder %s91_s22, %s91_s22 }
  0x8a   :  { %p2628_p11 = scmp.lt.s32.totalorder %s2626_s27, %s2622_s18 }
  0x8c   :  { %p2629_p12 = por %p2628_p11, %p2627_p10 }
  0x8e   :  { %p2630_p13 = pnand %p2629_p12, %p2623_p9 }
  0x90   :  { %2633 = shalt.err (!%p2630_p13)
}
  0x91   :  { %93 = dma.hbm_to_vmem [thread:$0]  %s3320_s7, 16, %s91_s22, [#allocation9]  }
  0x92   :  { %s2747_s30 = smov [#allocation13]   ;;  %s2748_s2 = smov [#allocation16]  }
  0x93   :  { %s112_s25 = sshll.u32 %s2747_s30, 4  ;;  %s131_s1 = sshll.u32 %s2748_s2, 4  ;;  %s113_s25 = int_to_ptr.vmem [resolvable:$true] %s112_s25  ;;  %s132_s1 = int_to_ptr.vmem [resolvable:$true] %s131_s1 }
  0x94   :  { %s2634_s21 = scalar_lea.hbm %s3323_s10, 16 }
  0x95   :  { %p2635_p0 = scmp.ne.s32.totalorder %s3323_s10, %s2634_s21  ;;  %p2638_p1 = scmp.lt.u32.totalorder %s2634_s21, %s3323_s10 }
  0x97   :  { %p2640_p2 = pnand %p2638_p1, %p2635_p0 }
  0x99   :  { %2643 = shalt.err (!%p2640_p2)
}
  0x9a   :  { %s2644_s7 = scalar_lea.vmem %s113_s25, 16  ;;  %s2648_s22 = scalar_lea.vmem %s113_s25, 32 }
  0x9b   :  { %p2645_p3 = scmp.ne.s32.totalorder %s113_s25, %s2644_s7  ;;  %p2649_p4 = scmp.lt.s32.totalorder %s113_s25, %s113_s25 }
  0x9c   :  { %p2650_p5 = scmp.lt.s32.totalorder %s2648_s22, %s2644_s7 }
  0x9e   :  { %p2651_p6 = por %p2650_p5, %p2649_p4 }
  0xa0   :  { %p2652_p7 = pnand %p2651_p6, %p2645_p3 }
  0xa2   :  { %2655 = shalt.err (!%p2652_p7)
}
  0xa3   :  { %115 = dma.hbm_to_vmem [thread:$0]  %s3323_s10, 16, %s113_s25, [#allocation12]  }
  0xa4   :  { %s2656_s30 = scalar_lea.hbm %s3325_s12, 512 }
  0xa5   :  { %p2657_p8 = scmp.ne.s32.totalorder %s3325_s12, %s2656_s30  ;;  %p2660_p9 = scmp.lt.u32.totalorder %s2656_s30, %s3325_s12 }
  0xa7   :  { %p2662_p10 = pnand %p2660_p9, %p2657_p8 }
  0xa9   :  { %2665 = shalt.err (!%p2662_p10)
}
  0xaa   :  { %s2666_s6 = scalar_lea.vmem %s132_s1, 512  ;;  %p2671_p12 = scmp.lt.s32.totalorder %s132_s1, %s132_s1 }
  0xab   :  { %p2667_p11 = scmp.ne.s32.totalorder %s132_s1, %s2666_s6  ;;  %p2672_p13 = scmp.lt.s32.totalorder %s2666_s6, %s2666_s6 }
  0xad   :  { %p2673_p0 = por %p2672_p13, %p2671_p12 }
  0xaf   :  { %p2674_p1 = pnand %p2673_p0, %p2667_p11 }
  0xb1   :  { %2677 = shalt.err (!%p2674_p1)
}
  0xb2   :  { %137 = dma.hbm_to_vmem [thread:$0]  %s3325_s12, 512, %s132_s1, [#allocation15], %s2743_s11, %s2743_s11, %s2744_s28  }
  0xb3   :  { %s2749_s29 = smov [#allocation17]   ;;  %s2678_s22 = scalar_lea.hbm %s3329_s16, 1024 }
  0xb4   :  { %s149_s26 = sshll.u32 %s2749_s29, 4  ;;  %p2679_p2 = scmp.ne.s32.totalorder %s3329_s16, %s2678_s22  ;;  %s150_s26 = int_to_ptr.vmem [resolvable:$true] %s149_s26 }
  0xb5   :  { %p2682_p3 = scmp.lt.u32.totalorder %s2678_s22, %s3329_s16 }
  0xb7   :  { %p2684_p4 = pnand %p2682_p3, %p2679_p2 }
  0xb9   :  { %2687 = shalt.err (!%p2684_p4)
}
  0xba   :  { %s2688_s30 = scalar_lea.vmem %s150_s26, 1024  ;;  %p2693_p6 = scmp.lt.s32.totalorder %s150_s26, %s150_s26 }
  0xbb   :  { %p2689_p5 = scmp.ne.s32.totalorder %s150_s26, %s2688_s30  ;;  %p2694_p7 = scmp.lt.s32.totalorder %s2688_s30, %s2688_s30 }
  0xbd   :  { %p2695_p8 = por %p2694_p7, %p2693_p6 }
  0xbf   :  { %p2696_p9 = pnand %p2695_p8, %p2689_p5 }
  0xc1   :  { %2699 = shalt.err (!%p2696_p9)
}
  0xc2   :  { %155 = dma.hbm_to_vmem [thread:$0]  %s3329_s16, 1024, %s150_s26, [#allocation18], %s2737_s23, %s2737_s23, %s2738_s24  }
  0xc3   :  { %2722 = dma.done.wait [#allocation3], 256  }
  0xc4   :  { %2723 = vsyncadd [#allocation3], 4294967040 }
  0xc5   :  { %2724 = dma.done.wait [#allocation6], 512  }
  0xc6   :  { %2725 = vsyncadd [#allocation6], 4294966784 }
  0xc7   :  { %2726 = dma.done.wait [#allocation9], 272  }
  0xc8   :  { %2727 = vsyncadd [#allocation9], 4294967024 }
  0xc9   :  { %2728 = dma.done.wait [#allocation12], 32  }
  0xca   :  { %2729 = vsyncadd [#allocation12], 4294967264 }
  0xcb   :  { %2730 = dma.done.wait [#allocation15], 528  }
  0xcc   :  { %2731 = vsyncadd [#allocation15], 4294966768 }
  0xcd   :  { %2732 = dma.done.wait [#allocation18], 1024  }
  0xce   :  { %2733 = vsyncadd [#allocation18], 4294966272  ;;  %v2750_v0 = vmov 0.0   ;;  %vm2751_vm0 = vmmov 0   ;;  %v2398_v1 = vld [vmem:[#allocation5] sm:$0xff]   ;;  %v2399_v2 = vld [vmem:[#allocation5 + $0x8] sm:$0xff]  }
  0xcf   :  { %2194 = vmatprep.subr.bf16.mxu1 %v2750_v0  ;;  %2198 = vmatprep.mubr.msk.bf16.mxu1 %vm2751_vm0, %v2750_v0  ;;  %v3003_v3 = vld [vmem:[#allocation2] sm:$0xff]  ;;  %v3005_v4 = vld [vmem:[#allocation2 + $0x8] sm:$0xff]  ;;  %vm208_vm1 = vcmask 261120   ;;  %s2752_s16 = smov 96   ;;  %vm258_vm2 = vcmask 64512   ;;  %s2753_s24 = smov 88  }
  0xd0   :  { %2208 = vmatprep.subr.bf16.mxu0 %v2750_v0  ;;  %2210 = vmatprep.mubr.msk.bf16.mxu0 %vm2751_vm0, %v2750_v0  ;;  %v191_v5 = vpack.c.bf16 %v3005_v4, %v3003_v3  ;;  %vm383_vm3 = vcmask 1043456   ;;  %s2755_s28 = smov 56   ;;  %s2756_s1 = smov 112   ;;  %vm1656_vm4 = vcmask 1041409  }
  0xd1   :  { %2195 = vmatpush3.bf16.msra.mxu1 %v2398_v1  ;;  %s2757_s2 = smov 80   ;;  %s2758_s20 = smov 48  }
  0xd2   :  { %2196 = vmatprep.subr.bf16.mxu1 %v2750_v0  ;;  %s2759_s9 = smov 72   ;;  %s2760_s21 = smov 104  }
  0xd3   :  { %s2761_s6 = smov 40   ;;  %s2763_s29 = smov [#allocation19]  }
  0xd4   :  { %s2022_s26 = sshll.u32 %s2763_s29, 4  ;;  %s2023_s26 = int_to_ptr.vmem [resolvable:$true] %s2022_s26 }
  0xd5   :  { %2197 = vmatpush3.bf16.msra.mxu1 %v2399_v2  ;;  %p2705_p11 = scmp.lt.s32.totalorder %s2023_s26, %s2023_s26 }
  0xd6   :  { %2202 = vmatprep.subr.bf16.mxu1 %v2750_v0 }
  0xd8   :  { %2199 = vmatmul.mubr.msk.bf16.vlgmr.msra.gmra.mrb[0].mxu1 %vm208_vm1, %v191_v5 }
  0xd9   :  { %2204 = vmatprep.mubr.msk.bf16.mxu1 %vm2751_vm0, %v2750_v0 }
 0x1ab   :  { %v246_v6 = vpop.f32.mrb[0].mxu1 }
 0x1ac   :  { %v3014_v7 = vpack.c.bf16 %v246_v6, %v246_v6  ;;  %v2200_v8 = vpop.f32.mrb[1].mxu1 }
 0x1ad   :  { %v249_v9 = vpop.f32.mrb[2].mxu1 }
 0x1ae   :  { %256 = vrot.lane.b32.xlu0 %v3014_v7, %s2752_s16  ;;  %v2201_v10 = vpop.f32.mrb[3].mxu1  ;;  %v3017_v11 = vpack.c.bf16 %v249_v9, %v249_v9 }
 0x1b2   :  { %306 = vrot.lane.b32.xlu0 %v3017_v11, %s2752_s16 }
 0x220   :  { %v257_v12 = vpop.permute.xlu0 %256 }
 0x221   :  { %v263_v13 = vsel %vm258_vm2, %v257_v12, 0 }
 0x222   :  { %2203 = vmatpush3.bf16.xpose.msra.mxu1 %v263_v13 }
 0x223   :  { %2214 = vmatprep.subr.bf16.mxu1 %v2750_v0 }
 0x224   :  { %v307_v14 = vpop.permute.xlu0 %306 }
 0x225   :  { %v312_v15 = vsel %vm258_vm2, %v307_v14, 0 }
 0x226   :  { %2209 = vmatpush3.bf16.xpose.msra.mxu0 %v312_v15 }
 0x227   :  { %2220 = vmatprep.subr.bf16.mxu0 %v2750_v0 }
 0x229   :  { %2205 = vmatmul.mubr.msk.bf16.vlgmr.msra.gmra.mrb[4].mxu1 %vm258_vm2, %v3014_v7 }
 0x22a   :  { %2216 = vmatprep.mubr.msk.bf16.mxu1 %vm2751_vm0, %v2750_v0 }
 0x22d   :  { %2211 = vmatmul.mubr.msk.bf16.vlgmr.msra.gmra.mrb[0].mxu0 %vm258_vm2, %v3017_v11 }
 0x22e   :  { %2222 = vmatprep.mubr.msk.bf16.mxu0 %vm2751_vm0, %v2750_v0 }
 0x2fc   :  { %v299_v16 = vpop.f32.mrb[4].mxu1 }
 0x2fd   :  { %v2206_v17 = vpop.f32.mrb[5].mxu1  ;;  %v354_v18 = vsel %vm258_vm2, %v299_v16, -inf }
 0x2fe   :  { %355 = vmax.xlane.f32.xlu1 %v354_v18  ;;  %v302_v19 = vpop.f32.mrb[6].mxu1 }
 0x2ff   :  { %v2207_v20 = vpop.f32.mrb[7].mxu1 }
 0x300   :  { %v348_v21 = vpop.f32.mrb[0].mxu0 }
 0x301   :  { %v2212_v22 = vpop.f32.mrb[1].mxu0  ;;  %v357_v23 = vsel %vm258_vm2, %v348_v21, -inf }
 0x302   :  { %v351_v24 = vpop.f32.mrb[2].mxu0  ;;  %358 = vmax.xlane.f32.xlu1 %v357_v23 }
 0x303   :  { %v2213_v25 = vpop.f32.mrb[3].mxu0 }
 0x313   :  { %378 = vrot.lane.b32.xlu1 %v3014_v7, %s2737_s23 }
 0x317   :  { %427 = vrot.lane.b32.xlu1 %v3017_v11, %s2737_s23  ;;  %s2754_s23 = smov 120  }
 0x31b   :  { %479 = vrot.lane.b32.xlu1 %v3014_v7, %s2753_s24 }
 0x38b   :  { %v356_v26 = vpop.xlane.xlu1 %355 }
 0x38c   :  { %v360_v27 = vsub.f32 %v299_v16, %v356_v26 }
 0x38e   :  { %v362_v28 = vmul.f32 1.442695, %v360_v27 }
 0x38f   :  { %v359_v29 = vpop.xlane.xlu1 %358 }
 0x390   :  { %2440 = vpow2.f32 %v362_v28  ;;  %v361_v30 = vsub.f32 %v348_v21, %v359_v29 }
 0x392   :  { %v364_v31 = vmul.f32 1.442695, %v361_v30 }
 0x393   :  { %v379_v32 = vpop.permute.xlu1 %378 }
 0x394   :  { %2442 = vpow2.f32 %v364_v31  ;;  %v385_v33 = vsel %vm383_vm3, %v379_v32, 0  ;;  %v698_v31 = vld [vmem:[#allocation7 + $0x4] sm:$0xf] }
 0x395   :  { %2215 = vmatpush3.bf16.msra.mxu1 %v385_v33 }
 0x396   :  { %2226 = vmatprep.subr.bf16.mxu1 %v2750_v0 }
 0x397   :  { %v428_v34 = vpop.permute.xlu1 %427 }
 0x398   :  { %v433_v35 = vsel %vm383_vm3, %v428_v34, 0  ;;  %v703_v34 = vsel %vm383_vm3, %v698_v31, 0 }
 0x399   :  { %2221 = vmatpush3.bf16.msra.mxu0 %v433_v35 }
 0x39a   :  { %v2441_v36 = vpop.eup %2440  ;;  %2232 = vmatprep.subr.bf16.mxu0 %v2750_v0 }
 0x39b   :  { %v366_v37 = vsel %vm258_vm2, %v2441_v36, 0.0  ;;  %v480_v40 = vpop.permute.xlu1 %479 }
 0x39c   :  { %367 = vadd.xlane.f32.xlu0 %v366_v37  ;;  %v485_v47 = vsel %vm258_vm2, %v480_v40, 0 }
 0x39e   :  { %v2443_v38 = vpop.eup %2442 }
 0x39f   :  { %v369_v39 = vsel %vm258_vm2, %v2443_v38, 0.0 }
 0x3a0   :  { %370 = vadd.xlane.f32.xlu1 %v369_v39 }
 0x3b1   :  { %529 = vrot.lane.b32.xlu1 %v3017_v11, %s2753_s24 }
 0x3b2   :  { %477 = vrot.lane.b32.xlu0 %v3014_v7, %s2754_s23 }
 0x3b5   :  { %527 = vrot.lane.b32.xlu1 %v3017_v11, %s2754_s23 }
 0x429   :  { %v368_v41 = vpop.xlane.xlu0 %367 }
 0x42a   :  { %2444 = vrcp.f32 %v368_v41 }
 0x42d   :  { %v371_v42 = vpop.xlane.xlu1 %370  ;;  %v478_v52 = vpop.permute.xlu0 %477 }
 0x42e   :  { %2446 = vrcp.f32 %v371_v42 }
 0x431   :  { %v530_v49 = vpop.permute.xlu1 %529 }
 0x432   :  { %v535_v51 = vsel %vm258_vm2, %v530_v49, 0 }
 0x434   :  { %v2445_v43 = vpop.eup %2444 }
 0x435   :  { %v374_v44 = vmul.f32 %v2445_v43, %v2441_v36  ;;  %v528_v53 = vpop.permute.xlu1 %527  ;;  %v476_v36 = vld [vmem:[#allocation7] sm:$0xf] }
 0x436   :  { %v750_v39 = vsel %vm383_vm3, %v476_v36, 0 }
 0x437   :  { %v376_v45 = vpack.c.bf16 %v374_v44, %v374_v44 }
 0x438   :  { %v2447_v46 = vpop.eup %2446 }
 0x439   :  { %v375_v48 = vmul.f32 %v2447_v46, %v2443_v38  ;;  %2217 = vmatmul.mubr.msk.bf16.vlgmr.msra.gmra.mrb[8].mxu1 %vm258_vm2, %v376_v45 }
 0x43a   :  { %2227 = vmatpush3.bf16.xpose.msra.mxu1 %v485_v47  ;;  %2228 = vmatprep.mubr.msk.bf16.mxu1 %vm2751_vm0, %v2750_v0 }
 0x43b   :  { %v377_v50 = vpack.c.bf16 %v375_v48, %v375_v48  ;;  %2238 = vmatprep.subr.bf16.mxu1 %v2750_v0 }
 0x43d   :  { %2223 = vmatmul.mubr.msk.bf16.vlgmr.msra.gmra.mrb[4].mxu0 %vm258_vm2, %v377_v50 }
 0x43e   :  { %2233 = vmatpush3.bf16.xpose.msra.mxu0 %v535_v51  ;;  %2234 = vmatprep.mubr.msk.bf16.mxu0 %vm2751_vm0, %v2750_v0 }
 0x43f   :  { %2244 = vmatprep.subr.bf16.mxu0 %v2750_v0 }
 0x441   :  { %2229 = vmatmul.mubr.msk.bf16.vlgmr.msra.gmra.mrb[12].mxu1 %vm258_vm2, %v478_v52 }
 0x442   :  { %2240 = vmatprep.mubr.msk.bf16.mxu1 %vm2751_vm0, %v2750_v0 }
 0x445   :  { %2235 = vmatmul.mubr.msk.bf16.vlgmr.msra.gmra.mrb[8].mxu0 %vm258_vm2, %v528_v53 }
 0x446   :  { %2246 = vmatprep.mubr.msk.bf16.mxu0 %vm2751_vm0, %v2750_v0 }
 0x50c   :  { %v3064_v54 = vpop.f32.mrb[8].mxu1 }
 0x50d   :  { %v2218_v55 = vpop.f32.mrb[9].mxu1 }
 0x50e   :  { %v424_v56 = vpop.f32.mrb[10].mxu1 }
 0x50f   :  { %v2219_v57 = vpop.f32.mrb[11].mxu1 }
 0x510   :  { %v3066_v58 = vpop.f32.mrb[4].mxu0 }
 0x511   :  { %v475_v59 = vpack.c.bf16 %v3066_v58, %v3064_v54  ;;  %v2224_v60 = vpop.f32.mrb[5].mxu0 }
 0x512   :  { %v472_v61 = vpop.f32.mrb[6].mxu0 }
 0x513   :  { %v2225_v62 = vpop.f32.mrb[7].mxu0 }
 0x514   :  { %v521_v63 = vpop.f32.mrb[12].mxu1 }
 0x515   :  { %v2230_v1 = vpop.f32.mrb[13].mxu1  ;;  %v577_v2 = vsel %vm258_vm2, %v521_v63, -inf }
 0x516   :  { %578 = vmax.xlane.f32.xlu1 %v577_v2  ;;  %v524_v5 = vpop.f32.mrb[14].mxu1 }
 0x517   :  { %v2231_v6 = vpop.f32.mrb[15].mxu1 }
 0x518   :  { %v571_v8 = vpop.f32.mrb[8].mxu0 }
 0x519   :  { %v2236_v9 = vpop.f32.mrb[9].mxu0  ;;  %v580_v10 = vsel %vm258_vm2, %v571_v8, -inf }
 0x51a   :  { %581 = vmax.xlane.f32.xlu0 %v580_v10  ;;  %v574_v12 = vpop.f32.mrb[10].mxu0 }
 0x51b   :  { %v2237_v13 = vpop.f32.mrb[11].mxu0 }
 0x530   :  { %649 = vrot.lane.b32.xlu0 %v3017_v11, %s2755_s28 }
 0x534   :  { %793 = vrot.lane.b32.xlu0 %v3014_v7, %s2756_s1 }
 0x5a3   :  { %v579_v14 = vpop.xlane.xlu1 %578 }
 0x5a4   :  { %v583_v15 = vsub.f32 %v521_v63, %v579_v14 }
 0x5a6   :  { %v585_v16 = vmul.f32 1.442695, %v583_v15 }
 0x5a7   :  { %v582_v17 = vpop.xlane.xlu0 %581 }
 0x5a8   :  { %2448 = vpow2.f32 %v585_v16  ;;  %v584_v18 = vsub.f32 %v571_v8, %v582_v17 }
 0x5aa   :  { %v587_v19 = vmul.f32 1.442695, %v584_v18 }
 0x5ab   :  { %v650_v20 = vpop.permute.xlu0 %649 }
 0x5ac   :  { %2450 = vpow2.f32 %v587_v19  ;;  %v655_v21 = vsel %vm383_vm3, %v650_v20, 0 }
 0x5ad   :  { %2245 = vmatpush3.bf16.msra.mxu0 %v655_v21 }
 0x5ae   :  { %2256 = vmatprep.subr.bf16.mxu0 %v2750_v0 }
 0x5af   :  { %v794_v56 = vpop.permute.xlu0 %793 }
 0x5b2   :  { %v2449_v22 = vpop.eup %2448 }
 0x5b3   :  { %v589_v23 = vsel %vm258_vm2, %v2449_v22, 0.0 }
 0x5b4   :  { %590 = vadd.xlane.f32.xlu1 %v589_v23 }
 0x5b6   :  { %v2451_v24 = vpop.eup %2450 }
 0x5b7   :  { %v592_v25 = vsel %vm258_vm2, %v2451_v24, 0.0 }
 0x5b8   :  { %593 = vadd.xlane.f32.xlu1 %v592_v25 }
 0x5c9   :  { %601 = vrot.lane.b32.xlu1 %v3014_v7, %s2755_s28 }
 0x5cd   :  { %795 = vrot.lane.b32.xlu1 %v3014_v7, %s2757_s2 }
 0x5d1   :  { %845 = vrot.lane.b32.xlu1 %v3017_v11, %s2757_s2 }
 0x5d5   :  { %843 = vrot.lane.b32.xlu1 %v3017_v11, %s2756_s1 }
 0x641   :  { %v591_v26 = vpop.xlane.xlu1 %590 }
 0x642   :  { %2452 = vrcp.f32 %v591_v26 }
 0x645   :  { %v594_v27 = vpop.xlane.xlu1 %593 }
 0x646   :  { %2454 = vrcp.f32 %v594_v27 }
 0x649   :  { %v602_v28 = vpop.permute.xlu1 %601 }
 0x64a   :  { %v607_v29 = vsel %vm383_vm3, %v602_v28, 0 }
 0x64b   :  { %2239 = vmatpush3.bf16.msra.mxu1 %v607_v29 }
 0x64c   :  { %v2453_v30 = vpop.eup %2452  ;;  %2250 = vmatprep.subr.bf16.mxu1 %v2750_v0 }
 0x64d   :  { %v597_v32 = vmul.f32 %v2453_v30, %v2449_v22  ;;  %v796_v40 = vpop.permute.xlu1 %795 }
 0x64e   :  { %v801_v52 = vsel %vm258_vm2, %v796_v40, 0 }
 0x64f   :  { %v599_v33 = vpack.c.bf16 %v597_v32, %v597_v32 }
 0x650   :  { %v2455_v35 = vpop.eup %2454 }
 0x651   :  { %v598_v37 = vmul.f32 %v2455_v35, %v2451_v24  ;;  %2241 = vmatmul.mubr.msk.bf16.vlgmr.msra.gmra.mrb[16].mxu1 %vm258_vm2, %v599_v33  ;;  %v846_v41 = vpop.permute.xlu1 %845 }
 0x652   :  { %2251 = vmatpush3.bf16.msra.mxu1 %v703_v34  ;;  %2252 = vmatprep.mubr.msk.bf16.mxu1 %vm2751_vm0, %v2750_v0  ;;  %v851_v42 = vsel %vm258_vm2, %v846_v41, 0  ;;  %v1014_v41 = vld [vmem:[#allocation7 + $0x8] sm:$0xf] }
 0x653   :  { %v600_v38 = vpack.c.bf16 %v598_v37, %v598_v37  ;;  %2262 = vmatprep.subr.bf16.mxu1 %v2750_v0 }
 0x655   :  { %2247 = vmatmul.mubr.msk.bf16.vlgmr.msra.gmra.mrb[12].mxu0 %vm258_vm2, %v600_v38  ;;  %v844_v43 = vpop.permute.xlu1 %843 }
 0x656   :  { %2257 = vmatpush3.bf16.msra.mxu0 %v750_v39  ;;  %2258 = vmatprep.mubr.msk.bf16.mxu0 %vm2751_vm0, %v2750_v0 }
 0x657   :  { %2268 = vmatprep.subr.bf16.mxu0 %v2750_v0 }
 0x65d   :  { %2259 = vmatmul.mubr.msk.bf16.vlgmr.msra.gmra.mrb[16].mxu0 %vm258_vm2, %v475_v59 }
 0x65e   :  { %2270 = vmatprep.mubr.msk.bf16.mxu0 %vm2751_vm0, %v2750_v0 }
 0x65f   :  { %2269 = vmatpush3.bf16.xpose.msra.mxu0 %v851_v42  ;;  %v1019_v42 = vsel %vm383_vm3, %v1014_v41, 0 }
 0x660   :  { %2280 = vmatprep.subr.bf16.mxu0 %v2750_v0 }
 0x666   :  { %2271 = vmatmul.mubr.msk.bf16.vlgmr.msra.gmra.mrb[20].mxu0 %vm258_vm2, %v844_v43 }
 0x667   :  { %2282 = vmatprep.mubr.msk.bf16.mxu0 %vm2751_vm0, %v2750_v0 }
 0x724   :  { %v643_v44 = vpop.f32.mrb[16].mxu1 }
 0x725   :  { %v2242_v45 = vpop.f32.mrb[17].mxu1 }
 0x726   :  { %v646_v46 = vpop.f32.mrb[18].mxu1 }
 0x727   :  { %v2243_v47 = vpop.f32.mrb[19].mxu1 }
 0x728   :  { %v691_v48 = vpop.f32.mrb[12].mxu0 }
 0x729   :  { %v697_v49 = vpack.c.bf16 %v691_v48, %v643_v44  ;;  %v2248_v50 = vpop.f32.mrb[13].mxu0 }
 0x72a   :  { %v694_v51 = vpop.f32.mrb[14].mxu0 }
 0x72b   :  { %v2249_v53 = vpop.f32.mrb[15].mxu0  ;;  %2253 = vmatmul.mubr.msk.bf16.vlgmr.msra.gmra.mrb[20].mxu1 %vm258_vm2, %v697_v49 }
 0x72c   :  { %2263 = vmatpush3.bf16.xpose.msra.mxu1 %v801_v52  ;;  %2264 = vmatprep.mubr.msk.bf16.mxu1 %vm2751_vm0, %v2750_v0 }
 0x72d   :  { %2274 = vmatprep.subr.bf16.mxu1 %v2750_v0 }
 0x730   :  { %v786_v54 = vpop.f32.mrb[16].mxu0 }
 0x731   :  { %v2260_v55 = vpop.f32.mrb[17].mxu0 }
 0x732   :  { %v789_v57 = vpop.f32.mrb[18].mxu0 }
 0x733   :  { %v2261_v58 = vpop.f32.mrb[19].mxu0  ;;  %2265 = vmatmul.mubr.msk.bf16.vlgmr.msra.gmra.mrb[24].mxu1 %vm258_vm2, %v794_v56 }
 0x734   :  { %2276 = vmatprep.mubr.msk.bf16.mxu1 %vm2751_vm0, %v2750_v0 }
 0x739   :  { %v887_v59 = vpop.f32.mrb[20].mxu0 }
 0x73a   :  { %v2272_v60 = vpop.f32.mrb[21].mxu0  ;;  %v896_v61 = vsel %vm258_vm2, %v887_v59, -inf }
 0x73b   :  { %897 = vmax.xlane.f32.xlu1 %v896_v61  ;;  %v890_v62 = vpop.f32.mrb[22].mxu0 }
 0x73c   :  { %v2273_v63 = vpop.f32.mrb[23].mxu0 }
 0x74c   :  { %917 = vrot.lane.b32.xlu1 %v3014_v7, %s2758_s20 }
 0x750   :  { %1066 = vrot.lane.b32.xlu1 %v3014_v7, %s2759_s9 }
 0x754   :  { %1116 = vrot.lane.b32.xlu1 %v3017_v11, %s2759_s9 }
 0x758   :  { %1114 = vrot.lane.b32.xlu1 %v3017_v11, %s2760_s21 }
 0x7c8   :  { %v898_v1 = vpop.xlane.xlu1 %897 }
 0x7c9   :  { %v900_v6 = vsub.f32 %v887_v59, %v898_v1 }
 0x7cb   :  { %v903_v8 = vmul.f32 1.442695, %v900_v6 }
 0x7cc   :  { %v918_v2 = vpop.permute.xlu1 %917 }
 0x7cd   :  { %v923_v5 = vsel %vm383_vm3, %v918_v2, 0  ;;  %2456 = vpow2.f32 %v903_v8 }
 0x7ce   :  { %2275 = vmatpush3.bf16.msra.mxu1 %v923_v5 }
 0x7cf   :  { %2286 = vmatprep.subr.bf16.mxu1 %v2750_v0 }
 0x7d0   :  { %v1067_v36 = vpop.permute.xlu1 %1066 }
 0x7d1   :  { %v1072_v38 = vsel %vm258_vm2, %v1067_v36, 0 }
 0x7d4   :  { %v1117_v47 = vpop.permute.xlu1 %1116 }
 0x7d5   :  { %v1122_v52 = vsel %vm258_vm2, %v1117_v47, 0 }
 0x7d7   :  { %v2457_v19 = vpop.eup %2456 }
 0x7d8   :  { %v908_v22 = vsel %vm258_vm2, %v2457_v19, 0.0  ;;  %v1115_v59 = vpop.permute.xlu1 %1114 }
 0x7fe   :  { %v739_v9 = vpop.f32.mrb[20].mxu1 }
 0x7ff   :  { %v3122_v10 = vadd.f32 %v786_v54, %v739_v9  ;;  %v2254_v12 = vpop.f32.mrb[21].mxu1 }
 0x800   :  { %v742_v13 = vpop.f32.mrb[22].mxu1 }
 0x801   :  { %v3124_v14 = vadd.f32 %v789_v57, %v742_v13  ;;  %v2255_v15 = vpop.f32.mrb[23].mxu1 }
 0x806   :  { %v837_v16 = vpop.f32.mrb[24].mxu1 }
 0x807   :  { %v2266_v17 = vpop.f32.mrb[25].mxu1  ;;  %v893_v18 = vsel %vm258_vm2, %v837_v16, -inf }
 0x808   :  { %894 = vmax.xlane.f32.xlu0 %v893_v18  ;;  %v840_v20 = vpop.f32.mrb[26].mxu1 }
 0x809   :  { %v2267_v21 = vpop.f32.mrb[27].mxu1 }
 0x80c   :  { %909 = vadd.xlane.f32.xlu0 %v908_v22 }
 0x895   :  { %v895_v23 = vpop.xlane.xlu0 %894 }
 0x896   :  { %v899_v24 = vsub.f32 %v837_v16, %v895_v23 }
 0x898   :  { %v901_v25 = vmul.f32 1.442695, %v899_v24 }
 0x899   :  { %v910_v28 = vpop.xlane.xlu0 %909 }
 0x89a   :  { %2458 = vpow2.f32 %v901_v25 }
 0x89b   :  { %2460 = vrcp.f32 %v910_v28 }
 0x8a4   :  { %v2459_v26 = vpop.eup %2458 }
 0x8a5   :  { %v905_v27 = vsel %vm258_vm2, %v2459_v26, 0.0  ;;  %v2461_v29 = vpop.eup %2460 }
 0x8a6   :  { %906 = vadd.xlane.f32.xlu0 %v905_v27  ;;  %v914_v31 = vmul.f32 %v2461_v29, %v2457_v19  ;;  %v1285_v27 = vld [vmem:[#allocation7 + $0xc] sm:$0xf] }
 0x8a7   :  { %v1290_v28 = vsel %vm383_vm3, %v1285_v27, 0 }
 0x8a8   :  { %v916_v34 = vpack.c.bf16 %v914_v31, %v914_v31 }
 0x8bc   :  { %965 = vrot.lane.b32.xlu0 %v3017_v11, %s2758_s20 }
 0x8c0   :  { %1064 = vrot.lane.b32.xlu0 %v3014_v7, %s2760_s21 }
 0x933   :  { %v907_v30 = vpop.xlane.xlu0 %906 }
 0x934   :  { %2462 = vrcp.f32 %v907_v30 }
 0x937   :  { %v966_v32 = vpop.permute.xlu0 %965 }
 0x938   :  { %v971_v33 = vsel %vm383_vm3, %v966_v32, 0 }
 0x939   :  { %2281 = vmatpush3.bf16.msra.mxu0 %v971_v33 }
 0x93a   :  { %2292 = vmatprep.subr.bf16.mxu0 %v2750_v0 }
 0x93b   :  { %v1065_v40 = vpop.permute.xlu0 %1064 }
 0x93c   :  { %2283 = vmatmul.mubr.msk.bf16.vlgmr.msra.gmra.mrb[24].mxu0 %vm258_vm2, %v916_v34 }
 0x93d   :  { %2294 = vmatprep.mubr.msk.bf16.mxu0 %vm2751_vm0, %v2750_v0 }
 0x93e   :  { %v2463_v35 = vpop.eup %2462 }
 0x93f   :  { %v913_v37 = vmul.f32 %v2463_v35, %v2459_v26 }
 0x941   :  { %v915_v39 = vpack.c.bf16 %v913_v37, %v913_v37 }
 0x942   :  { %2293 = vmatpush3.bf16.xpose.msra.mxu0 %v1072_v38 }
 0x943   :  { %2277 = vmatmul.mubr.msk.bf16.vlgmr.msra.gmra.mrb[28].mxu1 %vm258_vm2, %v915_v39  ;;  %2304 = vmatprep.subr.bf16.mxu0 %v2750_v0 }
 0x944   :  { %2288 = vmatprep.mubr.msk.bf16.mxu1 %vm2751_vm0, %v2750_v0  ;;  %2287 = vmatpush3.bf16.msra.mxu1 %v1019_v42 }
 0x945   :  { %2298 = vmatprep.subr.bf16.mxu1 %v2750_v0 }
 0x949   :  { %2295 = vmatmul.mubr.msk.bf16.vlgmr.msra.gmra.mrb[28].mxu0 %vm258_vm2, %v1065_v40 }
 0x94a   :  { %2306 = vmatprep.mubr.msk.bf16.mxu0 %vm2751_vm0, %v2750_v0 }
 0xa0f   :  { %v1007_v43 = vpop.f32.mrb[24].mxu0 }
 0xa10   :  { %v2284_v44 = vpop.f32.mrb[25].mxu0 }
 0xa11   :  { %v1010_v45 = vpop.f32.mrb[26].mxu0  ;;  %v2059_v44 = vld [vmem:[%s3316_s3] ss:$0 sm:$0xff]  ;;  %s3344_s3 = sld [smem:[#allocation30_spill]] }
 0xa12   :  { %v2285_v46 = vpop.f32.mrb[27].mxu0 }
 0xa16   :  { %v959_v48 = vpop.f32.mrb[28].mxu1 }
 0xa17   :  { %v1013_v49 = vpack.c.bf16 %v1007_v43, %v959_v48  ;;  %v2278_v50 = vpop.f32.mrb[29].mxu1 }
 0xa18   :  { %v962_v51 = vpop.f32.mrb[30].mxu1 }
 0xa19   :  { %v2279_v53 = vpop.f32.mrb[31].mxu1  ;;  %2289 = vmatmul.mubr.msk.bf16.vlgmr.msra.gmra.mrb[32].mxu1 %vm258_vm2, %v1013_v49 }
 0xa1a   :  { %2299 = vmatpush3.bf16.xpose.msra.mxu1 %v1122_v52  ;;  %2300 = vmatprep.mubr.msk.bf16.mxu1 %vm2751_vm0, %v2750_v0 }
 0xa1b   :  { %2310 = vmatprep.subr.bf16.mxu1 %v2750_v0 }
 0xa1c   :  { %v1108_v54 = vpop.f32.mrb[28].mxu0 }
 0xa1d   :  { %v2296_v55 = vpop.f32.mrb[29].mxu0  ;;  %v1164_v56 = vsel %vm258_vm2, %v1108_v54, -inf }
 0xa1e   :  { %1165 = vmax.xlane.f32.xlu0 %v1164_v56  ;;  %v1111_v57 = vpop.f32.mrb[30].mxu0 }
 0xa1f   :  { %v2297_v58 = vpop.f32.mrb[31].mxu0 }
 0xa21   :  { %2301 = vmatmul.mubr.msk.bf16.vlgmr.msra.gmra.mrb[36].mxu1 %vm258_vm2, %v1115_v59 }
 0xa22   :  { %2312 = vmatprep.mubr.msk.bf16.mxu1 %vm2751_vm0, %v2750_v0 }
 0xaab   :  { %v1166_v60 = vpop.xlane.xlu0 %1165 }
 0xaac   :  { %v1170_v61 = vsub.f32 %v1108_v54, %v1166_v60 }
 0xaae   :  { %v1172_v62 = vmul.f32 1.442695, %v1170_v61 }
 0xab0   :  { %2464 = vpow2.f32 %v1172_v62 }
 0xaba   :  { %v2465_v63 = vpop.eup %2464 }
 0xabb   :  { %v1176_v1 = vsel %vm258_vm2, %v2465_v63, 0.0 }
 0xabc   :  { %1177 = vadd.xlane.f32.xlu0 %v1176_v1 }
 0xaec   :  { %v1055_v2 = vpop.f32.mrb[32].mxu1 }
 0xaed   :  { %v1062_v5 = vadd.f32 %v1055_v2, %v3122_v10  ;;  %v2290_v6 = vpop.f32.mrb[33].mxu1  ;;  %v2400_v2 = vld [vmem:[#allocation8] sm:$0xff]  }
 0xaee   :  { %v1058_v8 = vpop.f32.mrb[34].mxu1  ;;  %v2403_v6 = vld [vmem:[%s3321_s8 + $0x8] sm:$0xff]  }
 0xaef   :  { %v1063_v9 = vadd.f32 %v1058_v8, %v3124_v14  ;;  %v2291_v12 = vpop.f32.mrb[35].mxu1  ;;  %v2404_v8 = vld [vmem:[%s3321_s8 + $0x10] sm:$0xff]  }
 0xaf0   :  { %v2406_v12 = vld [vmem:[%s3321_s8 + $0x20] sm:$0xff]  }
 0xaf4   :  { %v1158_v13 = vpop.f32.mrb[36].mxu1 }
 0xaf5   :  { %v2302_v15 = vpop.f32.mrb[37].mxu1  ;;  %v1167_v16 = vsel %vm258_vm2, %v1158_v13, -inf }
 0xaf6   :  { %1168 = vmax.xlane.f32.xlu1 %v1167_v16  ;;  %v1161_v17 = vpop.f32.mrb[38].mxu1 }
 0xaf7   :  { %v2303_v18 = vpop.f32.mrb[39].mxu1 }
 0xb07   :  { %1188 = vrot.lane.b32.xlu1 %v3014_v7, %s2761_s6 }
 0xb49   :  { %v1178_v19 = vpop.xlane.xlu0 %1177 }
 0xb4a   :  { %2466 = vrcp.f32 %v1178_v19 }
 0xb54   :  { %v2467_v20 = vpop.eup %2466 }
 0xb55   :  { %v1184_v22 = vmul.f32 %v2467_v20, %v2465_v63 }
 0xb57   :  { %v1186_v25 = vpack.c.bf16 %v1184_v22, %v1184_v22 }
 0xb83   :  { %v1169_v21 = vpop.xlane.xlu1 %1168 }
 0xb84   :  { %v1171_v10 = vsub.f32 %v1158_v13, %v1169_v21  ;;  %v2407_v13 = vld [vmem:[%s3321_s8 + $0x28] sm:$0xff]  }
 0xb86   :  { %v1174_v23 = vmul.f32 1.442695, %v1171_v10  ;;  %v2060_v10 = vld [vmem:[%s3317_s4] ss:$0 sm:$0xff] }
 0xb87   :  { %v1189_v24 = vpop.permute.xlu1 %1188 }
 0xb88   :  { %2468 = vpow2.f32 %v1174_v23  ;;  %v1194_v14 = vsel %vm383_vm3, %v1189_v24, 0 }
 0xb89   :  { %2305 = vmatpush3.bf16.msra.mxu0 %v1194_v14 }
 0xb8a   :  { %2316 = vmatprep.subr.bf16.mxu0 %v2750_v0 }
 0xb8c   :  { %2307 = vmatmul.mubr.msk.bf16.vlgmr.msra.gmra.mrb[32].mxu0 %vm258_vm2, %v1186_v25  ;;  %v2061_v25 = vld [vmem:[%s3318_s5] ss:$0 sm:$0xff] }
 0xb8d   :  { %2318 = vmatprep.mubr.msk.bf16.mxu0 %vm2751_vm0, %v2750_v0  ;;  %2317 = vmatpush3.bf16.msra.mxu0 %v1290_v28 }
 0xb8e   :  { %2330 = vmatprep.subr.bf16.mxu0 %v2750_v0 }
 0xb92   :  { %v2469_v7 = vpop.eup %2468 }
 0xb93   :  { %v1179_v26 = vsel %vm258_vm2, %v2469_v7, 0.0 }
 0xb94   :  { %1180 = vadd.xlane.f32.xlu0 %v1179_v26 }
 0xbaa   :  { %1236 = vrot.lane.b32.xlu0 %v3017_v11, %s2761_s6 }
 0xc21   :  { %v1181_v29 = vpop.xlane.xlu0 %1180 }
 0xc22   :  { %2470 = vrcp.f32 %v1181_v29  ;;  %v2408_v29 = vld [vmem:[%s3321_s8 + $0x30] sm:$0xff]  }
 0xc25   :  { %v1237_v30 = vpop.permute.xlu0 %1236 }
 0xc26   :  { %v1242_v31 = vsel %vm383_vm3, %v1237_v30, 0  ;;  %v2409_v30 = vld [vmem:[%s3321_s8 + $0x38] sm:$0xff]  }
 0xc27   :  { %2311 = vmatpush3.bf16.msra.mxu1 %v1242_v31  ;;  %v2062_v31 = vld [vmem:[#allocation10] ss:$0 sm:$0xff] }
 0xc28   :  { %2322 = vmatprep.subr.bf16.mxu1 %v2750_v0 }
 0xc2c   :  { %v2471_v32 = vpop.eup %2470 }
 0xc2d   :  { %v1185_v33 = vmul.f32 %v2471_v32, %v2469_v7 }
 0xc2f   :  { %v1187_v34 = vpack.c.bf16 %v1185_v33, %v1185_v33 }
 0xc31   :  { %2313 = vmatmul.mubr.msk.bf16.vlgmr.msra.gmra.mrb[40].mxu1 %vm258_vm2, %v1187_v34 }
 0xc32   :  { %2326 = vmatprep.mubr.msk.bf16.mxu1 %vm2751_vm0, %v2750_v0  ;;  %2323 = vmatpush3.bf16.msra.mxu1 %v2400_v2  ;;  %v2416_v2 = vld [vmem:[%s3327_s14 + $0x40] sm:$0xff]  }
 0xc33   :  { %2324 = vmatprep.subr.bf16.mxu1 %v2750_v0 }
 0xc5f   :  { %v1230_v11 = vpop.f32.mrb[32].mxu0 }
 0xc60   :  { %v2308_v35 = vpop.f32.mrb[33].mxu0 }
 0xc61   :  { %v1233_v36 = vpop.f32.mrb[34].mxu0 }
 0xc62   :  { %v2309_v37 = vpop.f32.mrb[35].mxu0 }
 0xd04   :  { %v1278_v38 = vpop.f32.mrb[40].mxu1 }
 0xd05   :  { %v1284_v39 = vpack.c.bf16 %v1278_v38, %v1230_v11  ;;  %v2314_v40 = vpop.f32.mrb[41].mxu1 }
 0xd06   :  { %v1281_v41 = vpop.f32.mrb[42].mxu1  ;;  %v2066_v40 = vld [vmem:[#allocation11] ss:$0 sm:$0xff] }
 0xd07   :  { %v2315_v42 = vpop.f32.mrb[43].mxu1  ;;  %2319 = vmatmul.mubr.msk.bf16.vlgmr.msra.gmra.mrb[36].mxu0 %vm258_vm2, %v1284_v39 }
 0xd08   :  { %2346 = vmatprep.mubr.msk.bf16.mxu0 %vm2751_vm0, %v2750_v0 }
 0xdda   :  { %v1326_v43 = vpop.f32.mrb[36].mxu0 }
 0xddb   :  { %v1333_v45 = vadd.f32 %v1326_v43, %v1062_v5  ;;  %v2320_v46 = vpop.f32.mrb[37].mxu0  ;;  %v2402_v5 = vld [vmem:[%s3321_s8] sm:$0xff]  }
 0xddc   :  { %v1329_v47 = vpop.f32.mrb[38].mxu0  ;;  %2331 = vmatpush3.bf16.msra.mxu0 %v2402_v5 }
 0xddd   :  { %v1342_v48 = vadd.f32 %v2059_v44, %v1333_v45  ;;  %v1334_v49 = vadd.f32 %v1329_v47, %v1063_v9  ;;  %v2321_v50 = vpop.f32.mrb[39].mxu0  ;;  %2332 = vmatprep.subr.bf16.mxu0 %v2750_v0  ;;  %v2405_v9 = vld [vmem:[%s3321_s8 + $0x18] sm:$0xff]  }
 0xddf   :  { %v1343_v51 = vadd.f32 %v2059_v44, %v1334_v49  ;;  %v1344_v52 = vadd.f32 %v1342_v48, %v3003_v3 }
 0xde0   :  { %2333 = vmatpush3.bf16.msra.mxu0 %v2403_v6 }
 0xde1   :  { %v1348_v53 = vsel %vm208_vm1, %v1344_v52, 0.0  ;;  %v1345_v54 = vadd.f32 %v1343_v51, %v3005_v4  ;;  %v2401_v4 = vld [vmem:[#allocation8 + $0x8] sm:$0xff]   ;;  %2334 = vmatprep.subr.bf16.mxu0 %v2750_v0 }
 0xde2   :  { %1349 = vadd.xlane.f32.xlu1 %v1348_v53  ;;  %2325 = vmatpush3.bf16.msra.mxu1 %v2401_v4 }
 0xde3   :  { %v1351_v55 = vsel %vm208_vm1, %v1345_v54, 0.0 }
 0xde4   :  { %1352 = vadd.xlane.f32.xlu0 %v1351_v55  ;;  %2335 = vmatpush3.bf16.msra.mxu0 %v2404_v8 }
 0xde5   :  { %2336 = vmatprep.subr.bf16.mxu0 %v2750_v0 }
 0xde8   :  { %2337 = vmatpush3.bf16.msra.mxu0 %v2405_v9 }
 0xde9   :  { %2338 = vmatprep.subr.bf16.mxu0 %v2750_v0 }
 0xdec   :  { %2339 = vmatpush3.bf16.msra.mxu0 %v2406_v12 }
 0xded   :  { %2340 = vmatprep.subr.bf16.mxu0 %v2750_v0 }
 0xdf0   :  { %2341 = vmatpush3.bf16.msra.mxu0 %v2407_v13 }
 0xdf1   :  { %2342 = vmatprep.subr.bf16.mxu0 %v2750_v0 }
 0xdf4   :  { %2343 = vmatpush3.bf16.msra.mxu0 %v2408_v29 }
 0xdf5   :  { %2344 = vmatprep.subr.bf16.mxu0 %v2750_v0 }
 0xdf8   :  { %2345 = vmatpush3.bf16.msra.mxu0 %v2409_v30 }
 0xdf9   :  { %2350 = vmatprep.subr.bf16.mxu0 %v2750_v0 }
 0xe6f   :  { %v1350_v56 = vpop.xlane.xlu1 %1349 }
 0xe70   :  { %v1355_v57 = vmul.f32 0.03125, %v1350_v56 }
 0xe71   :  { %v1353_v58 = vpop.xlane.xlu0 %1352 }
 0xe72   :  { %v1357_v59 = vsub.f32 %v1344_v52, %v1355_v57  ;;  %v1356_v60 = vmul.f32 0.03125, %v1353_v58 }
 0xe74   :  { %v1358_v61 = vsub.f32 %v1345_v54, %v1356_v60  ;;  %v1359_v62 = vmul.f32 %v1357_v59, %v1357_v59 }
 0xe76   :  { %v1361_v63 = vsel %vm208_vm1, %v1359_v62, 0.0  ;;  %v1360_v1 = vmul.f32 %v1358_v61, %v1358_v61  ;;  %v2412_v62 = vld [vmem:[#allocation16 + $0x4] ss:$8 sps:$4 sm:$0xff]  }
 0xe77   :  { %1362 = vadd.xlane.f32.xlu1 %v1361_v63  ;;  %v2415_v63 = vld [vmem:[#allocation16 + $0x14] ss:$8 sps:$4 sm:$0xff]   ;;  %1682 = vmatprep.subr.bf16.mxu1 %v2412_v62 }
 0xe78   :  { %v1364_v3 = vsel %vm208_vm1, %v1360_v1, 0.0  ;;  %v2762_v1 = vmov 0  }
 0xe79   :  { %1365 = vadd.xlane.f32.xlu0 %v1364_v3  ;;  %v2413_v3 = vld [vmem:[#allocation16 + $0x10] ss:$8 sps:$4 sm:$0xff]  }
 0xf04   :  { %v1363_v15 = vpop.xlane.xlu1 %1362 }
 0xf05   :  { %v1367_v16 = vmul.f32 0.03125, %v1363_v15  ;;  %v2075_v15 = vld [vmem:[#allocation13] ss:$0 sm:$0xff] }
 0xf06   :  { %v1366_v17 = vpop.xlane.xlu0 %1365 }
 0xf07   :  { %v1369_v18 = vadd.f32 1e-05, %v1367_v16  ;;  %v1368_v19 = vmul.f32 0.03125, %v1366_v17 }
 0xf09   :  { %2472 = vrsqrt.f32 %v1369_v18  ;;  %v1370_v20 = vadd.f32 1e-05, %v1368_v19  ;;  %v2076_v18 = vld [vmem:[#allocation14] ss:$0 sm:$0xff] }
 0xf0b   :  { %2474 = vrsqrt.f32 %v1370_v20 }
 0xf13   :  { %v2473_v21 = vpop.eup %2472 }
 0xf14   :  { %v1373_v22 = vmul.f32 %v2473_v21, %v1357_v59 }
 0xf15   :  { %v2475_v23 = vpop.eup %2474 }
 0xf16   :  { %v1381_v24 = vmul.f32 %v2060_v10, %v1373_v22  ;;  %v1374_v14 = vmul.f32 %v2475_v23, %v1358_v61  ;;  %v2410_v61 = vld [vmem:[#allocation16] ss:$8 sps:$4 sm:$0xff]  }
 0xf18   :  { %v1382_v7 = vmul.f32 %v2060_v10, %v1374_v14  ;;  %v1389_v26 = vadd.f32 %v2061_v25, %v1381_v24 }
 0xf1a   :  { %v1390_v27 = vadd.f32 %v2061_v25, %v1382_v7 }
 0xf1c   :  { %v1391_v28 = vpack.c.bf16 %v1390_v27, %v1389_v26 }
 0xf1e   :  { %2327 = vmatmul.mubr.msk.bf16.vlgmr.msra.gmra.mrb[44].mxu1 %vm208_vm1, %v1391_v28 }
 0xf1f   :  { %1714 = vmatprep.mubr.bf16.mxu1 %v2762_v1  ;;  %1683 = vmatpush1.bf16.msra.mxu1 %v2410_v61  ;;  %v1642_v61 = vlaneseq  ;;  %v1640_v1 = vld [vmem:[%s3326_s13] sm:$0x3] }
 0xf20   :  { %1684 = vmatprep.subr.bf16.mxu1 %v2415_v63 }
 0xf21   :  { %v1643_v62 = vshrl.u32 %v1642_v61, 7 }
 0xf23   :  { %1685 = vmatpush1.bf16.msra.mxu1 %v2413_v3  ;;  %v1644_v63 = vsub.s32 0, %v1643_v62  ;;  %v1648_v3 = vsub.s32 1, %v1643_v62 }
 0xf24   :  { %2163 = vmatprep.subr.bf16.mxu1 %v2416_v2 }
 0xf25   :  { %v1645_v2 = vrot.slane %v1640_v1, %v1644_v63 }
 0xff1   :  { %v1452_v32 = vpop.f32.mrb[44].mxu1 }
 0xff2   :  { %v1453_v33 = vadd.f32 %v2062_v31, %v1452_v32  ;;  %v2328_v34 = vpop.f32.mrb[45].mxu1 }
 0xff3   :  { %v1455_v11 = vpop.f32.mrb[46].mxu1 }
 0xff4   :  { %v1456_v35 = vadd.f32 %v2062_v31, %v1455_v11  ;;  %v2329_v36 = vpop.f32.mrb[47].mxu1  ;;  %v1459_v37 = vmax.f32 %v1453_v33, 0.0 }
 0xff6   :  { %v1460_v38 = vmax.f32 %v1456_v35, 0.0 }
 0xff8   :  { %v1461_v39 = vpack.c.bf16 %v1460_v38, %v1459_v37 }
 0xffa   :  { %2347 = vmatmul.mubr.bf16.vlgmr.msra.gmra.mrb[40].mxu0 %v1461_v39  ;;  %v2417_v39 = vld [vmem:[%s3327_s14] sm:$0xff]  }
 0xffb   :  { %2366 = vmatprep.mubr.msk.bf16.mxu0 %vm2751_vm0, %v2750_v0 }
0x10cd   :  { %v1567_v41 = vpop.f32.mrb[40].mxu0 }
0x10ce   :  { %v1568_v42 = vadd.f32 %v2066_v40, %v1567_v41  ;;  %v2348_v43 = vpop.f32.mrb[41].mxu0  ;;  %v2418_v41 = vld [vmem:[%s3327_s14 + $0x48] sm:$0xff]  }
0x10cf   :  { %v1570_v44 = vpop.f32.mrb[42].mxu0  ;;  %v2420_v43 = vld [vmem:[%s3327_s14 + $0x50] sm:$0xff]  }
0x10d0   :  { %v1571_v45 = vadd.f32 %v2066_v40, %v1570_v44  ;;  %v2349_v46 = vpop.f32.mrb[43].mxu0  ;;  %v1574_v47 = vadd.f32 %v1568_v42, %v1389_v26  ;;  %v2419_v42 = vld [vmem:[%s3327_s14 + $0x8] sm:$0xff]   ;;  %v2421_v44 = vld [vmem:[%s3327_s14 + $0x10] sm:$0xff]  }
0x10d1   :  { %v2423_v46 = vld [vmem:[%s3327_s14 + $0x18] sm:$0xff]  }
0x10d2   :  { %v1578_v48 = vsel %vm208_vm1, %v1574_v47, 0.0  ;;  %v1575_v49 = vadd.f32 %v1571_v45, %v1390_v27  ;;  %v2422_v45 = vld [vmem:[%s3327_s14 + $0x58] sm:$0xff]  }
0x10d3   :  { %1579 = vadd.xlane.f32.xlu1 %v1578_v48  ;;  %v2425_v48 = vld [vmem:[%s3327_s14 + $0x20] sm:$0xff]  }
0x10d4   :  { %v1581_v50 = vsel %vm208_vm1, %v1575_v49, 0.0 }
0x10d5   :  { %1582 = vadd.xlane.f32.xlu0 %v1581_v50  ;;  %v2427_v50 = vld [vmem:[%s3327_s14 + $0x28] sm:$0xff]  }
0x1160   :  { %v1580_v51 = vpop.xlane.xlu1 %1579 }
0x1161   :  { %v1584_v52 = vmul.f32 0.03125, %v1580_v51  ;;  %v2428_v51 = vld [vmem:[%s3327_s14 + $0x70] sm:$0xff]  }
0x1162   :  { %v1583_v53 = vpop.xlane.xlu0 %1582 }
0x1163   :  { %v1586_v54 = vsub.f32 %v1574_v47, %v1584_v52  ;;  %v1585_v55 = vmul.f32 0.03125, %v1583_v53  ;;  %v2424_v47 = vld [vmem:[%s3327_s14 + $0x60] sm:$0xff]   ;;  %v2429_v52 = vld [vmem:[%s3327_s14 + $0x30] sm:$0xff]   ;;  %v2430_v53 = vld [vmem:[%s3327_s14 + $0x78] sm:$0xff]  }
0x1165   :  { %v1587_v56 = vsub.f32 %v1575_v49, %v1585_v55  ;;  %v1588_v57 = vmul.f32 %v1586_v54, %v1586_v54  ;;  %v2426_v49 = vld [vmem:[%s3327_s14 + $0x68] sm:$0xff]  }
0x1166   :  { %v2432_v55 = vld [vmem:[#allocation17] sm:$0xff]  }
0x1167   :  { %v1590_v58 = vsel %vm208_vm1, %v1588_v57, 0.0  ;;  %v1589_v59 = vmul.f32 %v1587_v56, %v1587_v56  ;;  %2351 = vmatpush3.bf16.msra.mxu0 %v2432_v55  ;;  %v2434_v57 = vld [vmem:[#allocation17 + $0x10] sm:$0xff]  }
0x1168   :  { %1591 = vadd.xlane.f32.xlu1 %v1590_v58  ;;  %2352 = vmatprep.subr.bf16.mxu0 %v2750_v0  ;;  %v2435_v58 = vld [vmem:[#allocation17 + $0x18] sm:$0xff]  }
0x1169   :  { %v1593_v60 = vsel %vm208_vm1, %v1589_v59, 0.0  ;;  %v2436_v59 = vld [vmem:[#allocation17 + $0x20] sm:$0xff]  }
0x116a   :  { %1594 = vadd.xlane.f32.xlu0 %v1593_v60  ;;  %v2437_v60 = vld [vmem:[#allocation17 + $0x28] sm:$0xff]  }
0x11f5   :  { %v1592_v4 = vpop.xlane.xlu1 %1591 }
0x11f6   :  { %v1596_v5 = vmul.f32 0.03125, %v1592_v4  ;;  %v1649_v4 = vrot.slane %v1640_v1, %v1648_v3 }
0x11f7   :  { %v1595_v6 = vpop.xlane.xlu0 %1594 }
0x11f8   :  { %v1598_v8 = vadd.f32 1e-05, %v1596_v5  ;;  %v1597_v9 = vmul.f32 0.03125, %v1595_v6 }
0x11fa   :  { %2476 = vrsqrt.f32 %v1598_v8  ;;  %v1599_v12 = vadd.f32 1e-05, %v1597_v9 }
0x11fc   :  { %2478 = vrsqrt.f32 %v1599_v12 }
0x1204   :  { %v2477_v13 = vpop.eup %2476 }
0x1205   :  { %v1602_v16 = vmul.f32 %v2477_v13, %v1586_v54  ;;  %v2431_v54 = vld [vmem:[%s3327_s14 + $0x38] sm:$0xff]  }
0x1206   :  { %v2479_v17 = vpop.eup %2478 }
0x1207   :  { %v1610_v19 = vmul.f32 %v2075_v15, %v1602_v16  ;;  %v1603_v20 = vmul.f32 %v2479_v17, %v1587_v56  ;;  %v2433_v56 = vld [vmem:[#allocation17 + $0x8] sm:$0xff]  }
0x1208   :  { %2353 = vmatpush3.bf16.msra.mxu0 %v2433_v56 }
0x1209   :  { %v1618_v21 = vadd.f32 %v2076_v18, %v1610_v19  ;;  %v1611_v10 = vmul.f32 %v2075_v15, %v1603_v20  ;;  %2354 = vmatprep.subr.bf16.mxu0 %v2750_v0  ;;  %v2438_v19 = vld [vmem:[#allocation17 + $0x30] sm:$0xff]   ;;  %v2439_v20 = vld [vmem:[#allocation17 + $0x38] sm:$0xff]  }
0x120b   :  { %v1620_v22 = vsel %vm208_vm1, %v1618_v21, -inf  ;;  %v1619_v23 = vadd.f32 %v2076_v18, %v1611_v10  ;;  %v2082_v10 = vld [vmem:[%s3328_s15] ss:$0 sm:$0xff]  ;;  %s2700_s15 = scalar_lea.vmem %s2023_s26, 32 }
0x120c   :  { %v1621_v24 = vrot.slane %v1620_v22, 4  ;;  %2355 = vmatpush3.bf16.msra.mxu0 %v2434_v57  ;;  %p2701_p10 = scmp.ne.s32.totalorder %s2023_s26, %s2700_s15  ;;  %p2706_p12 = scmp.lt.s32.totalorder %s2700_s15, %s2700_s15 }
0x120d   :  { %v1627_v14 = vsel %vm208_vm1, %v1619_v23, -inf  ;;  %2356 = vmatprep.subr.bf16.mxu0 %v2750_v0 }
0x120e   :  { %v1622_v25 = vmax.f32 %v1620_v22, %v1621_v24  ;;  %v1628_v7 = vrot.slane %v1627_v14, 4  ;;  %p2707_p13 = por %p2706_p12, %p2705_p11 }
0x1210   :  { %v1623_v26 = vrot.slane %v1622_v25, 2  ;;  %v1629_v27 = vmax.f32 %v1627_v14, %v1628_v7  ;;  %2357 = vmatpush3.bf16.msra.mxu0 %v2435_v58  ;;  %p2708_p0 = pnand %p2707_p13, %p2701_p10 }
0x1211   :  { %2358 = vmatprep.subr.bf16.mxu0 %v2750_v0 }
0x1212   :  { %v1630_v28 = vrot.slane %v1629_v27, 2  ;;  %v1624_v29 = vmax.f32 %v1622_v25, %v1623_v26 }
0x1214   :  { %v1625_v30 = vrot.slane %v1624_v29, 1  ;;  %v1631_v31 = vmax.f32 %v1629_v27, %v1630_v28  ;;  %2359 = vmatpush3.bf16.msra.mxu0 %v2436_v59  ;;  %v2099_v27 = vld [vmem:[%s3344_s3] ss:$0 sm:$0xff] }
0x1215   :  { %2360 = vmatprep.subr.bf16.mxu0 %v2750_v0 }
0x1216   :  { %v1626_v32 = vmax.f32 %v1624_v29, %v1625_v30  ;;  %v1632_v33 = vrot.slane %v1631_v31, 1 }
0x1218   :  { %v1633_v34 = vmax.f32 %v1631_v31, %v1632_v33  ;;  %v1634_v11 = vpack.c.bf16 %v1626_v32, %v1626_v32  ;;  %2361 = vmatpush3.bf16.msra.mxu0 %v2437_v60 }
0x1219   :  { %2362 = vmatprep.subr.bf16.mxu0 %v2750_v0 }
0x121a   :  { %v1635_v35 = vpack.c.bf16 %v1633_v34, %v1633_v34  ;;  %v1654_v36 = vunpack.c.l.b16 %v1634_v11 }
0x121c   :  { %v1655_v37 = vunpack.c.l.b16 %v1635_v35  ;;  %2363 = vmatpush3.bf16.msra.mxu0 %v2438_v19 }
0x121d   :  { %2364 = vmatprep.subr.bf16.mxu0 %v2750_v0 }
0x121e   :  { %v1657_v38 = vsel %vm1656_vm4, %v1655_v37, %v1654_v36 }
0x121f   :  { %v1658_v40 = vpack.c.b16 %v1657_v38, %v1657_v38 }
0x1220   :  { %2365 = vmatpush3.bf16.msra.mxu0 %v2439_v20 }
0x1221   :  { %2081 = vmatmul.mubr.msk.bf16.vlgmr.msra.gmra.mrb[48].mxu1 %vm208_vm1, %v1658_v40 }
0x1222   :  { %2164 = vmatpush3.bf16.msra.mxu1 %v2417_v39 }
0x1223   :  { %2165 = vmatprep.subr.bf16.mxu1 %v2418_v41 }
0x1226   :  { %2166 = vmatpush3.bf16.msra.mxu1 %v2419_v42 }
0x1227   :  { %2167 = vmatprep.subr.bf16.mxu1 %v2420_v43 }
0x122a   :  { %2168 = vmatpush3.bf16.msra.mxu1 %v2421_v44 }
0x122b   :  { %2169 = vmatprep.subr.bf16.mxu1 %v2422_v45 }
0x122e   :  { %2170 = vmatpush3.bf16.msra.mxu1 %v2423_v46 }
0x122f   :  { %2171 = vmatprep.subr.bf16.mxu1 %v2424_v47 }
0x1232   :  { %2172 = vmatpush3.bf16.msra.mxu1 %v2425_v48 }
0x1233   :  { %2173 = vmatprep.subr.bf16.mxu1 %v2426_v49 }
0x1236   :  { %2174 = vmatpush3.bf16.msra.mxu1 %v2427_v50 }
0x1237   :  { %2175 = vmatprep.subr.bf16.mxu1 %v2428_v51 }
0x123a   :  { %2176 = vmatpush3.bf16.msra.mxu1 %v2429_v52 }
0x123b   :  { %2177 = vmatprep.subr.bf16.mxu1 %v2430_v53 }
0x123e   :  { %2178 = vmatpush3.bf16.msra.mxu1 %v2431_v54 }
0x12f4   :  { %v1716_v5 = vpop.f32.mrb[48].mxu1 }
0x12f5   :  { %v1717_v6 = vadd.f32 %v1716_v5, %v1645_v2  ;;  %v1718_v8 = vpop.f32.mrb[49].mxu1 }
0x12f6   :  { %v1719_v9 = vadd.f32 %v1718_v8, %v1649_v4  ;;  %v1720_v12 = vpop.f32.mrb[50].mxu1 }
0x12f7   :  { %v1723_v13 = vmax.f32 %v1717_v6, 0.0  ;;  %v1721_v15 = vpop.f32.mrb[51].mxu1 }
0x12f8   :  { %v1724_v16 = vmax.f32 %v1719_v9, 0.0 }
0x12f9   :  { %v1725_v18 = vpack.c.bf16 %v1723_v13, %v1723_v13 }
0x12fa   :  { %v1726_v17 = vpack.c.bf16 %v1724_v16, %v1724_v16 }
0x12fc   :  { %1894 = vmatprep.mubr.bf16.mxu1 %v1726_v17 }
0x12fd   :  { %1895 = vmatmul.mubr.bf16.vlgmr.msra.gmra.mrb[52].mxu1 %v1725_v18 }
0x13d0   :  { %v2179_v21 = vpop.f32.mrb[52].mxu1 }
0x13d1   :  { %v2180_v22 = vpop.f32.mrb[53].mxu1 }
0x13d2   :  { %v2181_v23 = vadd.f32 %v2180_v22, %v2179_v21  ;;  %v2182_v24 = vpop.f32.mrb[54].mxu1 }
0x13d3   :  { %v2183_v14 = vpop.f32.mrb[55].mxu1 }
0x13d4   :  { %v1897_v25 = vadd.f32 %v2181_v23, %v2082_v10 }
0x13d6   :  { %v1902_v7 = vmax.f32 %v1897_v25, 0.0 }
0x13d8   :  { %v1903_v26 = vpack.c.bf16 %v1902_v7, %v1902_v7 }
0x13da   :  { %2367 = vmatmul.mubr.bf16.vlgmr.msra.gmra.mrb[44].mxu0 %v1903_v26 }
0x14ad   :  { %v2009_v0 = vpop.f32.mrb[44].mxu0 }
0x14ae   :  { %v2010_v28 = vadd.f32 %v2099_v27, %v2009_v0  ;;  %v2368_v29 = vpop.f32.mrb[45].mxu0 }
0x14af   :  { %v2012_v30 = vpop.f32.mrb[46].mxu0 }
0x14b0   :  { %2015 = vst [vmem:[#allocation19] sm:$0x3] %v2010_v28  ;;  %v2369_v31 = vpop.f32.mrb[47].mxu0 }
0x14b1   :  { %2711 = shalt.err (!%p2708_p0)
}
0x14b2   :  { %s3345_s22 = sld [smem:[#allocation31_spill]] }
0x14b8   :  { %s2712_s18 = scalar_lea.hbm %s3345_s22, 32 }
0x14b9   :  { %p2713_p1 = scmp.ne.s32.totalorder %s3345_s22, %s2712_s18  ;;  %p2716_p2 = scmp.lt.u32.totalorder %s2712_s18, %s3345_s22 }
0x14bb   :  { %p2718_p3 = pnand %p2716_p2, %p2713_p1 }
0x14bd   :  { %2721 = shalt.err (!%p2718_p3)
}
0x14be   :  { %2025 = dma.vmem_to_hbm [thread:$0]  %s2023_s26, 32, %s3345_s22, [#allocation4]  }
0x14bf   :  { %2734 = dma.done.wait [#allocation4], 32  }
0x14c0   :  { %2735 = vsyncadd [#allocation4], 4294967264 }
0x14c1   :  { %2029 = vsyncpa [#allocation3], 1 }
0x14c2   :  { %2030 = vsyncpa [#allocation6], 1 }
0x14c3   :  { %2031 = vsyncpa [#allocation9], 1 }
0x14c4   :  { %2032 = vsyncpa [#allocation12], 1 }
0x14c5   :  { %2033 = vsyncpa [#allocation15], 1 }
0x14c6   :  { %2034 = vsyncpa [#allocation18], 1 }
0x14c7   :  { %2035 = vsyncpa [#allocation4], 1 }

// kernel: tpu_custom_call.1
= control target key start
LH: loop header
LB: loop body
LE: loop exit
PB: predicated region body
PF: predicated region fallthrough
CT: control target
= control target key end

     0   :  { %s3313_s0 = inlined_call_operand.hbm [shape: f32[16,32], index: 0, kind: input, shape index: {}]   ;;  %s3314_s1 = inlined_call_operand.hbm [shape: bf16[32,96], index: 1, kind: input, shape index: {}]   ;;  %s3315_s2 = inlined_call_operand.hbm [shape: bf16[32,32], index: 2, kind: input, shape index: {}]   ;;  %s3316_s3 = inlined_call_operand.vmem [shape: f32[1,32], index: 3, kind: input, shape index: {}]   ;;  %s3317_s4 = inlined_call_operand.vmem [shape: f32[1,32], index: 4, kind: input, shape index: {}]   ;;  %s3318_s5 = inlined_call_operand.vmem [shape: f32[1,32], index: 5, kind: input, shape index: {}]   ;;  %s3319_s6 = inlined_call_operand.hbm [shape: bf16[32,128], index: 6, kind: input, shape index: {}]   ;;  %s3320_s7 = inlined_call_operand.hbm [shape: f32[1,128], index: 7, kind: input, shape index: {}]   ;;  %s3321_s8 = inlined_call_operand.vmem [shape: bf16[128,32], index: 8, kind: input, shape index: {}]   ;;  %s3322_s9 = inlined_call_operand.hbm [shape: f32[1,32], index: 9, kind: input, shape index: {}]   ;;  %s3323_s10 = inlined_call_operand.hbm [shape: f32[1,32], index: 10, kind: input, shape index: {}]   ;;  %s3324_s11 = inlined_call_operand.hbm [shape: f32[1,32], index: 11, kind: input, shape index: {}]   ;;  %s3325_s12 = inlined_call_operand.hbm [shape: bf16[32,256], index: 12, kind: input, shape index: {}]   ;;  %s3326_s13 = inlined_call_operand.vmem [shape: f32[1,256], index: 13, kind: input, shape index: {}]   ;;  %s3327_s14 = inlined_call_operand.vmem [shape: bf16[256,128], index: 14, kind: input, shape index: {}]   ;;  %s3328_s15 = inlined_call_operand.vmem [shape: f32[1,128], index: 15, kind: input, shape index: {}]   ;;  %s3329_s16 = inlined_call_operand.hbm [shape: bf16[128,128], index: 16, kind: input, shape index: {}]   ;;  %s3330_s17 = inlined_call_operand.vmem [shape: f32[1,128], index: 17, kind: input, shape index: {}]   ;;  %s3331_s18 = inlined_call_operand.hbm [shape: f32[2,128], index: 18, kind: output, shape index: {}]  }
   0x1   :  { %3336 = sst [smem:[#allocation27_spill]] %s3313_s0 }
   0x2   :  { %3337 = sst [smem:[#allocation28_spill]] %s3314_s1 }
   0x3   :  { %3338 = sst [smem:[#allocation29_spill]] %s3315_s2 }
   0x4   :  { %3339 = sst [smem:[#allocation30_spill]] %s3330_s17 }
   0x5   :  { %3340 = sst [smem:[#allocation31_spill]] %s3331_s18 }
   0x6   :  { %23 = vsyncpa [#allocation3], 0 }
   0x7   :  { %24 = vsyncpa [#allocation6], 0 }
   0x8   :  { %25 = vsyncpa [#allocation9], 0 }
   0x9   :  { %26 = vsyncpa [#allocation12], 0 }
   0xa   :  { %27 = vsyncpa [#allocation15], 0 }
   0xb   :  { %28 = vsyncpa [#allocation18], 0 }
   0xc   :  { %29 = vsyncpa [#allocation4], 0  ;;  %s2736_s27 = smov [#allocation5]   ;;  %s3341_s0 = sld [smem:[#allocation28_spill]] }
   0xd   :  { %s47_s28 = sshll.u32 %s2736_s27, 4  ;;  %s48_s28 = int_to_ptr.vmem [resolvable:$true] %s47_s28 }
  0x12   :  { %s2480_s19 = scalar_lea.hbm %s3341_s0, 256 }
  0x13   :  { %p2481_p0 = scmp.ne.s32.totalorder %s3341_s0, %s2480_s19  ;;  %p2484_p1 = scmp.lt.u32.totalorder %s2480_s19, %s3341_s0 }
  0x15   :  { %p2486_p2 = pnand %p2484_p1, %p2481_p0 }
  0x17   :  { %2489 = shalt.err (!%p2486_p2)
}
  0x18   :  { %s2490_s2 = scalar_lea.vmem %s48_s28, 256  ;;  %p2495_p4 = scmp.lt.s32.totalorder %s48_s28, %s48_s28 }
  0x19   :  { %p2491_p3 = scmp.ne.s32.totalorder %s48_s28, %s2490_s2  ;;  %p2496_p5 = scmp.lt.s32.totalorder %s2490_s2, %s2490_s2 }
  0x1b   :  { %p2497_p6 = por %p2496_p5, %p2495_p4 }
  0x1d   :  { %p2498_p7 = pnand %p2497_p6, %p2491_p3 }
  0x1f   :  { %2501 = shalt.err (!%p2498_p7)
}
  0x20   :  { %s2737_s23 = smov 64   ;;  %s2738_s24 = smov 4  }
  0x21   :  { %53 = dma.hbm_to_vmem [thread:$0]  %s3341_s0, 256, %s48_s28, [#allocation6], %s2737_s23, %s2737_s23, %s2738_s24  }
  0x22   :  { %s2739_s27 = smov [#allocation8]   ;;  %s2740_s30 = smov [#allocation11]  }
  0x23   :  { %s77_s29 = sshll.u32 %s2739_s27, 4  ;;  %s102_s19 = sshll.u32 %s2740_s30, 4  ;;  %s78_s29 = int_to_ptr.vmem [resolvable:$true] %s77_s29  ;;  %s103_s19 = int_to_ptr.vmem [resolvable:$true] %s102_s19 }
  0x24   :  { %s2502_s21 = scalar_lea.hbm %s3319_s6, 256 }
  0x25   :  { %p2503_p8 = scmp.ne.s32.totalorder %s3319_s6, %s2502_s21  ;;  %p2506_p9 = scmp.lt.u32.totalorder %s2502_s21, %s3319_s6 }
  0x27   :  { %p2508_p10 = pnand %p2506_p9, %p2503_p8 }
  0x29   :  { %2511 = shalt.err (!%p2508_p10)
}
  0x2a   :  { %s2512_s28 = scalar_lea.vmem %s78_s29, 256  ;;  %p2517_p12 = scmp.lt.s32.totalorder %s78_s29, %s78_s29 }
  0x2b   :  { %p2513_p11 = scmp.ne.s32.totalorder %s78_s29, %s2512_s28  ;;  %p2518_p13 = scmp.lt.s32.totalorder %s2512_s28, %s2512_s28 }
  0x2d   :  { %p2519_p0 = por %p2518_p13, %p2517_p12 }
  0x2f   :  { %p2520_p1 = pnand %p2519_p0, %p2513_p11 }
  0x31   :  { %2523 = shalt.err (!%p2520_p1)
}
  0x32   :  { %83 = dma.hbm_to_vmem [thread:$0]  %s3319_s6, 256, %s78_s29, [#allocation9], %s2737_s23, %s2737_s23, %s2738_s24  }
  0x33   :  { %s2524_s18 = scalar_lea.hbm %s3322_s9, 16 }
  0x34   :  { %p2525_p2 = scmp.ne.s32.totalorder %s3322_s9, %s2524_s18  ;;  %p2528_p3 = scmp.lt.u32.totalorder %s2524_s18, %s3322_s9 }
  0x36   :  { %p2530_p4 = pnand %p2528_p3, %p2525_p2 }
  0x38   :  { %2533 = shalt.err (!%p2530_p4)
}
  0x39   :  { %s2534_s21 = scalar_lea.vmem %s103_s19, 16  ;;  %s2538_s22 = scalar_lea.vmem %s103_s19, 32 }
  0x3a   :  { %p2535_p5 = scmp.ne.s32.totalorder %s103_s19, %s2534_s21  ;;  %p2539_p6 = scmp.lt.s32.totalorder %s103_s19, %s103_s19 }
  0x3b   :  { %p2540_p7 = scmp.lt.s32.totalorder %s2538_s22, %s2534_s21 }
  0x3d   :  { %p2541_p8 = por %p2540_p7, %p2539_p6 }
  0x3f   :  { %p2542_p9 = pnand %p2541_p8, %p2535_p5 }
  0x41   :  { %2545 = shalt.err (!%p2542_p9)
}
  0x42   :  { %105 = dma.hbm_to_vmem [thread:$0]  %s3322_s9, 16, %s103_s19, [#allocation12]  }
  0x43   :  { %s2741_s2 = smov [#allocation14]   ;;  %s2742_s0 = smov [#allocation2]  }
  0x44   :  { %s122_s28 = sshll.u32 %s2741_s2, 4  ;;  %s35_s25 = sshll.u32 %s2742_s0, 4  ;;  %s123_s28 = int_to_ptr.vmem [resolvable:$true] %s122_s28  ;;  %s36_s25 = int_to_ptr.vmem [resolvable:$true] %s35_s25 }
  0x45   :  { %s2546_s18 = scalar_lea.hbm %s3324_s11, 16 }
  0x46   :  { %p2547_p10 = scmp.ne.s32.totalorder %s3324_s11, %s2546_s18  ;;  %p2550_p11 = scmp.lt.u32.totalorder %s2546_s18, %s3324_s11 }
  0x48   :  { %p2552_p12 = pnand %p2550_p11, %p2547_p10 }
  0x4a   :  { %2555 = shalt.err (!%p2552_p12)
}
  0x4b   :  { %s2556_s9 = scalar_lea.vmem %s123_s28, 16  ;;  %s2560_s19 = scalar_lea.vmem %s123_s28, 32 }
  0x4c   :  { %p2557_p13 = scmp.ne.s32.totalorder %s123_s28, %s2556_s9  ;;  %p2561_p0 = scmp.lt.s32.totalorder %s123_s28, %s123_s28 }
  0x4d   :  { %p2562_p1 = scmp.lt.s32.totalorder %s2560_s19, %s2556_s9 }
  0x4f   :  { %p2563_p2 = por %p2562_p1, %p2561_p0 }
  0x51   :  { %p2564_p3 = pnand %p2563_p2, %p2557_p13 }
  0x53   :  { %2567 = shalt.err (!%p2564_p3)
}
  0x54   :  { %125 = dma.hbm_to_vmem [thread:$0]  %s3324_s11, 16, %s123_s28, [#allocation15]  }
  0x55   :  { %s3342_s2 = sld [smem:[#allocation27_spill]] }
  0x5b   :  { %s2568_s0 = scalar_lea.hbm %s3342_s2, 256 }
  0x5c   :  { %p2569_p4 = scmp.ne.s32.totalorder %s3342_s2, %s2568_s0  ;;  %p2572_p5 = scmp.lt.u32.totalorder %s2568_s0, %s3342_s2 }
  0x5e   :  { %p2574_p6 = pnand %p2572_p5, %p2569_p4 }
  0x60   :  { %2577 = shalt.err (!%p2574_p6)
}
  0x61   :  { %s2578_s30 = scalar_lea.vmem %s36_s25, 256  ;;  %p2583_p8 = scmp.lt.s32.totalorder %s36_s25, %s36_s25 }
  0x62   :  { %p2579_p7 = scmp.ne.s32.totalorder %s36_s25, %s2578_s30  ;;  %p2584_p9 = scmp.lt.s32.totalorder %s2578_s30, %s2578_s30 }
  0x64   :  { %p2585_p10 = por %p2584_p9, %p2583_p8 }
  0x66   :  { %p2586_p11 = pnand %p2585_p10, %p2579_p7 }
  0x68   :  { %2589 = shalt.err (!%p2586_p11)
}
  0x69   :  { %s2743_s11 = smov 128   ;;  %s2744_s28 = smov 8  }
  0x6a   :  { %41 = dma.hbm_to_vmem [thread:$0]  %s3342_s2, 256, %s36_s25, [#allocation3], %s2743_s11, %s2743_s11, %s2744_s28  }
  0x6b   :  { %s2745_s9 = smov [#allocation7]   ;;  %s2746_s21 = smov [#allocation10]  }
  0x6c   :  { %s59_s19 = sshll.u32 %s2745_s9, 4  ;;  %s90_s22 = sshll.u32 %s2746_s21, 4  ;;  %s60_s19 = int_to_ptr.vmem [resolvable:$true] %s59_s19  ;;  %s91_s22 = int_to_ptr.vmem [resolvable:$true] %s90_s22 }
  0x6d   :  { %s3343_s0 = sld [smem:[#allocation29_spill]] }
  0x73   :  { %s2590_s26 = scalar_lea.hbm %s3343_s0, 256 }
  0x74   :  { %p2591_p12 = scmp.ne.s32.totalorder %s3343_s0, %s2590_s26  ;;  %p2594_p13 = scmp.lt.u32.totalorder %s2590_s26, %s3343_s0 }
  0x76   :  { %p2596_p0 = pnand %p2594_p13, %p2591_p12 }
  0x78   :  { %2599 = shalt.err (!%p2596_p0)
}
  0x79   :  { %s2600_s25 = scalar_lea.vmem %s60_s19, 256  ;;  %p2605_p2 = scmp.lt.s32.totalorder %s60_s19, %s60_s19 }
  0x7a   :  { %p2601_p1 = scmp.ne.s32.totalorder %s60_s19, %s2600_s25  ;;  %p2606_p3 = scmp.lt.s32.totalorder %s2600_s25, %s2600_s25 }
  0x7c   :  { %p2607_p4 = por %p2606_p3, %p2605_p2 }
  0x7e   :  { %p2608_p5 = pnand %p2607_p4, %p2601_p1 }
  0x80   :  { %2611 = shalt.err (!%p2608_p5)
}
  0x81   :  { %65 = dma.hbm_to_vmem [thread:$0]  %s3343_s0, 256, %s60_s19, [#allocation6], %s2737_s23, %s2737_s23, %s2738_s24  }
  0x82   :  { %s2612_s21 = scalar_lea.hbm %s3320_s7, 16 }
  0x83   :  { %p2613_p6 = scmp.ne.s32.totalorder %s3320_s7, %s2612_s21  ;;  %p2616_p7 = scmp.lt.u32.totalorder %s2612_s21, %s3320_s7 }
  0x85   :  { %p2618_p8 = pnand %p2616_p7, %p2613_p6 }
  0x87   :  { %2621 = shalt.err (!%p2618_p8)
}
  0x88   :  { %s2622_s18 = scalar_lea.vmem %s91_s22, 16  ;;  %s2626_s27 = scalar_lea.vmem %s91_s22, 32 }
  0x89   :  { %p2623_p9 = scmp.ne.s32.totalorder %s91_s22, %s2622_s18  ;;  %p2627_p10 = scmp.lt.s32.totalorder %s91_s22, %s91_s22 }
  0x8a   :  { %p2628_p11 = scmp.lt.s32.totalorder %s2626_s27, %s2622_s18 }
  0x8c   :  { %p2629_p12 = por %p2628_p11, %p2627_p10 }
  0x8e   :  { %p2630_p13 = pnand %p2629_p12, %p2623_p9 }
  0x90   :  { %2633 = shalt.err (!%p2630_p13)
}
  0x91   :  { %93 = dma.hbm_to_vmem [thread:$0]  %s3320_s7, 16, %s91_s22, [#allocation9]  }
  0x92   :  { %s2747_s30 = smov [#allocation13]   ;;  %s2748_s2 = smov [#allocation16]  }
  0x93   :  { %s112_s25 = sshll.u32 %s2747_s30, 4  ;;  %s131_s1 = sshll.u32 %s2748_s2, 4  ;;  %s113_s25 = int_to_ptr.vmem [resolvable:$true] %s112_s25  ;;  %s132_s1 = int_to_ptr.vmem [resolvable:$true] %s131_s1 }
  0x94   :  { %s2634_s21 = scalar_lea.hbm %s3323_s10, 16 }
  0x95   :  { %p2635_p0 = scmp.ne.s32.totalorder %s3323_s10, %s2634_s21  ;;  %p2638_p1 = scmp.lt.u32.totalorder %s2634_s21, %s3323_s10 }
  0x97   :  { %p2640_p2 = pnand %p2638_p1, %p2635_p0 }
  0x99   :  { %2643 = shalt.err (!%p2640_p2)
}
  0x9a   :  { %s2644_s7 = scalar_lea.vmem %s113_s25, 16  ;;  %s2648_s22 = scalar_lea.vmem %s113_s25, 32 }
  0x9b   :  { %p2645_p3 = scmp.ne.s32.totalorder %s113_s25, %s2644_s7  ;;  %p2649_p4 = scmp.lt.s32.totalorder %s113_s25, %s113_s25 }
  0x9c   :  { %p2650_p5 = scmp.lt.s32.totalorder %s2648_s22, %s2644_s7 }
  0x9e   :  { %p2651_p6 = por %p2650_p5, %p2649_p4 }
  0xa0   :  { %p2652_p7 = pnand %p2651_p6, %p2645_p3 }
  0xa2   :  { %2655 = shalt.err (!%p2652_p7)
}
  0xa3   :  { %115 = dma.hbm_to_vmem [thread:$0]  %s3323_s10, 16, %s113_s25, [#allocation12]  }
  0xa4   :  { %s2656_s30 = scalar_lea.hbm %s3325_s12, 512 }
  0xa5   :  { %p2657_p8 = scmp.ne.s32.totalorder %s3325_s12, %s2656_s30  ;;  %p2660_p9 = scmp.lt.u32.totalorder %s2656_s30, %s3325_s12 }
  0xa7   :  { %p2662_p10 = pnand %p2660_p9, %p2657_p8 }
  0xa9   :  { %2665 = shalt.err (!%p2662_p10)
}
  0xaa   :  { %s2666_s6 = scalar_lea.vmem %s132_s1, 512  ;;  %p2671_p12 = scmp.lt.s32.totalorder %s132_s1, %s132_s1 }
  0xab   :  { %p2667_p11 = scmp.ne.s32.totalorder %s132_s1, %s2666_s6  ;;  %p2672_p13 = scmp.lt.s32.totalorder %s2666_s6, %s2666_s6 }
  0xad   :  { %p2673_p0 = por %p2672_p13, %p2671_p12 }
  0xaf   :  { %p2674_p1 = pnand %p2673_p0, %p2667_p11 }
  0xb1   :  { %2677 = shalt.err (!%p2674_p1)
}
  0xb2   :  { %137 = dma.hbm_to_vmem [thread:$0]  %s3325_s12, 512, %s132_s1, [#allocation15], %s2743_s11, %s2743_s11, %s2744_s28  }
  0xb3   :  { %s2749_s29 = smov [#allocation17]   ;;  %s2678_s22 = scalar_lea.hbm %s3329_s16, 1024 }
  0xb4   :  { %s149_s26 = sshll.u32 %s2749_s29, 4  ;;  %p2679_p2 = scmp.ne.s32.totalorder %s3329_s16, %s2678_s22  ;;  %s150_s26 = int_to_ptr.vmem [resolvable:$true] %s149_s26 }
  0xb5   :  { %p2682_p3 = scmp.lt.u32.totalorder %s2678_s22, %s3329_s16 }
  0xb7   :  { %p2684_p4 = pnand %p2682_p3, %p2679_p2 }
  0xb9   :  { %2687 = shalt.err (!%p2684_p4)
}
  0xba   :  { %s2688_s30 = scalar_lea.vmem %s150_s26, 1024  ;;  %p2693_p6 = scmp.lt.s32.totalorder %s150_s26, %s150_s26 }
  0xbb   :  { %p2689_p5 = scmp.ne.s32.totalorder %s150_s26, %s2688_s30  ;;  %p2694_p7 = scmp.lt.s32.totalorder %s2688_s30, %s2688_s30 }
  0xbd   :  { %p2695_p8 = por %p2694_p7, %p2693_p6 }
  0xbf   :  { %p2696_p9 = pnand %p2695_p8, %p2689_p5 }
  0xc1   :  { %2699 = shalt.err (!%p2696_p9)
}
  0xc2   :  { %155 = dma.hbm_to_vmem [thread:$0]  %s3329_s16, 1024, %s150_s26, [#allocation18], %s2737_s23, %s2737_s23, %s2738_s24  }
  0xc3   :  { %2722 = dma.done.wait [#allocation3], 256  }
  0xc4   :  { %2723 = vsyncadd [#allocation3], 4294967040 }
  0xc5   :  { %2724 = dma.done.wait [#allocation6], 512  }
  0xc6   :  { %2725 = vsyncadd [#allocation6], 4294966784 }
  0xc7   :  { %2726 = dma.done.wait [#allocation9], 272  }
  0xc8   :  { %2727 = vsyncadd [#allocation9], 4294967024 }
  0xc9   :  { %2728 = dma.done.wait [#allocation12], 32  }
  0xca   :  { %2729 = vsyncadd [#allocation12], 4294967264 }
  0xcb   :  { %2730 = dma.done.wait [#allocation15], 528  }
  0xcc   :  { %2731 = vsyncadd [#allocation15], 4294966768 }
  0xcd   :  { %2732 = dma.done.wait [#allocation18], 1024  }
  0xce   :  { %2733 = vsyncadd [#allocation18], 4294966272  ;;  %v2750_v0 = vmov 0.0   ;;  %vm2751_vm0 = vmmov 0   ;;  %v2398_v1 = vld [vmem:[#allocation5] sm:$0xff]   ;;  %v2399_v2 = vld [vmem:[#allocation5 + $0x8] sm:$0xff]  }
  0xcf   :  { %2194 = vmatprep.subr.bf16.mxu1 %v2750_v0  ;;  %2198 = vmatprep.mubr.msk.bf16.mxu1 %vm2751_vm0, %v2750_v0  ;;  %v3003_v3 = vld [vmem:[#allocation2] sm:$0xff]  ;;  %v3005_v4 = vld [vmem:[#allocation2 + $0x8] sm:$0xff]  ;;  %vm208_vm1 = vcmask 261120   ;;  %s2752_s16 = smov 96   ;;  %vm258_vm2 = vcmask 64512   ;;  %s2753_s24 = smov 88  }
  0xd0   :  { %2208 = vmatprep.subr.bf16.mxu0 %v2750_v0  ;;  %2210 = vmatprep.mubr.msk.bf16.mxu0 %vm2751_vm0, %v2750_v0  ;;  %v191_v5 = vpack.c.bf16 %v3005_v4, %v3003_v3  ;;  %vm383_vm3 = vcmask 1043456   ;;  %s2755_s28 = smov 56   ;;  %s2756_s1 = smov 112   ;;  %vm1656_vm4 = vcmask 1041409  }
  0xd1   :  { %2195 = vmatpush3.bf16.msra.mxu1 %v2398_v1  ;;  %s2757_s2 = smov 80   ;;  %s2758_s20 = smov 48  }
  0xd2   :  { %2196 = vmatprep.subr.bf16.mxu1 %v2750_v0  ;;  %s2759_s9 = smov 72   ;;  %s2760_s21 = smov 104  }
  0xd3   :  { %s2761_s6 = smov 40   ;;  %s2763_s29 = smov [#allocation19]  }
  0xd4   :  { %s2022_s26 = sshll.u32 %s2763_s29, 4  ;;  %s2023_s26 = int_to_ptr.vmem [resolvable:$true] %s2022_s26 }
  0xd5   :  { %2197 = vmatpush3.bf16.msra.mxu1 %v2399_v2  ;;  %p2705_p11 = scmp.lt.s32.totalorder %s2023_s26, %s2023_s26 }
  0xd6   :  { %2202 = vmatprep.subr.bf16.mxu1 %v2750_v0 }
  0xd8   :  { %2199 = vmatmul.mubr.msk.bf16.vlgmr.msra.gmra.mrb[0].mxu1 %vm208_vm1, %v191_v5 }
  0xd9   :  { %2204 = vmatprep.mubr.msk.bf16.mxu1 %vm2751_vm0, %v2750_v0 }
 0x1ab   :  { %v246_v6 = vpop.f32.mrb[0].mxu1 }
 0x1ac   :  { %v3014_v7 = vpack.c.bf16 %v246_v6, %v246_v6  ;;  %v2200_v8 = vpop.f32.mrb[1].mxu1 }
 0x1ad   :  { %v249_v9 = vpop.f32.mrb[2].mxu1 }
 0x1ae   :  { %256 = vrot.lane.b32.xlu0 %v3014_v7, %s2752_s16  ;;  %v2201_v10 = vpop.f32.mrb[3].mxu1  ;;  %v3017_v11 = vpack.c.bf16 %v249_v9, %v249_v9 }
 0x1b2   :  { %306 = vrot.lane.b32.xlu0 %v3017_v11, %s2752_s16 }
 0x220   :  { %v257_v12 = vpop.permute.xlu0 %256 }
 0x221   :  { %v263_v13 = vsel %vm258_vm2, %v257_v12, 0 }
 0x222   :  { %2203 = vmatpush3.bf16.xpose.msra.mxu1 %v263_v13 }
 0x223   :  { %2214 = vmatprep.subr.bf16.mxu1 %v2750_v0 }
 0x224   :  { %v307_v14 = vpop.permute.xlu0 %306 }
 0x225   :  { %v312_v15 = vsel %vm258_vm2, %v307_v14, 0 }
 0x226   :  { %2209 = vmatpush3.bf16.xpose.msra.mxu0 %v312_v15 }
 0x227   :  { %2220 = vmatprep.subr.bf16.mxu0 %v2750_v0 }
 0x229   :  { %2205 = vmatmul.mubr.msk.bf16.vlgmr.msra.gmra.mrb[4].mxu1 %vm258_vm2, %v3014_v7 }
 0x22a   :  { %2216 = vmatprep.mubr.msk.bf16.mxu1 %vm2751_vm0, %v2750_v0 }
 0x22d   :  { %2211 = vmatmul.mubr.msk.bf16.vlgmr.msra.gmra.mrb[0].mxu0 %vm258_vm2, %v3017_v11 }
 0x22e   :  { %2222 = vmatprep.mubr.msk.bf16.mxu0 %vm2751_vm0, %v2750_v0 }
 0x2fc   :  { %v299_v16 = vpop.f32.mrb[4].mxu1 }
 0x2fd   :  { %v2206_v17 = vpop.f32.mrb[5].mxu1  ;;  %v354_v18 = vsel %vm258_vm2, %v299_v16, -inf }
 0x2fe   :  { %355 = vmax.xlane.f32.xlu1 %v354_v18  ;;  %v302_v19 = vpop.f32.mrb[6].mxu1 }
 0x2ff   :  { %v2207_v20 = vpop.f32.mrb[7].mxu1 }
 0x300   :  { %v348_v21 = vpop.f32.mrb[0].mxu0 }
 0x301   :  { %v2212_v22 = vpop.f32.mrb[1].mxu0  ;;  %v357_v23 = vsel %vm258_vm2, %v348_v21, -inf }
 0x302   :  { %v351_v24 = vpop.f32.mrb[2].mxu0  ;;  %358 = vmax.xlane.f32.xlu1 %v357_v23 }
 0x303   :  { %v2213_v25 = vpop.f32.mrb[3].mxu0 }
 0x313   :  { %378 = vrot.lane.b32.xlu1 %v3014_v7, %s2737_s23 }
 0x317   :  { %427 = vrot.lane.b32.xlu1 %v3017_v11, %s2737_s23  ;;  %s2754_s23 = smov 120  }
 0x31b   :  { %479 = vrot.lane.b32.xlu1 %v3014_v7, %s2753_s24 }
 0x38b   :  { %v356_v26 = vpop.xlane.xlu1 %355 }
 0x38c   :  { %v360_v27 = vsub.f32 %v299_v16, %v356_v26 }
 0x38e   :  { %v362_v28 = vmul.f32 1.442695, %v360_v27 }
 0x38f   :  { %v359_v29 = vpop.xlane.xlu1 %358 }
 0x390   :  { %2440 = vpow2.f32 %v362_v28  ;;  %v361_v30 = vsub.f32 %v348_v21, %v359_v29 }
 0x392   :  { %v364_v31 = vmul.f32 1.442695, %v361_v30 }
 0x393   :  { %v379_v32 = vpop.permute.xlu1 %378 }
 0x394   :  { %2442 = vpow2.f32 %v364_v31  ;;  %v385_v33 = vsel %vm383_vm3, %v379_v32, 0  ;;  %v698_v31 = vld [vmem:[#allocation7 + $0x4] sm:$0xf] }
 0x395   :  { %2215 = vmatpush3.bf16.msra.mxu1 %v385_v33 }
 0x396   :  { %2226 = vmatprep.subr.bf16.mxu1 %v2750_v0 }
 0x397   :  { %v428_v34 = vpop.permute.xlu1 %427 }
 0x398   :  { %v433_v35 = vsel %vm383_vm3, %v428_v34, 0  ;;  %v703_v34 = vsel %vm383_vm3, %v698_v31, 0 }
 0x399   :  { %2221 = vmatpush3.bf16.msra.mxu0 %v433_v35 }
 0x39a   :  { %v2441_v36 = vpop.eup %2440  ;;  %2232 = vmatprep.subr.bf16.mxu0 %v2750_v0 }
 0x39b   :  { %v366_v37 = vsel %vm258_vm2, %v2441_v36, 0.0  ;;  %v480_v40 = vpop.permute.xlu1 %479 }
 0x39c   :  { %367 = vadd.xlane.f32.xlu0 %v366_v37  ;;  %v485_v47 = vsel %vm258_vm2, %v480_v40, 0 }
 0x39e   :  { %v2443_v38 = vpop.eup %2442 }
 0x39f   :  { %v369_v39 = vsel %vm258_vm2, %v2443_v38, 0.0 }
 0x3a0   :  { %370 = vadd.xlane.f32.xlu1 %v369_v39 }
 0x3b1   :  { %529 = vrot.lane.b32.xlu1 %v3017_v11, %s2753_s24 }
 0x3b2   :  { %477 = vrot.lane.b32.xlu0 %v3014_v7, %s2754_s23 }
 0x3b5   :  { %527 = vrot.lane.b32.xlu1 %v3017_v11, %s2754_s23 }
 0x429   :  { %v368_v41 = vpop.xlane.xlu0 %367 }
 0x42a   :  { %2444 = vrcp.f32 %v368_v41 }
 0x42d   :  { %v371_v42 = vpop.xlane.xlu1 %370  ;;  %v478_v52 = vpop.permute.xlu0 %477 }
 0x42e   :  { %2446 = vrcp.f32 %v371_v42 }
 0x431   :  { %v530_v49 = vpop.permute.xlu1 %529 }
 0x432   :  { %v535_v51 = vsel %vm258_vm2, %v530_v49, 0 }
 0x434   :  { %v2445_v43 = vpop.eup %2444 }
 0x435   :  { %v374_v44 = vmul.f32 %v2445_v43, %v2441_v36  ;;  %v528_v53 = vpop.permute.xlu1 %527  ;;  %v476_v36 = vld [vmem:[#allocation7] sm:$0xf] }
 0x436   :  { %v750_v39 = vsel %vm383_vm3, %v476_v36, 0 }
 0x437   :  { %v376_v45 = vpack.c.bf16 %v374_v44, %v374_v44 }
 0x438   :  { %v2447_v46 = vpop.eup %2446 }
 0x439   :  { %v375_v48 = vmul.f32 %v2447_v46, %v2443_v38  ;;  %2217 = vmatmul.mubr.msk.bf16.vlgmr.msra.gmra.mrb[8].mxu1 %vm258_vm2, %v376_v45 }
 0x43a   :  { %2227 = vmatpush3.bf16.xpose.msra.mxu1 %v485_v47  ;;  %2228 = vmatprep.mubr.msk.bf16.mxu1 %vm2751_vm0, %v2750_v0 }
 0x43b   :  { %v377_v50 = vpack.c.bf16 %v375_v48, %v375_v48  ;;  %2238 = vmatprep.subr.bf16.mxu1 %v2750_v0 }
 0x43d   :  { %2223 = vmatmul.mubr.msk.bf16.vlgmr.msra.gmra.mrb[4].mxu0 %vm258_vm2, %v377_v50 }
 0x43e   :  { %2233 = vmatpush3.bf16.xpose.msra.mxu0 %v535_v51  ;;  %2234 = vmatprep.mubr.msk.bf16.mxu0 %vm2751_vm0, %v2750_v0 }
 0x43f   :  { %2244 = vmatprep.subr.bf16.mxu0 %v2750_v0 }
 0x441   :  { %2229 = vmatmul.mubr.msk.bf16.vlgmr.msra.gmra.mrb[12].mxu1 %vm258_vm2, %v478_v52 }
 0x442   :  { %2240 = vmatprep.mubr.msk.bf16.mxu1 %vm2751_vm0, %v2750_v0 }
 0x445   :  { %2235 = vmatmul.mubr.msk.bf16.vlgmr.msra.gmra.mrb[8].mxu0 %vm258_vm2, %v528_v53 }
 0x446   :  { %2246 = vmatprep.mubr.msk.bf16.mxu0 %vm2751_vm0, %v2750_v0 }
 0x50c   :  { %v3064_v54 = vpop.f32.mrb[8].mxu1 }
 0x50d   :  { %v2218_v55 = vpop.f32.mrb[9].mxu1 }
 0x50e   :  { %v424_v56 = vpop.f32.mrb[10].mxu1 }
 0x50f   :  { %v2219_v57 = vpop.f32.mrb[11].mxu1 }
 0x510   :  { %v3066_v58 = vpop.f32.mrb[4].mxu0 }
 0x511   :  { %v475_v59 = vpack.c.bf16 %v3066_v58, %v3064_v54  ;;  %v2224_v60 = vpop.f32.mrb[5].mxu0 }
 0x512   :  { %v472_v61 = vpop.f32.mrb[6].mxu0 }
 0x513   :  { %v2225_v62 = vpop.f32.mrb[7].mxu0 }
 0x514   :  { %v521_v63 = vpop.f32.mrb[12].mxu1 }
 0x515   :  { %v2230_v1 = vpop.f32.mrb[13].mxu1  ;;  %v577_v2 = vsel %vm258_vm2, %v521_v63, -inf }
 0x516   :  { %578 = vmax.xlane.f32.xlu1 %v577_v2  ;;  %v524_v5 = vpop.f32.mrb[14].mxu1 }
 0x517   :  { %v2231_v6 = vpop.f32.mrb[15].mxu1 }
 0x518   :  { %v571_v8 = vpop.f32.mrb[8].mxu0 }
 0x519   :  { %v2236_v9 = vpop.f32.mrb[9].mxu0  ;;  %v580_v10 = vsel %vm258_vm2, %v571_v8, -inf }
 0x51a   :  { %581 = vmax.xlane.f32.xlu0 %v580_v10  ;;  %v574_v12 = vpop.f32.mrb[10].mxu0 }
 0x51b   :  { %v2237_v13 = vpop.f32.mrb[11].mxu0 }
 0x530   :  { %649 = vrot.lane.b32.xlu0 %v3017_v11, %s2755_s28 }
 0x534   :  { %793 = vrot.lane.b32.xlu0 %v3014_v7, %s2756_s1 }
 0x5a3   :  { %v579_v14 = vpop.xlane.xlu1 %578 }
 0x5a4   :  { %v583_v15 = vsub.f32 %v521_v63, %v579_v14 }
 0x5a6   :  { %v585_v16 = vmul.f32 1.442695, %v583_v15 }
 0x5a7   :  { %v582_v17 = vpop.xlane.xlu0 %581 }
 0x5a8   :  { %2448 = vpow2.f32 %v585_v16  ;;  %v584_v18 = vsub.f32 %v571_v8, %v582_v17 }
 0x5aa   :  { %v587_v19 = vmul.f32 1.442695, %v584_v18 }
 0x5ab   :  { %v650_v20 = vpop.permute.xlu0 %649 }
 0x5ac   :  { %2450 = vpow2.f32 %v587_v19  ;;  %v655_v21 = vsel %vm383_vm3, %v650_v20, 0 }
 0x5ad   :  { %2245 = vmatpush3.bf16.msra.mxu0 %v655_v21 }
 0x5ae   :  { %2256 = vmatprep.subr.bf16.mxu0 %v2750_v0 }
 0x5af   :  { %v794_v56 = vpop.permute.xlu0 %793 }
 0x5b2   :  { %v2449_v22 = vpop.eup %2448 }
 0x5b3   :  { %v589_v23 = vsel %vm258_vm2, %v2449_v22, 0.0 }
 0x5b4   :  { %590 = vadd.xlane.f32.xlu1 %v589_v23 }
 0x5b6   :  { %v2451_v24 = vpop.eup %2450 }
 0x5b7   :  { %v592_v25 = vsel %vm258_vm2, %v2451_v24, 0.0 }
 0x5b8   :  { %593 = vadd.xlane.f32.xlu1 %v592_v25 }
 0x5c9   :  { %601 = vrot.lane.b32.xlu1 %v3014_v7, %s2755_s28 }
 0x5cd   :  { %795 = vrot.lane.b32.xlu1 %v3014_v7, %s2757_s2 }
 0x5d1   :  { %845 = vrot.lane.b32.xlu1 %v3017_v11, %s2757_s2 }
 0x5d5   :  { %843 = vrot.lane.b32.xlu1 %v3017_v11, %s2756_s1 }
 0x641   :  { %v591_v26 = vpop.xlane.xlu1 %590 }
 0x642   :  { %2452 = vrcp.f32 %v591_v26 }
 0x645   :  { %v594_v27 = vpop.xlane.xlu1 %593 }
 0x646   :  { %2454 = vrcp.f32 %v594_v27 }
 0x649   :  { %v602_v28 = vpop.permute.xlu1 %601 }
 0x64a   :  { %v607_v29 = vsel %vm383_vm3, %v602_v28, 0 }
 0x64b   :  { %2239 = vmatpush3.bf16.msra.mxu1 %v607_v29 }
 0x64c   :  { %v2453_v30 = vpop.eup %2452  ;;  %2250 = vmatprep.subr.bf16.mxu1 %v2750_v0 }
 0x64d   :  { %v597_v32 = vmul.f32 %v2453_v30, %v2449_v22  ;;  %v796_v40 = vpop.permute.xlu1 %795 }
 0x64e   :  { %v801_v52 = vsel %vm258_vm2, %v796_v40, 0 }
 0x64f   :  { %v599_v33 = vpack.c.bf16 %v597_v32, %v597_v32 }
 0x650   :  { %v2455_v35 = vpop.eup %2454 }
 0x651   :  { %v598_v37 = vmul.f32 %v2455_v35, %v2451_v24  ;;  %2241 = vmatmul.mubr.msk.bf16.vlgmr.msra.gmra.mrb[16].mxu1 %vm258_vm2, %v599_v33  ;;  %v846_v41 = vpop.permute.xlu1 %845 }
 0x652   :  { %2251 = vmatpush3.bf16.msra.mxu1 %v703_v34  ;;  %2252 = vmatprep.mubr.msk.bf16.mxu1 %vm2751_vm0, %v2750_v0  ;;  %v851_v42 = vsel %vm258_vm2, %v846_v41, 0  ;;  %v1014_v41 = vld [vmem:[#allocation7 + $0x8] sm:$0xf] }
 0x653   :  { %v600_v38 = vpack.c.bf16 %v598_v37, %v598_v37  ;;  %2262 = vmatprep.subr.bf16.mxu1 %v2750_v0 }
 0x655   :  { %2247 = vmatmul.mubr.msk.bf16.vlgmr.msra.gmra.mrb[12].mxu0 %vm258_vm2, %v600_v38  ;;  %v844_v43 = vpop.permute.xlu1 %843 }
 0x656   :  { %2257 = vmatpush3.bf16.msra.mxu0 %v750_v39  ;;  %2258 = vmatprep.mubr.msk.bf16.mxu0 %vm2751_vm0, %v2750_v0 }
 0x657   :  { %2268 = vmatprep.subr.bf16.mxu0 %v2750_v0 }
 0x65d   :  { %2259 = vmatmul.mubr.msk.bf16.vlgmr.msra.gmra.mrb[16].mxu0 %vm258_vm2, %v475_v59 }
 0x65e   :  { %2270 = vmatprep.mubr.msk.bf16.mxu0 %vm2751_vm0, %v2750_v0 }
 0x65f   :  { %2269 = vmatpush3.bf16.xpose.msra.mxu0 %v851_v42  ;;  %v1019_v42 = vsel %vm383_vm3, %v1014_v41, 0 }
 0x660   :  { %2280 = vmatprep.subr.bf16.mxu0 %v2750_v0 }
 0x666   :  { %2271 = vmatmul.mubr.msk.bf16.vlgmr.msra.gmra.mrb[20].mxu0 %vm258_vm2, %v844_v43 }
 0x667   :  { %2282 = vmatprep.mubr.msk.bf16.mxu0 %vm2751_vm0, %v2750_v0 }
 0x724   :  { %v643_v44 = vpop.f32.mrb[16].mxu1 }
 0x725   :  { %v2242_v45 = vpop.f32.mrb[17].mxu1 }
 0x726   :  { %v646_v46 = vpop.f32.mrb[18].mxu1 }
 0x727   :  { %v2243_v47 = vpop.f32.mrb[19].mxu1 }
 0x728   :  { %v691_v48 = vpop.f32.mrb[12].mxu0 }
 0x729   :  { %v697_v49 = vpack.c.bf16 %v691_v48, %v643_v44  ;;  %v2248_v50 = vpop.f32.mrb[13].mxu0 }
 0x72a   :  { %v694_v51 = vpop.f32.mrb[14].mxu0 }
 0x72b   :  { %v2249_v53 = vpop.f32.mrb[15].mxu0  ;;  %2253 = vmatmul.mubr.msk.bf16.vlgmr.msra.gmra.mrb[20].mxu1 %vm258_vm2, %v697_v49 }
 0x72c   :  { %2263 = vmatpush3.bf16.xpose.msra.mxu1 %v801_v52  ;;  %2264 = vmatprep.mubr.msk.bf16.mxu1 %vm2751_vm0, %v2750_v0 }
 0x72d   :  { %2274 = vmatprep.subr.bf16.mxu1 %v2750_v0 }
 0x730   :  { %v786_v54 = vpop.f32.mrb[16].mxu0 }
 0x731   :  { %v2260_v55 = vpop.f32.mrb[17].mxu0 }
 0x732   :  { %v789_v57 = vpop.f32.mrb[18].mxu0 }
 0x733   :  { %v2261_v58 = vpop.f32.mrb[19].mxu0  ;;  %2265 = vmatmul.mubr.msk.bf16.vlgmr.msra.gmra.mrb[24].mxu1 %vm258_vm2, %v794_v56 }
 0x734   :  { %2276 = vmatprep.mubr.msk.bf16.mxu1 %vm2751_vm0, %v2750_v0 }
 0x739   :  { %v887_v59 = vpop.f32.mrb[20].mxu0 }
 0x73a   :  { %v2272_v60 = vpop.f32.mrb[21].mxu0  ;;  %v896_v61 = vsel %vm258_vm2, %v887_v59, -inf }
 0x73b   :  { %897 = vmax.xlane.f32.xlu1 %v896_v61  ;;  %v890_v62 = vpop.f32.mrb[22].mxu0 }
 0x73c   :  { %v2273_v63 = vpop.f32.mrb[23].mxu0 }
 0x74c   :  { %917 = vrot.lane.b32.xlu1 %v3014_v7, %s2758_s20 }
 0x750   :  { %1066 = vrot.lane.b32.xlu1 %v3014_v7, %s2759_s9 }
 0x754   :  { %1116 = vrot.lane.b32.xlu1 %v3017_v11, %s2759_s9 }
 0x758   :  { %1114 = vrot.lane.b32.xlu1 %v3017_v11, %s2760_s21 }
 0x7c8   :  { %v898_v1 = vpop.xlane.xlu1 %897 }
 0x7c9   :  { %v900_v6 = vsub.f32 %v887_v59, %v898_v1 }
 0x7cb   :  { %v903_v8 = vmul.f32 1.442695, %v900_v6 }
 0x7cc   :  { %v918_v2 = vpop.permute.xlu1 %917 }
 0x7cd   :  { %v923_v5 = vsel %vm383_vm3, %v918_v2, 0  ;;  %2456 = vpow2.f32 %v903_v8 }
 0x7ce   :  { %2275 = vmatpush3.bf16.msra.mxu1 %v923_v5 }
 0x7cf   :  { %2286 = vmatprep.subr.bf16.mxu1 %v2750_v0 }
 0x7d0   :  { %v1067_v36 = vpop.permute.xlu1 %1066 }
 0x7d1   :  { %v1072_v38 = vsel %vm258_vm2, %v1067_v36, 0 }
 0x7d4   :  { %v1117_v47 = vpop.permute.xlu1 %1116 }
 0x7d5   :  { %v1122_v52 = vsel %vm258_vm2, %v1117_v47, 0 }
 0x7d7   :  { %v2457_v19 = vpop.eup %2456 }
 0x7d8   :  { %v908_v22 = vsel %vm258_vm2, %v2457_v19, 0.0  ;;  %v1115_v59 = vpop.permute.xlu1 %1114 }
 0x7fe   :  { %v739_v9 = vpop.f32.mrb[20].mxu1 }
 0x7ff   :  { %v3122_v10 = vadd.f32 %v786_v54, %v739_v9  ;;  %v2254_v12 = vpop.f32.mrb[21].mxu1 }
 0x800   :  { %v742_v13 = vpop.f32.mrb[22].mxu1 }
 0x801   :  { %v3124_v14 = vadd.f32 %v789_v57, %v742_v13  ;;  %v2255_v15 = vpop.f32.mrb[23].mxu1 }
 0x806   :  { %v837_v16 = vpop.f32.mrb[24].mxu1 }
 0x807   :  { %v2266_v17 = vpop.f32.mrb[25].mxu1  ;;  %v893_v18 = vsel %vm258_vm2, %v837_v16, -inf }
 0x808   :  { %894 = vmax.xlane.f32.xlu0 %v893_v18  ;;  %v840_v20 = vpop.f32.mrb[26].mxu1 }
 0x809   :  { %v2267_v21 = vpop.f32.mrb[27].mxu1 }
 0x80c   :  { %909 = vadd.xlane.f32.xlu0 %v908_v22 }
 0x895   :  { %v895_v23 = vpop.xlane.xlu0 %894 }
 0x896   :  { %v899_v24 = vsub.f32 %v837_v16, %v895_v23 }
 0x898   :  { %v901_v25 = vmul.f32 1.442695, %v899_v24 }
 0x899   :  { %v910_v28 = vpop.xlane.xlu0 %909 }
 0x89a   :  { %2458 = vpow2.f32 %v901_v25 }
 0x89b   :  { %2460 = vrcp.f32 %v910_v28 }
 0x8a4   :  { %v2459_v26 = vpop.eup %2458 }
 0x8a5   :  { %v905_v27 = vsel %vm258_vm2, %v2459_v26, 0.0  ;;  %v2461_v29 = vpop.eup %2460 }
 0x8a6   :  { %906 = vadd.xlane.f32.xlu0 %v905_v27  ;;  %v914_v31 = vmul.f32 %v2461_v29, %v2457_v19  ;;  %v1285_v27 = vld [vmem:[#allocation7 + $0xc] sm:$0xf] }
 0x8a7   :  { %v1290_v28 = vsel %vm383_vm3, %v1285_v27, 0 }
 0x8a8   :  { %v916_v34 = vpack.c.bf16 %v914_v31, %v914_v31 }
 0x8bc   :  { %965 = vrot.lane.b32.xlu0 %v3017_v11, %s2758_s20 }
 0x8c0   :  { %1064 = vrot.lane.b32.xlu0 %v3014_v7, %s2760_s21 }
 0x933   :  { %v907_v30 = vpop.xlane.xlu0 %906 }
 0x934   :  { %2462 = vrcp.f32 %v907_v30 }
 0x937   :  { %v966_v32 = vpop.permute.xlu0 %965 }
 0x938   :  { %v971_v33 = vsel %vm383_vm3, %v966_v32, 0 }
 0x939   :  { %2281 = vmatpush3.bf16.msra.mxu0 %v971_v33 }
 0x93a   :  { %2292 = vmatprep.subr.bf16.mxu0 %v2750_v0 }
 0x93b   :  { %v1065_v40 = vpop.permute.xlu0 %1064 }
 0x93c   :  { %2283 = vmatmul.mubr.msk.bf16.vlgmr.msra.gmra.mrb[24].mxu0 %vm258_vm2, %v916_v34 }
 0x93d   :  { %2294 = vmatprep.mubr.msk.bf16.mxu0 %vm2751_vm0, %v2750_v0 }
 0x93e   :  { %v2463_v35 = vpop.eup %2462 }
 0x93f   :  { %v913_v37 = vmul.f32 %v2463_v35, %v2459_v26 }
 0x941   :  { %v915_v39 = vpack.c.bf16 %v913_v37, %v913_v37 }
 0x942   :  { %2293 = vmatpush3.bf16.xpose.msra.mxu0 %v1072_v38 }
 0x943   :  { %2277 = vmatmul.mubr.msk.bf16.vlgmr.msra.gmra.mrb[28].mxu1 %vm258_vm2, %v915_v39  ;;  %2304 = vmatprep.subr.bf16.mxu0 %v2750_v0 }
 0x944   :  { %2288 = vmatprep.mubr.msk.bf16.mxu1 %vm2751_vm0, %v2750_v0  ;;  %2287 = vmatpush3.bf16.msra.mxu1 %v1019_v42 }
 0x945   :  { %2298 = vmatprep.subr.bf16.mxu1 %v2750_v0 }
 0x949   :  { %2295 = vmatmul.mubr.msk.bf16.vlgmr.msra.gmra.mrb[28].mxu0 %vm258_vm2, %v1065_v40 }
 0x94a   :  { %2306 = vmatprep.mubr.msk.bf16.mxu0 %vm2751_vm0, %v2750_v0 }
 0xa0f   :  { %v1007_v43 = vpop.f32.mrb[24].mxu0 }
 0xa10   :  { %v2284_v44 = vpop.f32.mrb[25].mxu0 }
 0xa11   :  { %v1010_v45 = vpop.f32.mrb[26].mxu0  ;;  %v2059_v44 = vld [vmem:[%s3316_s3] ss:$0 sm:$0xff]  ;;  %s3344_s3 = sld [smem:[#allocation30_spill]] }
 0xa12   :  { %v2285_v46 = vpop.f32.mrb[27].mxu0 }
 0xa16   :  { %v959_v48 = vpop.f32.mrb[28].mxu1 }
 0xa17   :  { %v1013_v49 = vpack.c.bf16 %v1007_v43, %v959_v48  ;;  %v2278_v50 = vpop.f32.mrb[29].mxu1 }
 0xa18   :  { %v962_v51 = vpop.f32.mrb[30].mxu1 }
 0xa19   :  { %v2279_v53 = vpop.f32.mrb[31].mxu1  ;;  %2289 = vmatmul.mubr.msk.bf16.vlgmr.msra.gmra.mrb[32].mxu1 %vm258_vm2, %v1013_v49 }
 0xa1a   :  { %2299 = vmatpush3.bf16.xpose.msra.mxu1 %v1122_v52  ;;  %2300 = vmatprep.mubr.msk.bf16.mxu1 %vm2751_vm0, %v2750_v0 }
 0xa1b   :  { %2310 = vmatprep.subr.bf16.mxu1 %v2750_v0 }
 0xa1c   :  { %v1108_v54 = vpop.f32.mrb[28].mxu0 }
 0xa1d   :  { %v2296_v55 = vpop.f32.mrb[29].mxu0  ;;  %v1164_v56 = vsel %vm258_vm2, %v1108_v54, -inf }
 0xa1e   :  { %1165 = vmax.xlane.f32.xlu0 %v1164_v56  ;;  %v1111_v57 = vpop.f32.mrb[30].mxu0 }
 0xa1f   :  { %v2297_v58 = vpop.f32.mrb[31].mxu0 }
 0xa21   :  { %2301 = vmatmul.mubr.msk.bf16.vlgmr.msra.gmra.mrb[36].mxu1 %vm258_vm2, %v1115_v59 }
 0xa22   :  { %2312 = vmatprep.mubr.msk.bf16.mxu1 %vm2751_vm0, %v2750_v0 }
 0xaab   :  { %v1166_v60 = vpop.xlane.xlu0 %1165 }
 0xaac   :  { %v1170_v61 = vsub.f32 %v1108_v54, %v1166_v60 }
 0xaae   :  { %v1172_v62 = vmul.f32 1.442695, %v1170_v61 }
 0xab0   :  { %2464 = vpow2.f32 %v1172_v62 }
 0xaba   :  { %v2465_v63 = vpop.eup %2464 }
 0xabb   :  { %v1176_v1 = vsel %vm258_vm2, %v2465_v63, 0.0 }
 0xabc   :  { %1177 = vadd.xlane.f32.xlu0 %v1176_v1 }
 0xaec   :  { %v1055_v2 = vpop.f32.mrb[32].mxu1 }
 0xaed   :  { %v1062_v5 = vadd.f32 %v1055_v2, %v3122_v10  ;;  %v2290_v6 = vpop.f32.mrb[33].mxu1  ;;  %v2400_v2 = vld [vmem:[#allocation8] sm:$0xff]  }
 0xaee   :  { %v1058_v8 = vpop.f32.mrb[34].mxu1  ;;  %v2403_v6 = vld [vmem:[%s3321_s8 + $0x8] sm:$0xff]  }
 0xaef   :  { %v1063_v9 = vadd.f32 %v1058_v8, %v3124_v14  ;;  %v2291_v12 = vpop.f32.mrb[35].mxu1  ;;  %v2404_v8 = vld [vmem:[%s3321_s8 + $0x10] sm:$0xff]  }
 0xaf0   :  { %v2406_v12 = vld [vmem:[%s3321_s8 + $0x20] sm:$0xff]  }
 0xaf4   :  { %v1158_v13 = vpop.f32.mrb[36].mxu1 }
 0xaf5   :  { %v2302_v15 = vpop.f32.mrb[37].mxu1  ;;  %v1167_v16 = vsel %vm258_vm2, %v1158_v13, -inf }
 0xaf6   :  { %1168 = vmax.xlane.f32.xlu1 %v1167_v16  ;;  %v1161_v17 = vpop.f32.mrb[38].mxu1 }
 0xaf7   :  { %v2303_v18 = vpop.f32.mrb[39].mxu1 }
 0xb07   :  { %1188 = vrot.lane.b32.xlu1 %v3014_v7, %s2761_s6 }
 0xb49   :  { %v1178_v19 = vpop.xlane.xlu0 %1177 }
 0xb4a   :  { %2466 = vrcp.f32 %v1178_v19 }
 0xb54   :  { %v2467_v20 = vpop.eup %2466 }
 0xb55   :  { %v1184_v22 = vmul.f32 %v2467_v20, %v2465_v63 }
 0xb57   :  { %v1186_v25 = vpack.c.bf16 %v1184_v22, %v1184_v22 }
 0xb83   :  { %v1169_v21 = vpop.xlane.xlu1 %1168 }
 0xb84   :  { %v1171_v10 = vsub.f32 %v1158_v13, %v1169_v21  ;;  %v2407_v13 = vld [vmem:[%s3321_s8 + $0x28] sm:$0xff]  }
 0xb86   :  { %v1174_v23 = vmul.f32 1.442695, %v1171_v10  ;;  %v2060_v10 = vld [vmem:[%s3317_s4] ss:$0 sm:$0xff] }
 0xb87   :  { %v1189_v24 = vpop.permute.xlu1 %1188 }
 0xb88   :  { %2468 = vpow2.f32 %v1174_v23  ;;  %v1194_v14 = vsel %vm383_vm3, %v1189_v24, 0 }
 0xb89   :  { %2305 = vmatpush3.bf16.msra.mxu0 %v1194_v14 }
 0xb8a   :  { %2316 = vmatprep.subr.bf16.mxu0 %v2750_v0 }
 0xb8c   :  { %2307 = vmatmul.mubr.msk.bf16.vlgmr.msra.gmra.mrb[32].mxu0 %vm258_vm2, %v1186_v25  ;;  %v2061_v25 = vld [vmem:[%s3318_s5] ss:$0 sm:$0xff] }
 0xb8d   :  { %2318 = vmatprep.mubr.msk.bf16.mxu0 %vm2751_vm0, %v2750_v0  ;;  %2317 = vmatpush3.bf16.msra.mxu0 %v1290_v28 }
 0xb8e   :  { %2330 = vmatprep.subr.bf16.mxu0 %v2750_v0 }
 0xb92   :  { %v2469_v7 = vpop.eup %2468 }
 0xb93   :  { %v1179_v26 = vsel %vm258_vm2, %v2469_v7, 0.0 }
 0xb94   :  { %1180 = vadd.xlane.f32.xlu0 %v1179_v26 }
 0xbaa   :  { %1236 = vrot.lane.b32.xlu0 %v3017_v11, %s2761_s6 }
 0xc21   :  { %v1181_v29 = vpop.xlane.xlu0 %1180 }
 0xc22   :  { %2470 = vrcp.f32 %v1181_v29  ;;  %v2408_v29 = vld [vmem:[%s3321_s8 + $0x30] sm:$0xff]  }
 0xc25   :  { %v1237_v30 = vpop.permute.xlu0 %1236 }
 0xc26   :  { %v1242_v31 = vsel %vm383_vm3, %v1237_v30, 0  ;;  %v2409_v30 = vld [vmem:[%s3321_s8 + $0x38] sm:$0xff]  }
 0xc27   :  { %2311 = vmatpush3.bf16.msra.mxu1 %v1242_v31  ;;  %v2062_v31 = vld [vmem:[#allocation10] ss:$0 sm:$0xff] }
 0xc28   :  { %2322 = vmatprep.subr.bf16.mxu1 %v2750_v0 }
 0xc2c   :  { %v2471_v32 = vpop.eup %2470 }
 0xc2d   :  { %v1185_v33 = vmul.f32 %v2471_v32, %v2469_v7 }
 0xc2f   :  { %v1187_v34 = vpack.c.bf16 %v1185_v33, %v1185_v33 }
 0xc31   :  { %2313 = vmatmul.mubr.msk.bf16.vlgmr.msra.gmra.mrb[40].mxu1 %vm258_vm2, %v1187_v34 }
 0xc32   :  { %2326 = vmatprep.mubr.msk.bf16.mxu1 %vm2751_vm0, %v2750_v0  ;;  %2323 = vmatpush3.bf16.msra.mxu1 %v2400_v2  ;;  %v2416_v2 = vld [vmem:[%s3327_s14 + $0x40] sm:$0xff]  }
 0xc33   :  { %2324 = vmatprep.subr.bf16.mxu1 %v2750_v0 }
 0xc5f   :  { %v1230_v11 = vpop.f32.mrb[32].mxu0 }
 0xc60   :  { %v2308_v35 = vpop.f32.mrb[33].mxu0 }
 0xc61   :  { %v1233_v36 = vpop.f32.mrb[34].mxu0 }
 0xc62   :  { %v2309_v37 = vpop.f32.mrb[35].mxu0 }
 0xd04   :  { %v1278_v38 = vpop.f32.mrb[40].mxu1 }
 0xd05   :  { %v1284_v39 = vpack.c.bf16 %v1278_v38, %v1230_v11  ;;  %v2314_v40 = vpop.f32.mrb[41].mxu1 }
 0xd06   :  { %v1281_v41 = vpop.f32.mrb[42].mxu1  ;;  %v2066_v40 = vld [vmem:[#allocation11] ss:$0 sm:$0xff] }
 0xd07   :  { %v2315_v42 = vpop.f32.mrb[43].mxu1  ;;  %2319 = vmatmul.mubr.msk.bf16.vlgmr.msra.gmra.mrb[36].mxu0 %vm258_vm2, %v1284_v39 }
 0xd08   :  { %2346 = vmatprep.mubr.msk.bf16.mxu0 %vm2751_vm0, %v2750_v0 }
 0xdda   :  { %v1326_v43 = vpop.f32.mrb[36].mxu0 }
 0xddb   :  { %v1333_v45 = vadd.f32 %v1326_v43, %v1062_v5  ;;  %v2320_v46 = vpop.f32.mrb[37].mxu0  ;;  %v2402_v5 = vld [vmem:[%s3321_s8] sm:$0xff]  }
 0xddc   :  { %v1329_v47 = vpop.f32.mrb[38].mxu0  ;;  %2331 = vmatpush3.bf16.msra.mxu0 %v2402_v5 }
 0xddd   :  { %v1342_v48 = vadd.f32 %v2059_v44, %v1333_v45  ;;  %v1334_v49 = vadd.f32 %v1329_v47, %v1063_v9  ;;  %v2321_v50 = vpop.f32.mrb[39].mxu0  ;;  %2332 = vmatprep.subr.bf16.mxu0 %v2750_v0  ;;  %v2405_v9 = vld [vmem:[%s3321_s8 + $0x18] sm:$0xff]  }
 0xddf   :  { %v1343_v51 = vadd.f32 %v2059_v44, %v1334_v49  ;;  %v1344_v52 = vadd.f32 %v1342_v48, %v3003_v3 }
 0xde0   :  { %2333 = vmatpush3.bf16.msra.mxu0 %v2403_v6 }
 0xde1   :  { %v1348_v53 = vsel %vm208_vm1, %v1344_v52, 0.0  ;;  %v1345_v54 = vadd.f32 %v1343_v51, %v3005_v4  ;;  %v2401_v4 = vld [vmem:[#allocation8 + $0x8] sm:$0xff]   ;;  %2334 = vmatprep.subr.bf16.mxu0 %v2750_v0 }
 0xde2   :  { %1349 = vadd.xlane.f32.xlu1 %v1348_v53  ;;  %2325 = vmatpush3.bf16.msra.mxu1 %v2401_v4 }
 0xde3   :  { %v1351_v55 = vsel %vm208_vm1, %v1345_v54, 0.0 }
 0xde4   :  { %1352 = vadd.xlane.f32.xlu0 %v1351_v55  ;;  %2335 = vmatpush3.bf16.msra.mxu0 %v2404_v8 }
 0xde5   :  { %2336 = vmatprep.subr.bf16.mxu0 %v2750_v0 }
 0xde8   :  { %2337 = vmatpush3.bf16.msra.mxu0 %v2405_v9 }
 0xde9   :  { %2338 = vmatprep.subr.bf16.mxu0 %v2750_v0 }
 0xdec   :  { %2339 = vmatpush3.bf16.msra.mxu0 %v2406_v12 }
 0xded   :  { %2340 = vmatprep.subr.bf16.mxu0 %v2750_v0 }
 0xdf0   :  { %2341 = vmatpush3.bf16.msra.mxu0 %v2407_v13 }
 0xdf1   :  { %2342 = vmatprep.subr.bf16.mxu0 %v2750_v0 }
 0xdf4   :  { %2343 = vmatpush3.bf16.msra.mxu0 %v2408_v29 }
 0xdf5   :  { %2344 = vmatprep.subr.bf16.mxu0 %v2750_v0 }
 0xdf8   :  { %2345 = vmatpush3.bf16.msra.mxu0 %v2409_v30 }
 0xdf9   :  { %2350 = vmatprep.subr.bf16.mxu0 %v2750_v0 }
 0xe6f   :  { %v1350_v56 = vpop.xlane.xlu1 %1349 }
 0xe70   :  { %v1355_v57 = vmul.f32 0.03125, %v1350_v56 }
 0xe71   :  { %v1353_v58 = vpop.xlane.xlu0 %1352 }
 0xe72   :  { %v1357_v59 = vsub.f32 %v1344_v52, %v1355_v57  ;;  %v1356_v60 = vmul.f32 0.03125, %v1353_v58 }
 0xe74   :  { %v1358_v61 = vsub.f32 %v1345_v54, %v1356_v60  ;;  %v1359_v62 = vmul.f32 %v1357_v59, %v1357_v59 }
 0xe76   :  { %v1361_v63 = vsel %vm208_vm1, %v1359_v62, 0.0  ;;  %v1360_v1 = vmul.f32 %v1358_v61, %v1358_v61  ;;  %v2412_v62 = vld [vmem:[#allocation16 + $0x4] ss:$8 sps:$4 sm:$0xff]  }
 0xe77   :  { %1362 = vadd.xlane.f32.xlu1 %v1361_v63  ;;  %v2415_v63 = vld [vmem:[#allocation16 + $0x14] ss:$8 sps:$4 sm:$0xff]   ;;  %1682 = vmatprep.subr.bf16.mxu1 %v2412_v62 }
 0xe78   :  { %v1364_v3 = vsel %vm208_vm1, %v1360_v1, 0.0  ;;  %v2762_v1 = vmov 0  }
 0xe79   :  { %1365 = vadd.xlane.f32.xlu0 %v1364_v3  ;;  %v2413_v3 = vld [vmem:[#allocation16 + $0x10] ss:$8 sps:$4 sm:$0xff]  }
 0xf04   :  { %v1363_v15 = vpop.xlane.xlu1 %1362 }
 0xf05   :  { %v1367_v16 = vmul.f32 0.03125, %v1363_v15  ;;  %v2075_v15 = vld [vmem:[#allocation13] ss:$0 sm:$0xff] }
 0xf06   :  { %v1366_v17 = vpop.xlane.xlu0 %1365 }
 0xf07   :  { %v1369_v18 = vadd.f32 1e-05, %v1367_v16  ;;  %v1368_v19 = vmul.f32 0.03125, %v1366_v17 }
 0xf09   :  { %2472 = vrsqrt.f32 %v1369_v18  ;;  %v1370_v20 = vadd.f32 1e-05, %v1368_v19  ;;  %v2076_v18 = vld [vmem:[#allocation14] ss:$0 sm:$0xff] }
 0xf0b   :  { %2474 = vrsqrt.f32 %v1370_v20 }
 0xf13   :  { %v2473_v21 = vpop.eup %2472 }
 0xf14   :  { %v1373_v22 = vmul.f32 %v2473_v21, %v1357_v59 }
 0xf15   :  { %v2475_v23 = vpop.eup %2474 }
 0xf16   :  { %v1381_v24 = vmul.f32 %v2060_v10, %v1373_v22  ;;  %v1374_v14 = vmul.f32 %v2475_v23, %v1358_v61  ;;  %v2410_v61 = vld [vmem:[#allocation16] ss:$8 sps:$4 sm:$0xff]  }
 0xf18   :  { %v1382_v7 = vmul.f32 %v2060_v10, %v1374_v14  ;;  %v1389_v26 = vadd.f32 %v2061_v25, %v1381_v24 }
 0xf1a   :  { %v1390_v27 = vadd.f32 %v2061_v25, %v1382_v7 }
 0xf1c   :  { %v1391_v28 = vpack.c.bf16 %v1390_v27, %v1389_v26 }
 0xf1e   :  { %2327 = vmatmul.mubr.msk.bf16.vlgmr.msra.gmra.mrb[44].mxu1 %vm208_vm1, %v1391_v28 }
 0xf1f   :  { %1714 = vmatprep.mubr.bf16.mxu1 %v2762_v1  ;;  %1683 = vmatpush1.bf16.msra.mxu1 %v2410_v61  ;;  %v1642_v61 = vlaneseq  ;;  %v1640_v1 = vld [vmem:[%s3326_s13] sm:$0x3] }
 0xf20   :  { %1684 = vmatprep.subr.bf16.mxu1 %v2415_v63 }
 0xf21   :  { %v1643_v62 = vshrl.u32 %v1642_v61, 7 }
 0xf23   :  { %1685 = vmatpush1.bf16.msra.mxu1 %v2413_v3  ;;  %v1644_v63 = vsub.s32 0, %v1643_v62  ;;  %v1648_v3 = vsub.s32 1, %v1643_v62 }
 0xf24   :  { %2163 = vmatprep.subr.bf16.mxu1 %v2416_v2 }
 0xf25   :  { %v1645_v2 = vrot.slane %v1640_v1, %v1644_v63 }
 0xff1   :  { %v1452_v32 = vpop.f32.mrb[44].mxu1 }
 0xff2   :  { %v1453_v33 = vadd.f32 %v2062_v31, %v1452_v32  ;;  %v2328_v34 = vpop.f32.mrb[45].mxu1 }
 0xff3   :  { %v1455_v11 = vpop.f32.mrb[46].mxu1 }
 0xff4   :  { %v1456_v35 = vadd.f32 %v2062_v31, %v1455_v11  ;;  %v2329_v36 = vpop.f32.mrb[47].mxu1  ;;  %v1459_v37 = vmax.f32 %v1453_v33, 0.0 }
 0xff6   :  { %v1460_v38 = vmax.f32 %v1456_v35, 0.0 }
 0xff8   :  { %v1461_v39 = vpack.c.bf16 %v1460_v38, %v1459_v37 }
 0xffa   :  { %2347 = vmatmul.mubr.bf16.vlgmr.msra.gmra.mrb[40].mxu0 %v1461_v39  ;;  %v2417_v39 = vld [vmem:[%s3327_s14] sm:$0xff]  }
 0xffb   :  { %2366 = vmatprep.mubr.msk.bf16.mxu0 %vm2751_vm0, %v2750_v0 }
0x10cd   :  { %v1567_v41 = vpop.f32.mrb[40].mxu0 }
0x10ce   :  { %v1568_v42 = vadd.f32 %v2066_v40, %v1567_v41  ;;  %v2348_v43 = vpop.f32.mrb[41].mxu0  ;;  %v2418_v41 = vld [vmem:[%s3327_s14 + $0x48] sm:$0xff]  }
0x10cf   :  { %v1570_v44 = vpop.f32.mrb[42].mxu0  ;;  %v2420_v43 = vld [vmem:[%s3327_s14 + $0x50] sm:$0xff]  }
0x10d0   :  { %v1571_v45 = vadd.f32 %v2066_v40, %v1570_v44  ;;  %v2349_v46 = vpop.f32.mrb[43].mxu0  ;;  %v1574_v47 = vadd.f32 %v1568_v42, %v1389_v26  ;;  %v2419_v42 = vld [vmem:[%s3327_s14 + $0x8] sm:$0xff]   ;;  %v2421_v44 = vld [vmem:[%s3327_s14 + $0x10] sm:$0xff]  }
0x10d1   :  { %v2423_v46 = vld [vmem:[%s3327_s14 + $0x18] sm:$0xff]  }
0x10d2   :  { %v1578_v48 = vsel %vm208_vm1, %v1574_v47, 0.0  ;;  %v1575_v49 = vadd.f32 %v1571_v45, %v1390_v27  ;;  %v2422_v45 = vld [vmem:[%s3327_s14 + $0x58] sm:$0xff]  }
0x10d3   :  { %1579 = vadd.xlane.f32.xlu1 %v1578_v48  ;;  %v2425_v48 = vld [vmem:[%s3327_s14 + $0x20] sm:$0xff]  }
0x10d4   :  { %v1581_v50 = vsel %vm208_vm1, %v1575_v49, 0.0 }
0x10d5   :  { %1582 = vadd.xlane.f32.xlu0 %v1581_v50  ;;  %v2427_v50 = vld [vmem:[%s3327_s14 + $0x28] sm:$0xff]  }
0x1160   :  { %v1580_v51 = vpop.xlane.xlu1 %1579 }
0x1161   :  { %v1584_v52 = vmul.f32 0.03125, %v1580_v51  ;;  %v2428_v51 = vld [vmem:[%s3327_s14 + $0x70] sm:$0xff]  }
0x1162   :  { %v1583_v53 = vpop.xlane.xlu0 %1582 }
0x1163   :  { %v1586_v54 = vsub.f32 %v1574_v47, %v1584_v52  ;;  %v1585_v55 = vmul.f32 0.03125, %v1583_v53  ;;  %v2424_v47 = vld [vmem:[%s3327_s14 + $0x60] sm:$0xff]   ;;  %v2429_v52 = vld [vmem:[%s3327_s14 + $0x30] sm:$0xff]   ;;  %v2430_v53 = vld [vmem:[%s3327_s14 + $0x78] sm:$0xff]  }
0x1165   :  { %v1587_v56 = vsub.f32 %v1575_v49, %v1585_v55  ;;  %v1588_v57 = vmul.f32 %v1586_v54, %v1586_v54  ;;  %v2426_v49 = vld [vmem:[%s3327_s14 + $0x68] sm:$0xff]  }
0x1166   :  { %v2432_v55 = vld [vmem:[#allocation17] sm:$0xff]  }
0x1167   :  { %v1590_v58 = vsel %vm208_vm1, %v1588_v57, 0.0  ;;  %v1589_v59 = vmul.f32 %v1587_v56, %v1587_v56  ;;  %2351 = vmatpush3.bf16.msra.mxu0 %v2432_v55  ;;  %v2434_v57 = vld [vmem:[#allocation17 + $0x10] sm:$0xff]  }
0x1168   :  { %1591 = vadd.xlane.f32.xlu1 %v1590_v58  ;;  %2352 = vmatprep.subr.bf16.mxu0 %v2750_v0  ;;  %v2435_v58 = vld [vmem:[#allocation17 + $0x18] sm:$0xff]  }
0x1169   :  { %v1593_v60 = vsel %vm208_vm1, %v1589_v59, 0.0  ;;  %v2436_v59 = vld [vmem:[#allocation17 + $0x20] sm:$0xff]  }
0x116a   :  { %1594 = vadd.xlane.f32.xlu0 %v1593_v60  ;;  %v2437_v60 = vld [vmem:[#allocation17 + $0x28] sm:$0xff]  }
0x11f5   :  { %v1592_v4 = vpop.xlane.xlu1 %1591 }
0x11f6   :  { %v1596_v5 = vmul.f32 0.03125, %v1592_v4  ;;  %v1649_v4 = vrot.slane %v1640_v1, %v1648_v3 }
0x11f7   :  { %v1595_v6 = vpop.xlane.xlu0 %1594 }
0x11f8   :  { %v1598_v8 = vadd.f32 1e-05, %v1596_v5  ;;  %v1597_v9 = vmul.f32 0.03125, %v1595_v6 }
0x11fa   :  { %2476 = vrsqrt.f32 %v1598_v8  ;;  %v1599_v12 = vadd.f32 1e-05, %v1597_v9 }
0x11fc   :  { %2478 = vrsqrt.f32 %v1599_v12 }
0x1204   :  { %v2477_v13 = vpop.eup %2476 }
0x1205   :  { %v1602_v16 = vmul.f32 %v2477_v13, %v1586_v54  ;;  %v2431_v54 = vld [vmem:[%s3327_s14 + $0x38] sm:$0xff]  }
0x1206   :  { %v2479_v17 = vpop.eup %2478 }
0x1207   :  { %v1610_v19 = vmul.f32 %v2075_v15, %v1602_v16  ;;  %v1603_v20 = vmul.f32 %v2479_v17, %v1587_v56  ;;  %v2433_v56 = vld [vmem:[#allocation17 + $0x8] sm:$0xff]  }
0x1208   :  { %2353 = vmatpush3.bf16.msra.mxu0 %v2433_v56 }
0x1209   :  { %v1618_v21 = vadd.f32 %v2076_v18, %v1610_v19  ;;  %v1611_v10 = vmul.f32 %v2075_v15, %v1603_v20  ;;  %2354 = vmatprep.subr.bf16.mxu0 %v2750_v0  ;;  %v2438_v19 = vld [vmem:[#allocation17 + $0x30] sm:$0xff]   ;;  %v2439_v20 = vld [vmem:[#allocation17 + $0x38] sm:$0xff]  }
0x120b   :  { %v1620_v22 = vsel %vm208_vm1, %v1618_v21, -inf  ;;  %v1619_v23 = vadd.f32 %v2076_v18, %v1611_v10  ;;  %v2082_v10 = vld [vmem:[%s3328_s15] ss:$0 sm:$0xff]  ;;  %s2700_s15 = scalar_lea.vmem %s2023_s26, 32 }
0x120c   :  { %v1621_v24 = vrot.slane %v1620_v22, 4  ;;  %2355 = vmatpush3.bf16.msra.mxu0 %v2434_v57  ;;  %p2701_p10 = scmp.ne.s32.totalorder %s2023_s26, %s2700_s15  ;;  %p2706_p12 = scmp.lt.s32.totalorder %s2700_s15, %s2700_s15 }
0x120d   :  { %v1627_v14 = vsel %vm208_vm1, %v1619_v23, -inf  ;;  %2356 = vmatprep.subr.bf16.mxu0 %v2750_v0 }
0x120e   :  { %v1622_v25 = vmax.f32 %v1620_v22, %v1621_v24  ;;  %v1628_v7 = vrot.slane %v1627_v14, 4  ;;  %p2707_p13 = por %p2706_p12, %p2705_p11 }
0x1210   :  { %v1623_v26 = vrot.slane %v1622_v25, 2  ;;  %v1629_v27 = vmax.f32 %v1627_v14, %v1628_v7  ;;  %2357 = vmatpush3.bf16.msra.mxu0 %v2435_v58  ;;  %p2708_p0 = pnand %p2707_p13, %p2701_p10 }
0x1211   :  { %2358 = vmatprep.subr.bf16.mxu0 %v2750_v0 }
0x1212   :  { %v1630_v28 = vrot.slane %v1629_v27, 2  ;;  %v1624_v29 = vmax.f32 %v1622_v25, %v1623_v26 }
0x1214   :  { %v1625_v30 = vrot.slane %v1624_v29, 1  ;;  %v1631_v31 = vmax.f32 %v1629_v27, %v1630_v28  ;;  %2359 = vmatpush3.bf16.msra.mxu0 %v2436_v59  ;;  %v2099_v27 = vld [vmem:[%s3344_s3] ss:$0 sm:$0xff] }
0x1215   :  { %2360 = vmatprep.subr.bf16.mxu0 %v2750_v0 }
0x1216   :  { %v1626_v32 = vmax.f32 %v1624_v29, %v1625_v30  ;;  %v1632_v33 = vrot.slane %v1631_v31, 1 }
0x1218   :  { %v1633_v34 = vmax.f32 %v1631_v31, %v1632_v33  ;;  %v1634_v11 = vpack.c.bf16 %v1626_v32, %v1626_v32  ;;  %2361 = vmatpush3.bf16.msra.mxu0 %v2437_v60 }
0x1219   :  { %2362 = vmatprep.subr.bf16.mxu0 %v2750_v0 }
0x121a   :  { %v1635_v35 = vpack.c.bf16 %v1633_v34, %v1633_v34  ;;  %v1654_v36 = vunpack.c.l.b16 %v1634_v11 }
0x121c   :  { %v1655_v37 = vunpack.c.l.b16 %v1635_v35  ;;  %2363 = vmatpush3.bf16.msra.mxu0 %v2438_v19 }
0x121d   :  { %2364 = vmatprep.subr.bf16.mxu0 %v2750_v0 }
0x121e   :  { %v1657_v38 = vsel %vm1656_vm4, %v1655_v37, %v1654_v36 }
0x121f   :  { %v1658_v40 = vpack.c.b16 %v1657_v38, %v1657_v38 }
0x1220   :  { %2365 = vmatpush3.bf16.msra.mxu0 %v2439_v20 }
0x1221   :  { %2081 = vmatmul.mubr.msk.bf16.vlgmr.msra.gmra.mrb[48].mxu1 %vm208_vm1, %v1658_v40 }
0x1222   :  { %2164 = vmatpush3.bf16.msra.mxu1 %v2417_v39 }
0x1223   :  { %2165 = vmatprep.subr.bf16.mxu1 %v2418_v41 }
0x1226   :  { %2166 = vmatpush3.bf16.msra.mxu1 %v2419_v42 }
0x1227   :  { %2167 = vmatprep.subr.bf16.mxu1 %v2420_v43 }
0x122a   :  { %2168 = vmatpush3.bf16.msra.mxu1 %v2421_v44 }
0x122b   :  { %2169 = vmatprep.subr.bf16.mxu1 %v2422_v45 }
0x122e   :  { %2170 = vmatpush3.bf16.msra.mxu1 %v2423_v46 }
0x122f   :  { %2171 = vmatprep.subr.bf16.mxu1 %v2424_v47 }
0x1232   :  { %2172 = vmatpush3.bf16.msra.mxu1 %v2425_v48 }
0x1233   :  { %2173 = vmatprep.subr.bf16.mxu1 %v2426_v49 }
0x1236   :  { %2174 = vmatpush3.bf16.msra.mxu1 %v2427_v50 }
0x1237   :  { %2175 = vmatprep.subr.bf16.mxu1 %v2428_v51 }
0x123a   :  { %2176 = vmatpush3.bf16.msra.mxu1 %v2429_v52 }
0x123b   :  { %2177 = vmatprep.subr.bf16.mxu1 %v2430_v53 }
0x123e   :  { %2178 = vmatpush3.bf16.msra.mxu1 %v2431_v54 }
0x12f4   :  { %v1716_v5 = vpop.f32.mrb[48].mxu1 }
0x12f5   :  { %v1717_v6 = vadd.f32 %v1716_v5, %v1645_v2  ;;  %v1718_v8 = vpop.f32.mrb[49].mxu1 }
0x12f6   :  { %v1719_v9 = vadd.f32 %v1718_v8, %v1649_v4  ;;  %v1720_v12 = vpop.f32.mrb[50].mxu1 }
0x12f7   :  { %v1723_v13 = vmax.f32 %v1717_v6, 0.0  ;;  %v1721_v15 = vpop.f32.mrb[51].mxu1 }
0x12f8   :  { %v1724_v16 = vmax.f32 %v1719_v9, 0.0 }
0x12f9   :  { %v1725_v18 = vpack.c.bf16 %v1723_v13, %v1723_v13 }
0x12fa   :  { %v1726_v17 = vpack.c.bf16 %v1724_v16, %v1724_v16 }
0x12fc   :  { %1894 = vmatprep.mubr.bf16.mxu1 %v1726_v17 }
0x12fd   :  { %1895 = vmatmul.mubr.bf16.vlgmr.msra.gmra.mrb[52].mxu1 %v1725_v18 }
0x13d0   :  { %v2179_v21 = vpop.f32.mrb[52].mxu1 }
0x13d1   :  { %v2180_v22 = vpop.f32.mrb[53].mxu1 }
0x13d2   :  { %v2181_v23 = vadd.f32 %v2180_v22, %v2179_v21  ;;  %v2182_v24 = vpop.f32.mrb[54].mxu1 }
0x13d3   :  { %v2183_v14 = vpop.f32.mrb[55].mxu1 }
0x13d4   :  { %v1897_v25 = vadd.f32 %v2181_v23, %v2082_v10 }
0x13d6   :  { %v1902_v7 = vmax.f32 %v1897_v25, 0.0 }
0x13d8   :  { %v1903_v26 = vpack.c.bf16 %v1902_v7, %v1902_v7 }
0x13da   :  { %2367 = vmatmul.mubr.bf16.vlgmr.msra.gmra.mrb[44].mxu0 %v1903_v26 }
0x14ad   :  { %v2009_v0 = vpop.f32.mrb[44].mxu0 }
0x14ae   :  { %v2010_v28 = vadd.f32 %v2099_v27, %v2009_v0  ;;  %v2368_v29 = vpop.f32.mrb[45].mxu0 }
0x14af   :  { %v2012_v30 = vpop.f32.mrb[46].mxu0 }
0x14b0   :  { %2015 = vst [vmem:[#allocation19] sm:$0x3] %v2010_v28  ;;  %v2369_v31 = vpop.f32.mrb[47].mxu0 }
0x14b1   :  { %2711 = shalt.err (!%p2708_p0)
}
0x14b2   :  { %s3345_s22 = sld [smem:[#allocation31_spill]] }
0x14b8   :  { %s2712_s18 = scalar_lea.hbm %s3345_s22, 32 }
0x14b9   :  { %p2713_p1 = scmp.ne.s32.totalorder %s3345_s22, %s2712_s18  ;;  %p2716_p2 = scmp.lt.u32.totalorder %s2712_s18, %s3345_s22 }
0x14bb   :  { %p2718_p3 = pnand %p2716_p2, %p2713_p1 }
0x14bd   :  { %2721 = shalt.err (!%p2718_p3)
}
0x14be   :  { %2025 = dma.vmem_to_hbm [thread:$0]  %s2023_s26, 32, %s3345_s22, [#allocation4]  }
0x14bf   :  { %2734 = dma.done.wait [#allocation4], 32  }
0x14c0   :  { %2735 = vsyncadd [#allocation4], 4294967264 }
0x14c1   :  { %2029 = vsyncpa [#allocation3], 1 }
0x14c2   :  { %2030 = vsyncpa [#allocation6], 1 }
0x14c3   :  { %2031 = vsyncpa [#allocation9], 1 }
0x14c4   :  { %2032 = vsyncpa [#allocation12], 1 }
0x14c5   :  { %2033 = vsyncpa [#allocation15], 1 }
0x14c6   :  { %2034 = vsyncpa [#allocation18], 1 }
0x14c7   :  { %2035 = vsyncpa [#allocation4], 1 }

</bundles_post_ra>
